<compile_context>
chip_gen: v7x
topology: tpu7x:2x2x1
jax: 0.10.0
libtpu: 0.0.40
codegen_flags: <defaults>
</compile_context>

<pallas_src>
import jax
import jax.numpy as jnp
import numpy as np
from jax.experimental import pallas as pl
from jax.experimental.pallas import tpu as pltpu

INPUT_SIZE = 28
HIDDEN = 50
NUM_LAYERS = 5
NUM_CLASSES = 10

B_PAD = 8                       # batch rows padded to one sublane tile
LH = NUM_LAYERS * HIDDEN        # 250 packed state columns
LH_PAD = 256                    # one MXU tile on v6e/v7x
OUT_PAD = 128                   # lane-dense logits slab


def rnn_kernel(x_ref, wih0_ref, bias_ref, wbig_ref, fcw_ref, fcb_ref,
               out_ref, xbias_ref):
    """Full 5-layer RNN + FC head, wavefront recurrence, single invocation.

    x_ref    : (T*8, 28)    time-major, batch padded to 8 rows per timestep
    wih0_ref : (28, 256)    layer-0 input weights in cols 0:50, zeros elsewhere
    bias_ref : (1, 256)     fused b_ih+b_hh per layer laid along state columns
    wbig_ref : (256, 256)   block matrix: diag = W_hh^l, superdiag = W_ih^l (l>=1)
    fcw_ref  : (256, 128)   fc weights in rows 200:250 / cols 0:10, zeros elsewhere
    fcb_ref  : (1, 128)     fc bias in cols 0:10
    out_ref  : (8, 128)     padded logits (wrapper slices [:B, :10])
    xbias_ref: (T*8, 256)   VMEM scratch: layer-0 projection + all biases
    """
    TB = x_ref.shape[0]
    T = TB // B_PAD
    L = NUM_LAYERS
    H = HIDDEN

    # ---- Phase 1 (off the serial chain): one batched matmul for all t. ------
    # cols 0:50  = x_t @ W_ih^0 + b^0 ; cols l*50:(l+1)*50 = b^l ; cols 250:256 = 0
    xbias_ref[...] = (
        jnp.dot(x_ref[...], wih0_ref[...], preferred_element_type=jnp.float32)
        + bias_ref[...])

    # ---- Phase 2: diagonal wavefront. ---------------------------------------
    # state packs h^0..h^4 into one (8, 256) operand; each serial link is ONE
    # (8,256)@(256,256) MXU pass + add + tanh.  Chain length = T + L - 1 = 32.
    state = jnp.zeros((B_PAD, LH_PAD), jnp.float32)
    for d in range(T + L - 1):                     # static unroll
        td = min(d, T - 1)                         # layer-0 slot is dead for d >= T
        xb = xbias_ref[td * B_PAD:(td + 1) * B_PAD, :]
        new = jnp.tanh(
            jnp.dot(state, wbig_ref[...], preferred_element_type=jnp.float32)
            + xb)
        if d < L - 1:
            # Layers l > d have not started: keep their zero initial state so
            # h^l_{-1} = 0 is still intact when layer l launches at d = l.
            lane = jax.lax.broadcasted_iota(jnp.int32, (B_PAD, LH_PAD), 1)
            new = jnp.where(lane < (d + 1) * H, new, state)
        state = new

    # ---- FC head: one lane-dense (8,256)@(256,128) matmul. ------------------
    # fcw only has nonzero rows for the top layer's state columns (200:250).
    out_ref[...] = (
        jnp.dot(state, fcw_ref[...], preferred_element_type=jnp.float32)
        + fcb_ref[...])


def _pack_params(params):
    """Zero-pad / fuse PyTorch-style weights into the kernel's packed layout."""
    wih0, wihr, whh, bih, bhh, fcw, fcb = params

    wih0_pad = jnp.zeros((INPUT_SIZE, LH_PAD), jnp.float32)
    wih0_pad = wih0_pad.at[:, :HIDDEN].set(wih0)

    b_fused = (bih + bhh)[:, 0, :]                              # (L, H)
    bias_row = jnp.zeros((1, LH_PAD), jnp.float32)
    bias_row = bias_row.at[0, :LH].set(b_fused.reshape(-1))

    wbig = jnp.zeros((LH_PAD, LH_PAD), jnp.float32)
    for l in range(NUM_LAYERS):
        c = l * HIDDEN
        wbig = wbig.at[c:c + HIDDEN, c:c + HIDDEN].set(whh[l])          # h^l_{t-1} @ W_hh^l
        if l >= 1:
            wbig = wbig.at[c - HIDDEN:c, c:c + HIDDEN].set(wihr[l - 1])  # h^{l-1}_t @ W_ih^l

    fcw_big = jnp.zeros((LH_PAD, OUT_PAD), jnp.float32)
    fcw_big = fcw_big.at[(NUM_LAYERS - 1) * HIDDEN:LH, :NUM_CLASSES].set(fcw)
    fcb_pad = jnp.zeros((1, OUT_PAD), jnp.float32)
    fcb_pad = fcb_pad.at[0, :NUM_CLASSES].set(fcb[0])

    return wih0_pad, bias_row, wbig, fcw_big, fcb_pad


@jax.jit
def rnn_classifier_forward(x, params):
    """x: (B, T, 28) batch_first, like the PyTorch module."""
    B, T, _ = x.shape
    wih0_pad, bias_row, wbig, fcw_big, fcb_pad = _pack_params(params)

    # batch_first -> time-major, pad batch rows to one sublane tile, flatten 2D.
    xt = jnp.transpose(x, (1, 0, 2)).astype(jnp.float32)        # (T, B, 28)
    x_pad = jnp.zeros((T, B_PAD, INPUT_SIZE), jnp.float32).at[:, :B, :].set(xt)
    x_flat = x_pad.reshape(T * B_PAD, INPUT_SIZE)

    out_pad = pl.pallas_call(
        rnn_kernel,
        out_shape=jax.ShapeDtypeStruct((B_PAD, OUT_PAD), jnp.float32),
        scratch_shapes=[pltpu.VMEM((T * B_PAD, LH_PAD), jnp.float32)],
    )(x_flat, wih0_pad, bias_row, wbig, fcw_big, fcb_pad)

    return out_pad[:B, :NUM_CLASSES]


def init_params(key):
    """Deterministic init mimicking PyTorch's U(-1/sqrt(H), 1/sqrt(H))."""
    bound = 1.0 / np.sqrt(HIDDEN)
    ks = jax.random.split(key, 7)
    u = lambda k, s: jax.random.uniform(k, s, jnp.float32, -bound, bound)
    wih0 = u(ks[0], (INPUT_SIZE, HIDDEN))                   # W_ih_l0.T
    wihr = u(ks[1], (NUM_LAYERS - 1, HIDDEN, HIDDEN))       # W_ih_l{1..4}.T
    whh = u(ks[2], (NUM_LAYERS, HIDDEN, HIDDEN))            # W_hh_l*.T
    bih = u(ks[3], (NUM_LAYERS, 1, HIDDEN))
    bhh = u(ks[4], (NUM_LAYERS, 1, HIDDEN))
    fcw = u(ks[5], (HIDDEN, NUM_CLASSES))                   # fc.weight.T
    fcb = u(ks[6], (1, NUM_CLASSES))
    return (wih0, wihr, whh, bih, bhh, fcw, fcb)


def rnn_classifier_ref(x, params):
    """Pure-JAX reference matching torch.nn.RNN(batch_first=True) semantics."""
    wih0, wihr, whh, bih, bhh, fcw, fcb = params
    B, T, _ = x.shape
    seq = x.astype(jnp.float32)
    for l in range(NUM_LAYERS):
        wih = wih0 if l == 0 else wihr[l - 1]
        h = jnp.zeros((B, HIDDEN), jnp.float32)
        outs = []
        for t in range(T):
            h = jnp.tanh(seq[:, t, :] @ wih + h @ whh[l] + bih[l, 0] + bhh[l, 0])
            outs.append(h)
        seq = jnp.stack(outs, axis=1)
    return seq[:, -1, :] @ fcw + fcb[0]


if __name__ == "__main__":
    key = jax.random.PRNGKey(0)
    k_x, k_p = jax.random.split(key)

    B, T = 2, 28                     # MNIST-row-style sequence: 28 steps of 28 features
    x = jax.random.normal(k_x, (B, T, INPUT_SIZE), jnp.float32)
    params = init_params(k_p)

    out = rnn_classifier_forward(x, params)
    out = jax.block_until_ready(out)

    ref = rnn_classifier_ref(x, params)
    np.testing.assert_allclose(np.asarray(out), np.asarray(ref),
                               rtol=2e-4, atol=2e-4)
    assert out.shape == (B, NUM_CLASSES)
    print("KERNEL_OK")
</pallas_src>

<mosaic_0001>
module attributes {stable_mosaic.version = 11 : i64} {
  func.func @rnn_kernel(%arg0: memref<224x28xf32, #tpu.memory_space<vmem>>, %arg1: memref<28x256xf32, #tpu.memory_space<vmem>>, %arg2: memref<1x256xf32, #tpu.memory_space<vmem>>, %arg3: memref<256x256xf32, #tpu.memory_space<vmem>>, %arg4: memref<256x128xf32, #tpu.memory_space<vmem>>, %arg5: memref<1x128xf32, #tpu.memory_space<vmem>>, %arg6: memref<8x128xf32, #tpu.memory_space<vmem>>, %arg7: memref<224x256xf32, #tpu.memory_space<vmem>>) attributes {dimension_semantics = [], scalar_prefetch = 0 : i64, scratch_operands = 1 : i64, tpu.core_type = #tpu.core_type<tc>} {
    %c0 = arith.constant 0 : index
    %c0_0 = arith.constant 0 : index
    %0 = vector.load %arg0[%c0, %c0_0] : memref<224x28xf32, #tpu.memory_space<vmem>>, vector<224x28xf32>
    %c0_1 = arith.constant 0 : index
    %c0_2 = arith.constant 0 : index
    %1 = vector.load %arg1[%c0_1, %c0_2] : memref<28x256xf32, #tpu.memory_space<vmem>>, vector<28x256xf32>
    %cst = arith.constant dense<0.000000e+00> : vector<224x256xf32>
    %2 = tpu.matmul %0, %1, %cst {dimension_numbers = #tpu.dot_dimension_numbers<[1], [0], [0], [1], [0, 0, 1, 1], [], []>} : vector<224x28xf32>, vector<28x256xf32>, vector<224x256xf32> -> vector<224x256xf32>
    %c0_3 = arith.constant 0 : index
    %c0_4 = arith.constant 0 : index
    %3 = vector.load %arg2[%c0_3, %c0_4] : memref<1x256xf32, #tpu.memory_space<vmem>>, vector<1x256xf32>
    %4 = vector.broadcast %3 : vector<1x256xf32> to vector<224x256xf32>
    %5 = arith.addf %2, %4 : vector<224x256xf32>
    %c0_5 = arith.constant 0 : index
    %c0_6 = arith.constant 0 : index
    %6 = vector.load %arg7[%c0_5, %c0_6] : memref<224x256xf32, #tpu.memory_space<vmem>>, vector<224x256xf32>
    tpu.vector_store %arg7[%c0_5, %c0_6], %5 {strides = array<i32>} : memref<224x256xf32, #tpu.memory_space<vmem>>, vector<224x256xf32>,
    %cst_7 = arith.constant 0.000000e+00 : f32
    %7 = vector.broadcast %cst_7 : f32 to vector<8x256xf32>
    %c0_8 = arith.constant 0 : index
    %c0_9 = arith.constant 0 : index
    %8 = vector.load %arg7[%c0_8, %c0_9] : memref<224x256xf32, #tpu.memory_space<vmem>>, vector<8x256xf32>
    %c0_10 = arith.constant 0 : index
    %c0_11 = arith.constant 0 : index
    %9 = vector.load %arg3[%c0_10, %c0_11] : memref<256x256xf32, #tpu.memory_space<vmem>>, vector<256x256xf32>
    %cst_12 = arith.constant dense<0.000000e+00> : vector<8x256xf32>
    %10 = tpu.matmul %7, %9, %cst_12 {dimension_numbers = #tpu.dot_dimension_numbers<[1], [0], [0], [1], [0, 0, 1, 1], [], []>} : vector<8x256xf32>, vector<256x256xf32>, vector<8x256xf32> -> vector<8x256xf32>
    %11 = arith.addf %10, %8 : vector<8x256xf32>
    %12 = math.tanh %11 : vector<8x256xf32>
    %13 = tpu.iota {dimensions = array<i32: 1>} : vector<8x256xi32>
    %c50_i32 = arith.constant 50 : i32
    %14 = vector.broadcast %c50_i32 : i32 to vector<8x256xi32>
    %15 = arith.cmpi slt, %13, %14 : vector<8x256xi32>
    %16 = arith.select %15, %12, %7 : vector<8x256xi1>, vector<8x256xf32>
    %c8 = arith.constant 8 : index
    %c0_13 = arith.constant 0 : index
    %17 = vector.load %arg7[%c8, %c0_13] : memref<224x256xf32, #tpu.memory_space<vmem>>, vector<8x256xf32>
    %c0_14 = arith.constant 0 : index
    %c0_15 = arith.constant 0 : index
    %18 = vector.load %arg3[%c0_14, %c0_15] : memref<256x256xf32, #tpu.memory_space<vmem>>, vector<256x256xf32>
    %cst_16 = arith.constant dense<0.000000e+00> : vector<8x256xf32>
    %19 = tpu.matmul %16, %18, %cst_16 {dimension_numbers = #tpu.dot_dimension_numbers<[1], [0], [0], [1], [0, 0, 1, 1], [], []>} : vector<8x256xf32>, vector<256x256xf32>, vector<8x256xf32> -> vector<8x256xf32>
    %20 = arith.addf %19, %17 : vector<8x256xf32>
    %21 = math.tanh %20 : vector<8x256xf32>
    %22 = tpu.iota {dimensions = array<i32: 1>} : vector<8x256xi32>
    %c100_i32 = arith.constant 100 : i32
    %23 = vector.broadcast %c100_i32 : i32 to vector<8x256xi32>
    %24 = arith.cmpi slt, %22, %23 : vector<8x256xi32>
    %25 = arith.select %24, %21, %16 : vector<8x256xi1>, vector<8x256xf32>
    %c16 = arith.constant 16 : index
    %c0_17 = arith.constant 0 : index
    %26 = vector.load %arg7[%c16, %c0_17] : memref<224x256xf32, #tpu.memory_space<vmem>>, vector<8x256xf32>
    %c0_18 = arith.constant 0 : index
    %c0_19 = arith.constant 0 : index
    %27 = vector.load %arg3[%c0_18, %c0_19] : memref<256x256xf32, #tpu.memory_space<vmem>>, vector<256x256xf32>
    %cst_20 = arith.constant dense<0.000000e+00> : vector<8x256xf32>
    %28 = tpu.matmul %25, %27, %cst_20 {dimension_numbers = #tpu.dot_dimension_numbers<[1], [0], [0], [1], [0, 0, 1, 1], [], []>} : vector<8x256xf32>, vector<256x256xf32>, vector<8x256xf32> -> vector<8x256xf32>
    %29 = arith.addf %28, %26 : vector<8x256xf32>
    %30 = math.tanh %29 : vector<8x256xf32>
    %31 = tpu.iota {dimensions = array<i32: 1>} : vector<8x256xi32>
    %c150_i32 = arith.constant 150 : i32
    %32 = vector.broadcast %c150_i32 : i32 to vector<8x256xi32>
    %33 = arith.cmpi slt, %31, %32 : vector<8x256xi32>
    %34 = arith.select %33, %30, %25 : vector<8x256xi1>, vector<8x256xf32>
    %c24 = arith.constant 24 : index
    %c0_21 = arith.constant 0 : index
    %35 = vector.load %arg7[%c24, %c0_21] : memref<224x256xf32, #tpu.memory_space<vmem>>, vector<8x256xf32>
    %c0_22 = arith.constant 0 : index
    %c0_23 = arith.constant 0 : index
    %36 = vector.load %arg3[%c0_22, %c0_23] : memref<256x256xf32, #tpu.memory_space<vmem>>, vector<256x256xf32>
    %cst_24 = arith.constant dense<0.000000e+00> : vector<8x256xf32>
    %37 = tpu.matmul %34, %36, %cst_24 {dimension_numbers = #tpu.dot_dimension_numbers<[1], [0], [0], [1], [0, 0, 1, 1], [], []>} : vector<8x256xf32>, vector<256x256xf32>, vector<8x256xf32> -> vector<8x256xf32>
    %38 = arith.addf %37, %35 : vector<8x256xf32>
    %39 = math.tanh %38 : vector<8x256xf32>
    %40 = tpu.iota {dimensions = array<i32: 1>} : vector<8x256xi32>
    %c200_i32 = arith.constant 200 : i32
    %41 = vector.broadcast %c200_i32 : i32 to vector<8x256xi32>
    %42 = arith.cmpi slt, %40, %41 : vector<8x256xi32>
    %43 = arith.select %42, %39, %34 : vector<8x256xi1>, vector<8x256xf32>
    %c32 = arith.constant 32 : index
    %c0_25 = arith.constant 0 : index
    %44 = vector.load %arg7[%c32, %c0_25] : memref<224x256xf32, #tpu.memory_space<vmem>>, vector<8x256xf32>
    %c0_26 = arith.constant 0 : index
    %c0_27 = arith.constant 0 : index
    %45 = vector.load %arg3[%c0_26, %c0_27] : memref<256x256xf32, #tpu.memory_space<vmem>>, vector<256x256xf32>
    %cst_28 = arith.constant dense<0.000000e+00> : vector<8x256xf32>
    %46 = tpu.matmul %43, %45, %cst_28 {dimension_numbers = #tpu.dot_dimension_numbers<[1], [0], [0], [1], [0, 0, 1, 1], [], []>} : vector<8x256xf32>, vector<256x256xf32>, vector<8x256xf32> -> vector<8x256xf32>
    %47 = arith.addf %46, %44 : vector<8x256xf32>
    %48 = math.tanh %47 : vector<8x256xf32>
    %c40 = arith.constant 40 : index
    %c0_29 = arith.constant 0 : index
    %49 = vector.load %arg7[%c40, %c0_29] : memref<224x256xf32, #tpu.memory_space<vmem>>, vector<8x256xf32>
    %c0_30 = arith.constant 0 : index
    %c0_31 = arith.constant 0 : index
    %50 = vector.load %arg3[%c0_30, %c0_31] : memref<256x256xf32, #tpu.memory_space<vmem>>, vector<256x256xf32>
    %cst_32 = arith.constant dense<0.000000e+00> : vector<8x256xf32>
    %51 = tpu.matmul %48, %50, %cst_32 {dimension_numbers = #tpu.dot_dimension_numbers<[1], [0], [0], [1], [0, 0, 1, 1], [], []>} : vector<8x256xf32>, vector<256x256xf32>, vector<8x256xf32> -> vector<8x256xf32>
    %52 = arith.addf %51, %49 : vector<8x256xf32>
    %53 = math.tanh %52 : vector<8x256xf32>
    %c48 = arith.constant 48 : index
    %c0_33 = arith.constant 0 : index
    %54 = vector.load %arg7[%c48, %c0_33] : memref<224x256xf32, #tpu.memory_space<vmem>>, vector<8x256xf32>
    %c0_34 = arith.constant 0 : index
    %c0_35 = arith.constant 0 : index
    %55 = vector.load %arg3[%c0_34, %c0_35] : memref<256x256xf32, #tpu.memory_space<vmem>>, vector<256x256xf32>
    %cst_36 = arith.constant dense<0.000000e+00> : vector<8x256xf32>
    %56 = tpu.matmul %53, %55, %cst_36 {dimension_numbers = #tpu.dot_dimension_numbers<[1], [0], [0], [1], [0, 0, 1, 1], [], []>} : vector<8x256xf32>, vector<256x256xf32>, vector<8x256xf32> -> vector<8x256xf32>
    %57 = arith.addf %56, %54 : vector<8x256xf32>
    %58 = math.tanh %57 : vector<8x256xf32>
    %c56 = arith.constant 56 : index
    %c0_37 = arith.constant 0 : index
    %59 = vector.load %arg7[%c56, %c0_37] : memref<224x256xf32, #tpu.memory_space<vmem>>, vector<8x256xf32>
    %c0_38 = arith.constant 0 : index
    %c0_39 = arith.constant 0 : index
    %60 = vector.load %arg3[%c0_38, %c0_39] : memref<256x256xf32, #tpu.memory_space<vmem>>, vector<256x256xf32>
    %cst_40 = arith.constant dense<0.000000e+00> : vector<8x256xf32>
    %61 = tpu.matmul %58, %60, %cst_40 {dimension_numbers = #tpu.dot_dimension_numbers<[1], [0], [0], [1], [0, 0, 1, 1], [], []>} : vector<8x256xf32>, vector<256x256xf32>, vector<8x256xf32> -> vector<8x256xf32>
    %62 = arith.addf %61, %59 : vector<8x256xf32>
    %63 = math.tanh %62 : vector<8x256xf32>
    %c64 = arith.constant 64 : index
    %c0_41 = arith.constant 0 : index
    %64 = vector.load %arg7[%c64, %c0_41] : memref<224x256xf32, #tpu.memory_space<vmem>>, vector<8x256xf32>
    %c0_42 = arith.constant 0 : index
    %c0_43 = arith.constant 0 : index
    %65 = vector.load %arg3[%c0_42, %c0_43] : memref<256x256xf32, #tpu.memory_space<vmem>>, vector<256x256xf32>
    %cst_44 = arith.constant dense<0.000000e+00> : vector<8x256xf32>
    %66 = tpu.matmul %63, %65, %cst_44 {dimension_numbers = #tpu.dot_dimension_numbers<[1], [0], [0], [1], [0, 0, 1, 1], [], []>} : vector<8x256xf32>, vector<256x256xf32>, vector<8x256xf32> -> vector<8x256xf32>
    %67 = arith.addf %66, %64 : vector<8x256xf32>
    %68 = math.tanh %67 : vector<8x256xf32>
    %c72 = arith.constant 72 : index
    %c0_45 = arith.constant 0 : index
    %69 = vector.load %arg7[%c72, %c0_45] : memref<224x256xf32, #tpu.memory_space<vmem>>, vector<8x256xf32>
    %c0_46 = arith.constant 0 : index
    %c0_47 = arith.constant 0 : index
    %70 = vector.load %arg3[%c0_46, %c0_47] : memref<256x256xf32, #tpu.memory_space<vmem>>, vector<256x256xf32>
    %cst_48 = arith.constant dense<0.000000e+00> : vector<8x256xf32>
    %71 = tpu.matmul %68, %70, %cst_48 {dimension_numbers = #tpu.dot_dimension_numbers<[1], [0], [0], [1], [0, 0, 1, 1], [], []>} : vector<8x256xf32>, vector<256x256xf32>, vector<8x256xf32> -> vector<8x256xf32>
    %72 = arith.addf %71, %69 : vector<8x256xf32>
    %73 = math.tanh %72 : vector<8x256xf32>
    %c80 = arith.constant 80 : index
    %c0_49 = arith.constant 0 : index
    %74 = vector.load %arg7[%c80, %c0_49] : memref<224x256xf32, #tpu.memory_space<vmem>>, vector<8x256xf32>
    %c0_50 = arith.constant 0 : index
    %c0_51 = arith.constant 0 : index
    %75 = vector.load %arg3[%c0_50, %c0_51] : memref<256x256xf32, #tpu.memory_space<vmem>>, vector<256x256xf32>
    %cst_52 = arith.constant dense<0.000000e+00> : vector<8x256xf32>
    %76 = tpu.matmul %73, %75, %cst_52 {dimension_numbers = #tpu.dot_dimension_numbers<[1], [0], [0], [1], [0, 0, 1, 1], [], []>} : vector<8x256xf32>, vector<256x256xf32>, vector<8x256xf32> -> vector<8x256xf32>
    %77 = arith.addf %76, %74 : vector<8x256xf32>
    %78 = math.tanh %77 : vector<8x256xf32>
    %c88 = arith.constant 88 : index
    %c0_53 = arith.constant 0 : index
    %79 = vector.load %arg7[%c88, %c0_53] : memref<224x256xf32, #tpu.memory_space<vmem>>, vector<8x256xf32>
    %c0_54 = arith.constant 0 : index
    %c0_55 = arith.constant 0 : index
    %80 = vector.load %arg3[%c0_54, %c0_55] : memref<256x256xf32, #tpu.memory_space<vmem>>, vector<256x256xf32>
    %cst_56 = arith.constant dense<0.000000e+00> : vector<8x256xf32>
    %81 = tpu.matmul %78, %80, %cst_56 {dimension_numbers = #tpu.dot_dimension_numbers<[1], [0], [0], [1], [0, 0, 1, 1], [], []>} : vector<8x256xf32>, vector<256x256xf32>, vector<8x256xf32> -> vector<8x256xf32>
    %82 = arith.addf %81, %79 : vector<8x256xf32>
    %83 = math.tanh %82 : vector<8x256xf32>
    %c96 = arith.constant 96 : index
    %c0_57 = arith.constant 0 : index
    %84 = vector.load %arg7[%c96, %c0_57] : memref<224x256xf32, #tpu.memory_space<vmem>>, vector<8x256xf32>
    %c0_58 = arith.constant 0 : index
    %c0_59 = arith.constant 0 : index
    %85 = vector.load %arg3[%c0_58, %c0_59] : memref<256x256xf32, #tpu.memory_space<vmem>>, vector<256x256xf32>
    %cst_60 = arith.constant dense<0.000000e+00> : vector<8x256xf32>
    %86 = tpu.matmul %83, %85, %cst_60 {dimension_numbers = #tpu.dot_dimension_numbers<[1], [0], [0], [1], [0, 0, 1, 1], [], []>} : vector<8x256xf32>, vector<256x256xf32>, vector<8x256xf32> -> vector<8x256xf32>
    %87 = arith.addf %86, %84 : vector<8x256xf32>
    %88 = math.tanh %87 : vector<8x256xf32>
    %c104 = arith.constant 104 : index
    %c0_61 = arith.constant 0 : index
    %89 = vector.load %arg7[%c104, %c0_61] : memref<224x256xf32, #tpu.memory_space<vmem>>, vector<8x256xf32>
    %c0_62 = arith.constant 0 : index
    %c0_63 = arith.constant 0 : index
    %90 = vector.load %arg3[%c0_62, %c0_63] : memref<256x256xf32, #tpu.memory_space<vmem>>, vector<256x256xf32>
    %cst_64 = arith.constant dense<0.000000e+00> : vector<8x256xf32>
    %91 = tpu.matmul %88, %90, %cst_64 {dimension_numbers = #tpu.dot_dimension_numbers<[1], [0], [0], [1], [0, 0, 1, 1], [], []>} : vector<8x256xf32>, vector<256x256xf32>, vector<8x256xf32> -> vector<8x256xf32>
    %92 = arith.addf %91, %89 : vector<8x256xf32>
    %93 = math.tanh %92 : vector<8x256xf32>
    %c112 = arith.constant 112 : index
    %c0_65 = arith.constant 0 : index
    %94 = vector.load %arg7[%c112, %c0_65] : memref<224x256xf32, #tpu.memory_space<vmem>>, vector<8x256xf32>
    %c0_66 = arith.constant 0 : index
    %c0_67 = arith.constant 0 : index
    %95 = vector.load %arg3[%c0_66, %c0_67] : memref<256x256xf32, #tpu.memory_space<vmem>>, vector<256x256xf32>
    %cst_68 = arith.constant dense<0.000000e+00> : vector<8x256xf32>
    %96 = tpu.matmul %93, %95, %cst_68 {dimension_numbers = #tpu.dot_dimension_numbers<[1], [0], [0], [1], [0, 0, 1, 1], [], []>} : vector<8x256xf32>, vector<256x256xf32>, vector<8x256xf32> -> vector<8x256xf32>
    %97 = arith.addf %96, %94 : vector<8x256xf32>
    %98 = math.tanh %97 : vector<8x256xf32>
    %c120 = arith.constant 120 : index
    %c0_69 = arith.constant 0 : index
    %99 = vector.load %arg7[%c120, %c0_69] : memref<224x256xf32, #tpu.memory_space<vmem>>, vector<8x256xf32>
    %c0_70 = arith.constant 0 : index
    %c0_71 = arith.constant 0 : index
    %100 = vector.load %arg3[%c0_70, %c0_71] : memref<256x256xf32, #tpu.memory_space<vmem>>, vector<256x256xf32>
    %cst_72 = arith.constant dense<0.000000e+00> : vector<8x256xf32>
    %101 = tpu.matmul %98, %100, %cst_72 {dimension_numbers = #tpu.dot_dimension_numbers<[1], [0], [0], [1], [0, 0, 1, 1], [], []>} : vector<8x256xf32>, vector<256x256xf32>, vector<8x256xf32> -> vector<8x256xf32>
    %102 = arith.addf %101, %99 : vector<8x256xf32>
    %103 = math.tanh %102 : vector<8x256xf32>
    %c128 = arith.constant 128 : index
    %c0_73 = arith.constant 0 : index
    %104 = vector.load %arg7[%c128, %c0_73] : memref<224x256xf32, #tpu.memory_space<vmem>>, vector<8x256xf32>
    %c0_74 = arith.constant 0 : index
    %c0_75 = arith.constant 0 : index
    %105 = vector.load %arg3[%c0_74, %c0_75] : memref<256x256xf32, #tpu.memory_space<vmem>>, vector<256x256xf32>
    %cst_76 = arith.constant dense<0.000000e+00> : vector<8x256xf32>
    %106 = tpu.matmul %103, %105, %cst_76 {dimension_numbers = #tpu.dot_dimension_numbers<[1], [0], [0], [1], [0, 0, 1, 1], [], []>} : vector<8x256xf32>, vector<256x256xf32>, vector<8x256xf32> -> vector<8x256xf32>
    %107 = arith.addf %106, %104 : vector<8x256xf32>
    %108 = math.tanh %107 : vector<8x256xf32>
    %c136 = arith.constant 136 : index
    %c0_77 = arith.constant 0 : index
    %109 = vector.load %arg7[%c136, %c0_77] : memref<224x256xf32, #tpu.memory_space<vmem>>, vector<8x256xf32>
    %c0_78 = arith.constant 0 : index
    %c0_79 = arith.constant 0 : index
    %110 = vector.load %arg3[%c0_78, %c0_79] : memref<256x256xf32, #tpu.memory_space<vmem>>, vector<256x256xf32>
    %cst_80 = arith.constant dense<0.000000e+00> : vector<8x256xf32>
    %111 = tpu.matmul %108, %110, %cst_80 {dimension_numbers = #tpu.dot_dimension_numbers<[1], [0], [0], [1], [0, 0, 1, 1], [], []>} : vector<8x256xf32>, vector<256x256xf32>, vector<8x256xf32> -> vector<8x256xf32>
    %112 = arith.addf %111, %109 : vector<8x256xf32>
    %113 = math.tanh %112 : vector<8x256xf32>
    %c144 = arith.constant 144 : index
    %c0_81 = arith.constant 0 : index
    %114 = vector.load %arg7[%c144, %c0_81] : memref<224x256xf32, #tpu.memory_space<vmem>>, vector<8x256xf32>
    %c0_82 = arith.constant 0 : index
    %c0_83 = arith.constant 0 : index
    %115 = vector.load %arg3[%c0_82, %c0_83] : memref<256x256xf32, #tpu.memory_space<vmem>>, vector<256x256xf32>
    %cst_84 = arith.constant dense<0.000000e+00> : vector<8x256xf32>
    %116 = tpu.matmul %113, %115, %cst_84 {dimension_numbers = #tpu.dot_dimension_numbers<[1], [0], [0], [1], [0, 0, 1, 1], [], []>} : vector<8x256xf32>, vector<256x256xf32>, vector<8x256xf32> -> vector<8x256xf32>
    %117 = arith.addf %116, %114 : vector<8x256xf32>
    %118 = math.tanh %117 : vector<8x256xf32>
    %c152 = arith.constant 152 : index
    %c0_85 = arith.constant 0 : index
    %119 = vector.load %arg7[%c152, %c0_85] : memref<224x256xf32, #tpu.memory_space<vmem>>, vector<8x256xf32>
    %c0_86 = arith.constant 0 : index
    %c0_87 = arith.constant 0 : index
    %120 = vector.load %arg3[%c0_86, %c0_87] : memref<256x256xf32, #tpu.memory_space<vmem>>, vector<256x256xf32>
    %cst_88 = arith.constant dense<0.000000e+00> : vector<8x256xf32>
    %121 = tpu.matmul %118, %120, %cst_88 {dimension_numbers = #tpu.dot_dimension_numbers<[1], [0], [0], [1], [0, 0, 1, 1], [], []>} : vector<8x256xf32>, vector<256x256xf32>, vector<8x256xf32> -> vector<8x256xf32>
    %122 = arith.addf %121, %119 : vector<8x256xf32>
    %123 = math.tanh %122 : vector<8x256xf32>
    %c160 = arith.constant 160 : index
    %c0_89 = arith.constant 0 : index
    %124 = vector.load %arg7[%c160, %c0_89] : memref<224x256xf32, #tpu.memory_space<vmem>>, vector<8x256xf32>
    %c0_90 = arith.constant 0 : index
    %c0_91 = arith.constant 0 : index
    %125 = vector.load %arg3[%c0_90, %c0_91] : memref<256x256xf32, #tpu.memory_space<vmem>>, vector<256x256xf32>
    %cst_92 = arith.constant dense<0.000000e+00> : vector<8x256xf32>
    %126 = tpu.matmul %123, %125, %cst_92 {dimension_numbers = #tpu.dot_dimension_numbers<[1], [0], [0], [1], [0, 0, 1, 1], [], []>} : vector<8x256xf32>, vector<256x256xf32>, vector<8x256xf32> -> vector<8x256xf32>
    %127 = arith.addf %126, %124 : vector<8x256xf32>
    %128 = math.tanh %127 : vector<8x256xf32>
    %c168 = arith.constant 168 : index
    %c0_93 = arith.constant 0 : index
    %129 = vector.load %arg7[%c168, %c0_93] : memref<224x256xf32, #tpu.memory_space<vmem>>, vector<8x256xf32>
    %c0_94 = arith.constant 0 : index
    %c0_95 = arith.constant 0 : index
    %130 = vector.load %arg3[%c0_94, %c0_95] : memref<256x256xf32, #tpu.memory_space<vmem>>, vector<256x256xf32>
    %cst_96 = arith.constant dense<0.000000e+00> : vector<8x256xf32>
    %131 = tpu.matmul %128, %130, %cst_96 {dimension_numbers = #tpu.dot_dimension_numbers<[1], [0], [0], [1], [0, 0, 1, 1], [], []>} : vector<8x256xf32>, vector<256x256xf32>, vector<8x256xf32> -> vector<8x256xf32>
    %132 = arith.addf %131, %129 : vector<8x256xf32>
    %133 = math.tanh %132 : vector<8x256xf32>
    %c176 = arith.constant 176 : index
    %c0_97 = arith.constant 0 : index
    %134 = vector.load %arg7[%c176, %c0_97] : memref<224x256xf32, #tpu.memory_space<vmem>>, vector<8x256xf32>
    %c0_98 = arith.constant 0 : index
    %c0_99 = arith.constant 0 : index
    %135 = vector.load %arg3[%c0_98, %c0_99] : memref<256x256xf32, #tpu.memory_space<vmem>>, vector<256x256xf32>
    %cst_100 = arith.constant dense<0.000000e+00> : vector<8x256xf32>
    %136 = tpu.matmul %133, %135, %cst_100 {dimension_numbers = #tpu.dot_dimension_numbers<[1], [0], [0], [1], [0, 0, 1, 1], [], []>} : vector<8x256xf32>, vector<256x256xf32>, vector<8x256xf32> -> vector<8x256xf32>
    %137 = arith.addf %136, %134 : vector<8x256xf32>
    %138 = math.tanh %137 : vector<8x256xf32>
    %c184 = arith.constant 184 : index
    %c0_101 = arith.constant 0 : index
    %139 = vector.load %arg7[%c184, %c0_101] : memref<224x256xf32, #tpu.memory_space<vmem>>, vector<8x256xf32>
    %c0_102 = arith.constant 0 : index
    %c0_103 = arith.constant 0 : index
    %140 = vector.load %arg3[%c0_102, %c0_103] : memref<256x256xf32, #tpu.memory_space<vmem>>, vector<256x256xf32>
    %cst_104 = arith.constant dense<0.000000e+00> : vector<8x256xf32>
    %141 = tpu.matmul %138, %140, %cst_104 {dimension_numbers = #tpu.dot_dimension_numbers<[1], [0], [0], [1], [0, 0, 1, 1], [], []>} : vector<8x256xf32>, vector<256x256xf32>, vector<8x256xf32> -> vector<8x256xf32>
    %142 = arith.addf %141, %139 : vector<8x256xf32>
    %143 = math.tanh %142 : vector<8x256xf32>
    %c192 = arith.constant 192 : index
    %c0_105 = arith.constant 0 : index
    %144 = vector.load %arg7[%c192, %c0_105] : memref<224x256xf32, #tpu.memory_space<vmem>>, vector<8x256xf32>
    %c0_106 = arith.constant 0 : index
    %c0_107 = arith.constant 0 : index
    %145 = vector.load %arg3[%c0_106, %c0_107] : memref<256x256xf32, #tpu.memory_space<vmem>>, vector<256x256xf32>
    %cst_108 = arith.constant dense<0.000000e+00> : vector<8x256xf32>
    %146 = tpu.matmul %143, %145, %cst_108 {dimension_numbers = #tpu.dot_dimension_numbers<[1], [0], [0], [1], [0, 0, 1, 1], [], []>} : vector<8x256xf32>, vector<256x256xf32>, vector<8x256xf32> -> vector<8x256xf32>
    %147 = arith.addf %146, %144 : vector<8x256xf32>
    %148 = math.tanh %147 : vector<8x256xf32>
    %c200 = arith.constant 200 : index
    %c0_109 = arith.constant 0 : index
    %149 = vector.load %arg7[%c200, %c0_109] : memref<224x256xf32, #tpu.memory_space<vmem>>, vector<8x256xf32>
    %c0_110 = arith.constant 0 : index
    %c0_111 = arith.constant 0 : index
    %150 = vector.load %arg3[%c0_110, %c0_111] : memref<256x256xf32, #tpu.memory_space<vmem>>, vector<256x256xf32>
    %cst_112 = arith.constant dense<0.000000e+00> : vector<8x256xf32>
    %151 = tpu.matmul %148, %150, %cst_112 {dimension_numbers = #tpu.dot_dimension_numbers<[1], [0], [0], [1], [0, 0, 1, 1], [], []>} : vector<8x256xf32>, vector<256x256xf32>, vector<8x256xf32> -> vector<8x256xf32>
    %152 = arith.addf %151, %149 : vector<8x256xf32>
    %153 = math.tanh %152 : vector<8x256xf32>
    %c208 = arith.constant 208 : index
    %c0_113 = arith.constant 0 : index
    %154 = vector.load %arg7[%c208, %c0_113] : memref<224x256xf32, #tpu.memory_space<vmem>>, vector<8x256xf32>
    %c0_114 = arith.constant 0 : index
    %c0_115 = arith.constant 0 : index
    %155 = vector.load %arg3[%c0_114, %c0_115] : memref<256x256xf32, #tpu.memory_space<vmem>>, vector<256x256xf32>
    %cst_116 = arith.constant dense<0.000000e+00> : vector<8x256xf32>
    %156 = tpu.matmul %153, %155, %cst_116 {dimension_numbers = #tpu.dot_dimension_numbers<[1], [0], [0], [1], [0, 0, 1, 1], [], []>} : vector<8x256xf32>, vector<256x256xf32>, vector<8x256xf32> -> vector<8x256xf32>
    %157 = arith.addf %156, %154 : vector<8x256xf32>
    %158 = math.tanh %157 : vector<8x256xf32>
    %c216 = arith.constant 216 : index
    %c0_117 = arith.constant 0 : index
    %159 = vector.load %arg7[%c216, %c0_117] : memref<224x256xf32, #tpu.memory_space<vmem>>, vector<8x256xf32>
    %c0_118 = arith.constant 0 : index
    %c0_119 = arith.constant 0 : index
    %160 = vector.load %arg3[%c0_118, %c0_119] : memref<256x256xf32, #tpu.memory_space<vmem>>, vector<256x256xf32>
    %cst_120 = arith.constant dense<0.000000e+00> : vector<8x256xf32>
    %161 = tpu.matmul %158, %160, %cst_120 {dimension_numbers = #tpu.dot_dimension_numbers<[1], [0], [0], [1], [0, 0, 1, 1], [], []>} : vector<8x256xf32>, vector<256x256xf32>, vector<8x256xf32> -> vector<8x256xf32>
    %162 = arith.addf %161, %159 : vector<8x256xf32>
    %163 = math.tanh %162 : vector<8x256xf32>
    %c216_121 = arith.constant 216 : index
    %c0_122 = arith.constant 0 : index
    %164 = vector.load %arg7[%c216_121, %c0_122] : memref<224x256xf32, #tpu.memory_space<vmem>>, vector<8x256xf32>
    %c0_123 = arith.constant 0 : index
    %c0_124 = arith.constant 0 : index
    %165 = vector.load %arg3[%c0_123, %c0_124] : memref<256x256xf32, #tpu.memory_space<vmem>>, vector<256x256xf32>
    %cst_125 = arith.constant dense<0.000000e+00> : vector<8x256xf32>
    %166 = tpu.matmul %163, %165, %cst_125 {dimension_numbers = #tpu.dot_dimension_numbers<[1], [0], [0], [1], [0, 0, 1, 1], [], []>} : vector<8x256xf32>, vector<256x256xf32>, vector<8x256xf32> -> vector<8x256xf32>
    %167 = arith.addf %166, %164 : vector<8x256xf32>
    %168 = math.tanh %167 : vector<8x256xf32>
    %c216_126 = arith.constant 216 : index
    %c0_127 = arith.constant 0 : index
    %169 = vector.load %arg7[%c216_126, %c0_127] : memref<224x256xf32, #tpu.memory_space<vmem>>, vector<8x256xf32>
    %c0_128 = arith.constant 0 : index
    %c0_129 = arith.constant 0 : index
    %170 = vector.load %arg3[%c0_128, %c0_129] : memref<256x256xf32, #tpu.memory_space<vmem>>, vector<256x256xf32>
    %cst_130 = arith.constant dense<0.000000e+00> : vector<8x256xf32>
    %171 = tpu.matmul %168, %170, %cst_130 {dimension_numbers = #tpu.dot_dimension_numbers<[1], [0], [0], [1], [0, 0, 1, 1], [], []>} : vector<8x256xf32>, vector<256x256xf32>, vector<8x256xf32> -> vector<8x256xf32>
    %172 = arith.addf %171, %169 : vector<8x256xf32>
    %173 = math.tanh %172 : vector<8x256xf32>
    %c216_131 = arith.constant 216 : index
    %c0_132 = arith.constant 0 : index
    %174 = vector.load %arg7[%c216_131, %c0_132] : memref<224x256xf32, #tpu.memory_space<vmem>>, vector<8x256xf32>
    %c0_133 = arith.constant 0 : index
    %c0_134 = arith.constant 0 : index
    %175 = vector.load %arg3[%c0_133, %c0_134] : memref<256x256xf32, #tpu.memory_space<vmem>>, vector<256x256xf32>
    %cst_135 = arith.constant dense<0.000000e+00> : vector<8x256xf32>
    %176 = tpu.matmul %173, %175, %cst_135 {dimension_numbers = #tpu.dot_dimension_numbers<[1], [0], [0], [1], [0, 0, 1, 1], [], []>} : vector<8x256xf32>, vector<256x256xf32>, vector<8x256xf32> -> vector<8x256xf32>
    %177 = arith.addf %176, %174 : vector<8x256xf32>
    %178 = math.tanh %177 : vector<8x256xf32>
    %c216_136 = arith.constant 216 : index
    %c0_137 = arith.constant 0 : index
    %179 = vector.load %arg7[%c216_136, %c0_137] : memref<224x256xf32, #tpu.memory_space<vmem>>, vector<8x256xf32>
    %c0_138 = arith.constant 0 : index
    %c0_139 = arith.constant 0 : index
    %180 = vector.load %arg3[%c0_138, %c0_139] : memref<256x256xf32, #tpu.memory_space<vmem>>, vector<256x256xf32>
    %cst_140 = arith.constant dense<0.000000e+00> : vector<8x256xf32>
    %181 = tpu.matmul %178, %180, %cst_140 {dimension_numbers = #tpu.dot_dimension_numbers<[1], [0], [0], [1], [0, 0, 1, 1], [], []>} : vector<8x256xf32>, vector<256x256xf32>, vector<8x256xf32> -> vector<8x256xf32>
    %182 = arith.addf %181, %179 : vector<8x256xf32>
    %183 = math.tanh %182 : vector<8x256xf32>
    %c0_141 = arith.constant 0 : index
    %c0_142 = arith.constant 0 : index
    %184 = vector.load %arg4[%c0_141, %c0_142] : memref<256x128xf32, #tpu.memory_space<vmem>>, vector<256x128xf32>
    %cst_143 = arith.constant dense<0.000000e+00> : vector<8x128xf32>
    %185 = tpu.matmul %183, %184, %cst_143 {dimension_numbers = #tpu.dot_dimension_numbers<[1], [0], [0], [1], [0, 0, 1, 1], [], []>} : vector<8x256xf32>, vector<256x128xf32>, vector<8x128xf32> -> vector<8x128xf32>
    %c0_144 = arith.constant 0 : index
    %c0_145 = arith.constant 0 : index
    %186 = vector.load %arg5[%c0_144, %c0_145] : memref<1x128xf32, #tpu.memory_space<vmem>>, vector<1x128xf32>
    %187 = vector.broadcast %186 : vector<1x128xf32> to vector<8x128xf32>
    %188 = arith.addf %185, %187 : vector<8x128xf32>
    %c0_146 = arith.constant 0 : index
    %c0_147 = arith.constant 0 : index
    %189 = vector.load %arg6[%c0_146, %c0_147] : memref<8x128xf32, #tpu.memory_space<vmem>>, vector<8x128xf32>
    tpu.vector_store %arg6[%c0_146, %c0_147], %188 {strides = array<i32>} : memref<8x128xf32, #tpu.memory_space<vmem>>, vector<8x128xf32>,
    return
  }
}

</mosaic_0001>

<bundles_post_ra>
// kernel: rnn_classifier_forward.1
= control target key start
LH: loop header
LB: loop body
LE: loop exit
PB: predicated region body
PF: predicated region fallthrough
CT: control target
= control target key end

     0   :  { %vm156_vm0 = vcmask 1043456   ;;  %v7200_v3 = vmov 0.0   ;;  %vm5434_vm1 = vmmov 1   ;;  %vm71_vm3 = vcmask 228352   ;;  %s7193_s1 = inlined_call_operand.vmem [shape: f32[28,256], index: 1, kind: input, shape index: {}]   ;;  %s7194_s3 = inlined_call_operand.vmem [shape: f32[256,256], index: 3, kind: input, shape index: {}]   ;;  %s7195_s0 = inlined_call_operand.vmem [shape: f32[224,28], index: 0, kind: input, shape index: {}]   ;;  %s7196_s2 = inlined_call_operand.vmem [shape: f32[1,256], index: 2, kind: input, shape index: {}]   ;;  %s7197_s4 = inlined_call_operand.vmem [shape: f32[256,128], index: 4, kind: input, shape index: {}]   ;;  %s7198_s5 = inlined_call_operand.vmem [shape: f32[1,128], index: 5, kind: input, shape index: {}]   ;;  %s7199_s6 = inlined_call_operand.vmem [shape: f32[8,128], index: 6, kind: output, shape index: {}]  }
   0x1   :  { %v52_v0 = vld [vmem:[%s7193_s1 + $0x8] sm:$0xff]  ;;  %v54_v1 = vld [vmem:[%s7193_s1 + $0x18] sm:$0xff]  ;;  %v51_v2 = vld [vmem:[%s7193_s1] sm:$0xff]  ;;  %323 = vmatprep.mubr.f32.mxu1 %v7200_v3  ;;  %227 = vmatprep.mubr.f32.mxu0 %v7200_v3 }
   0x2   :  { %v3109_v4 = vpack.c.bf16 %v54_v1, %v52_v0  ;;  %v53_v5 = vld [vmem:[%s7193_s1 + $0x10] sm:$0xff]  ;;  %v56_v6 = vld [vmem:[%s7193_s1 + $0x28] sm:$0xff]  ;;  %v58_v7 = vld [vmem:[%s7193_s1 + $0x38] sm:$0xf] }
   0x3   :  { %v3111_v8 = vpack.c.bf16 %v53_v5, %v51_v2  ;;  %v3113_v9 = vpack.c.bf16 %v58_v7, %v56_v6  ;;  %vm5491_vm2 = vmpackc.low %vm156_vm0, %vm5434_vm1  ;;  %v55_v11 = vld [vmem:[%s7193_s1 + $0x20] sm:$0xff]  ;;  %v57_v12 = vld [vmem:[%s7193_s1 + $0x30] sm:$0xf] }
   0x4   :  { %5199 = vmatprep.subr.bf16.mxu1 %v3109_v4  ;;  %v455_v13 = vld [vmem:[%s7194_s3 + $0x8] sm:$0xff]  ;;  %v457_v14 = vld [vmem:[%s7194_s3 + $0x18] sm:$0xff]  ;;  %3110 = vmatprep.subr.bf16.mxu0 %v3109_v4  ;;  %v3116_v15 = vpack.c.bf16 %v57_v12, %v55_v11  ;;  %v454_v17 = vld [vmem:[%s7194_s3] sm:$0xff] }
   0x5   :  { %5201 = vmatpush1.bf16.msra.mxu1 %v3111_v8  ;;  %3112 = vmatpush1.bf16.msra.mxu0 %v3111_v8  ;;  %v5509_v16 = vpack.c.bf16 %v457_v14, %v455_v13  ;;  %v456_v18 = vld [vmem:[%s7194_s3 + $0x10] sm:$0xff]  ;;  %v459_v19 = vld [vmem:[%s7194_s3 + $0x28] sm:$0xff]  ;;  %v461_v20 = vld [vmem:[%s7194_s3 + $0x38] sm:$0xff] }
   0x6   :  { %5200 = vmatprep.subr.msk.bf16.mxu1 %vm5491_vm2, %v3113_v9  ;;  %3115 = vmatprep.subr.msk.bf16.mxu0 %vm5491_vm2, %v3113_v9  ;;  %v39_v21 = vld [vmem:[%s7195_s0 + $0x80] sm:$0xff]  ;;  %v5530_v22 = vpack.c.bf16 %v456_v18, %v454_v17  ;;  %v5535_v23 = vpack.c.bf16 %v461_v20, %v459_v19  ;;  %v460_v25 = vld [vmem:[%s7194_s3 + $0x30] sm:$0xff]  ;;  %v463_v26 = vld [vmem:[%s7194_s3 + $0x48] sm:$0xff] }
   0x7   :  { %v458_v24 = vld [vmem:[%s7194_s3 + $0x20] sm:$0xff]  ;;  %v465_v27 = vld [vmem:[%s7194_s3 + $0x58] sm:$0xff]  ;;  %v40_v29 = vld [vmem:[%s7195_s0 + $0x88] sm:$0xff] }
   0x8   :  { %v5552_v28 = vpack.c.bf16 %v460_v25, %v458_v24  ;;  %v5559_v30 = vpack.c.bf16 %v465_v27, %v463_v26  ;;  %v462_v31 = vld [vmem:[%s7194_s3 + $0x40] sm:$0xff]  ;;  %v464_v32 = vld [vmem:[%s7194_s3 + $0x50] sm:$0xff]  ;;  %v467_v33 = vld [vmem:[%s7194_s3 + $0x68] sm:$0xff] }
   0x9   :  { %5202 = vmatpush1.bf16.msk.msra.mxu1 %vm5491_vm2, %v3116_v15  ;;  %3118 = vmatpush1.bf16.msk.msra.mxu0 %vm5491_vm2, %v3116_v15  ;;  %v469_v34 = vld [vmem:[%s7194_s3 + $0x78] sm:$0xff]  ;;  %v5575_v35 = vpack.c.bf16 %v464_v32, %v462_v31  ;;  %v41_v36 = vld [vmem:[%s7195_s0 + $0x90] sm:$0xff]  ;;  %v466_v38 = vld [vmem:[%s7194_s3 + $0x60] sm:$0xff] }
   0xa   :  { %3120 = vmatprep.subr.bf16.mxu1 %v5509_v16  ;;  %3824 = vmatprep.subr.bf16.mxu0 %v5509_v16  ;;  %v5582_v37 = vpack.c.bf16 %v469_v34, %v467_v33  ;;  %v468_v39 = vld [vmem:[%s7194_s3 + $0x70] sm:$0xff]  ;;  %v471_v40 = vld [vmem:[%s7194_s3 + $0x88] sm:$0xff]  ;;  %v473_v41 = vld [vmem:[%s7194_s3 + $0x98] sm:$0xff] }
   0xb   :  { %v5598_v42 = vpack.c.bf16 %v468_v39, %v466_v38  ;;  %v42_v43 = vld [vmem:[%s7195_s0 + $0x98] sm:$0xff]  ;;  %v5605_v44 = vpack.c.bf16 %v473_v41, %v471_v40  ;;  %v470_v45 = vld [vmem:[%s7194_s3 + $0x80] sm:$0xff]  ;;  %v472_v46 = vld [vmem:[%s7194_s3 + $0x90] sm:$0xff] }
   0xc   :  { %3059 = vmatmul.mubr.msk.f32.vlgmr.msra.gmra.mrb[0].mxu1 %vm71_vm3, %v39_v21  ;;  %v475_v47 = vld [vmem:[%s7194_s3 + $0xa8] sm:$0xff]  ;;  %v477_v48 = vld [vmem:[%s7194_s3 + $0xb8] sm:$0xff]  ;;  %v5621_v49 = vpack.c.bf16 %v472_v46, %v470_v45  ;;  %v43_v50 = vld [vmem:[%s7195_s0 + $0xa0] sm:$0xff] }
   0xd   :  { %3122 = vmatpush1.bf16.msra.mxu1 %v5530_v22  ;;  %329 = vmatprep.mubr.f32.mxu1 %v7200_v3  ;;  %v5628_v51 = vpack.c.bf16 %v477_v48, %v475_v47  ;;  %v474_v52 = vld [vmem:[%s7194_s3 + $0xa0] sm:$0xff]  ;;  %v476_v53 = vld [vmem:[%s7194_s3 + $0xb0] sm:$0xff]  ;;  %v479_v54 = vld [vmem:[%s7194_s3 + $0xc8] sm:$0xff] }
   0xe   :  { %3124 = vmatprep.subr.bf16.mxu1 %v5535_v23  ;;  %v481_v55 = vld [vmem:[%s7194_s3 + $0xd8] sm:$0xff]  ;;  %v23_v56 = vld [vmem:[%s7195_s0] sm:$0xff]  ;;  %v5647_v57 = vpack.c.bf16 %v476_v53, %v474_v52  ;;  %v44_v58 = vld [vmem:[%s7195_s0 + $0xa8] sm:$0xff] }
   0xf   :  { %v5654_v59 = vpack.c.bf16 %v481_v55, %v479_v54  ;;  %v478_v60 = vld [vmem:[%s7194_s3 + $0xc0] sm:$0xff]  ;;  %v480_v61 = vld [vmem:[%s7194_s3 + $0xd0] sm:$0xff]  ;;  %3043 = vmatmul.mubr.msk.f32.vlgmr.msra.gmra.mrb[0].mxu0 %vm71_vm3, %v23_v56  ;;  %v483_v62 = vld [vmem:[%s7194_s3 + $0xe8] sm:$0xff] }
  0x10   :  { %3060 = vmatmul.mubr.msk.f32.gmra.mrb[2].mxu1 %vm71_vm3, %v40_v29  ;;  %v485_v63 = vld [vmem:[%s7194_s3 + $0xf8] sm:$0xff]  ;;  %233 = vmatprep.mubr.f32.mxu0 %v7200_v3  ;;  %v5674_v0 = vpack.c.bf16 %v480_v61, %v478_v60  ;;  %v45_v1 = vld [vmem:[%s7195_s0 + $0xb0] sm:$0xff]  ;;  %v482_v4 = vld [vmem:[%s7194_s3 + $0xe0] sm:$0xff] }
  0x11   :  { %3126 = vmatpush1.bf16.msra.mxu1 %v5552_v28  ;;  %335 = vmatprep.mubr.f32.mxu1 %v7200_v3  ;;  %v5681_v2 = vpack.c.bf16 %v485_v63, %v483_v62  ;;  %v484_v5 = vld [vmem:[%s7194_s3 + $0xf0] sm:$0xff]  ;;  %v487_v6 = vld [vmem:[%s7194_s3 + $0x108] sm:$0xff]  ;;  %v489_v7 = vld [vmem:[%s7194_s3 + $0x118] sm:$0xff] }
  0x12   :  { %3128 = vmatprep.subr.bf16.mxu1 %v5559_v30  ;;  %3826 = vmatpush1.bf16.msra.mxu0 %v5530_v22  ;;  %v5699_v8 = vpack.c.bf16 %v484_v5, %v482_v4  ;;  %v46_v9 = vld [vmem:[%s7195_s0 + $0xb8] sm:$0xff]  ;;  %v5706_v10 = vpack.c.bf16 %v489_v7, %v487_v6  ;;  %v486_v11 = vld [vmem:[%s7194_s3 + $0x100] sm:$0xff]  ;;  %v488_v12 = vld [vmem:[%s7194_s3 + $0x110] sm:$0xff] }
  0x13   :  { %3828 = vmatprep.subr.bf16.mxu0 %v5535_v23  ;;  %v491_v13 = vld [vmem:[%s7194_s3 + $0x128] sm:$0xff]  ;;  %v493_v14 = vld [vmem:[%s7194_s3 + $0x138] sm:$0xff]  ;;  %v5724_v15 = vpack.c.bf16 %v488_v12, %v486_v11  ;;  %v47_v17 = vld [vmem:[%s7195_s0 + $0xc0] sm:$0xff] }
  0x14   :  { %3061 = vmatmul.mubr.msk.f32.gmra.mrb[4].mxu1 %vm71_vm3, %v41_v36  ;;  %v5731_v18 = vpack.c.bf16 %v493_v14, %v491_v13  ;;  %v490_v19 = vld [vmem:[%s7194_s3 + $0x120] sm:$0xff]  ;;  %v492_v20 = vld [vmem:[%s7194_s3 + $0x130] sm:$0xff]  ;;  %v495_v21 = vld [vmem:[%s7194_s3 + $0x148] sm:$0xff] }
  0x15   :  { %3130 = vmatpush1.bf16.msra.mxu1 %v5575_v35  ;;  %341 = vmatprep.mubr.f32.mxu1 %v7200_v3  ;;  %v497_v24 = vld [vmem:[%s7194_s3 + $0x158] sm:$0xff]  ;;  %v5749_v25 = vpack.c.bf16 %v492_v20, %v490_v19  ;;  %v48_v26 = vld [vmem:[%s7195_s0 + $0xc8] sm:$0xff]  ;;  %v494_v29 = vld [vmem:[%s7194_s3 + $0x140] sm:$0xff] }
  0x16   :  { %3132 = vmatprep.subr.bf16.mxu1 %v5582_v37  ;;  %3830 = vmatpush1.bf16.msra.mxu0 %v5552_v28  ;;  %v5756_v27 = vpack.c.bf16 %v497_v24, %v495_v21  ;;  %v496_v31 = vld [vmem:[%s7194_s3 + $0x150] sm:$0xff]  ;;  %v499_v32 = vld [vmem:[%s7194_s3 + $0x168] sm:$0xff]  ;;  %v501_v33 = vld [vmem:[%s7194_s3 + $0x178] sm:$0xff] }
  0x17   :  { %3832 = vmatprep.subr.bf16.mxu0 %v5559_v30  ;;  %v5774_v34 = vpack.c.bf16 %v496_v31, %v494_v29  ;;  %v49_v36 = vld [vmem:[%s7195_s0 + $0xd0] sm:$0xff]  ;;  %v5781_v38 = vpack.c.bf16 %v501_v33, %v499_v32  ;;  %v498_v39 = vld [vmem:[%s7194_s3 + $0x160] sm:$0xff]  ;;  %v503_v41 = vld [vmem:[%s7194_s3 + $0x188] sm:$0xff] }
  0x18   :  { %3062 = vmatmul.mubr.msk.f32.gmra.mrb[6].mxu1 %vm71_vm3, %v42_v43  ;;  %v500_v40 = vld [vmem:[%s7194_s3 + $0x170] sm:$0xff]  ;;  %v505_v43 = vld [vmem:[%s7194_s3 + $0x198] sm:$0xff]  ;;  %v502_v48 = vld [vmem:[%s7194_s3 + $0x180] sm:$0xff] }
  0x19   :  { %3134 = vmatpush1.bf16.msra.mxu1 %v5598_v42  ;;  %347 = vmatprep.mubr.f32.mxu1 %v7200_v3  ;;  %v5799_v45 = vpack.c.bf16 %v500_v40, %v498_v39  ;;  %v50_v46 = vld [vmem:[%s7195_s0 + $0xd8] sm:$0xff]  ;;  %v5806_v47 = vpack.c.bf16 %v505_v43, %v503_v41  ;;  %v507_v52 = vld [vmem:[%s7194_s3 + $0x1a8] sm:$0xff]  ;;  %v506_v56 = vld [vmem:[%s7194_s3 + $0x1a0] sm:$0xff] }
  0x1a   :  { %3136 = vmatprep.subr.bf16.mxu1 %v5605_v44  ;;  %3834 = vmatpush1.bf16.msra.mxu0 %v5575_v35  ;;  %v509_v53 = vld [vmem:[%s7194_s3 + $0x1b8] sm:$0xff]  ;;  %v511_v60 = vld [vmem:[%s7194_s3 + $0x1c8] sm:$0xff]  ;;  %v512_v4 = vld [vmem:[%s7194_s3 + $0x1d0] sm:$0xff] }
  0x1b   :  { %3836 = vmatprep.subr.bf16.mxu0 %v5582_v37  ;;  %v5828_v55 = vpack.c.bf16 %v509_v53, %v507_v52  ;;  %v513_v61 = vld [vmem:[%s7194_s3 + $0x1d8] sm:$0xff]  ;;  %v515_v5 = vld [vmem:[%s7194_s3 + $0x1e8] sm:$0xff]  ;;  %v514_v11 = vld [vmem:[%s7194_s3 + $0x1e0] sm:$0xff] }
  0x1c   :  { %3063 = vmatmul.mubr.msk.f32.gmra.mrb[8].mxu1 %vm71_vm3, %v43_v50  ;;  %v504_v50 = vld [vmem:[%s7194_s3 + $0x190] sm:$0xff]  ;;  %v5848_v63 = vpack.c.bf16 %v513_v61, %v511_v60  ;;  %v517_v6 = vld [vmem:[%s7194_s3 + $0x1f8] sm:$0xff]  ;;  %v24_v14 = vld [vmem:[%s7195_s0 + $0x8] sm:$0xff] }
  0x1d   :  { %3138 = vmatpush1.bf16.msra.mxu1 %v5621_v49  ;;  %353 = vmatprep.mubr.f32.mxu1 %v7200_v3  ;;  %v5824_v54 = vpack.c.bf16 %v504_v50, %v502_v48  ;;  %v516_v12 = vld [vmem:[%s7194_s3 + $0x1f0] sm:$0xff] }
  0x1e   :  { %3140 = vmatprep.subr.bf16.mxu1 %v5628_v51  ;;  %3838 = vmatpush1.bf16.msra.mxu0 %v5598_v42  ;;  %v5879_v13 = vpack.c.bf16 %v516_v12, %v514_v11  ;;  %v5989_v12 = vld [vmem:[%s7196_s2] sm:$0x3] }
  0x1f   :  { %3840 = vmatprep.subr.bf16.mxu0 %v5605_v44  ;;  %3044 = vmatmul.mubr.msk.f32.gmra.mrb[2].mxu0 %vm71_vm3, %v24_v14 }
  0x20   :  { %3064 = vmatmul.mubr.msk.f32.gmra.mrb[10].mxu1 %vm71_vm3, %v44_v58  ;;  %v508_v58 = vld [vmem:[%s7194_s3 + $0x1b0] sm:$0xff]  ;;  %239 = vmatprep.mubr.f32.mxu0 %v7200_v3 }
  0x21   :  { %3142 = vmatpush1.bf16.msra.mxu1 %v5647_v57  ;;  %359 = vmatprep.mubr.f32.mxu1 %v7200_v3  ;;  %v5845_v62 = vpack.c.bf16 %v508_v58, %v506_v56 }
  0x22   :  { %3144 = vmatprep.subr.bf16.mxu1 %v5654_v59  ;;  %3842 = vmatpush1.bf16.msra.mxu0 %v5621_v49 }
  0x23   :  { %3844 = vmatprep.subr.bf16.mxu0 %v5628_v51 }
  0x24   :  { %3065 = vmatmul.mubr.msk.f32.gmra.mrb[12].mxu1 %vm71_vm3, %v45_v1  ;;  %v510_v1 = vld [vmem:[%s7194_s3 + $0x1c0] sm:$0xff] }
  0x25   :  { %3146 = vmatpush1.bf16.msra.mxu1 %v5674_v0  ;;  %365 = vmatprep.mubr.f32.mxu1 %v7200_v3  ;;  %v5865_v7 = vpack.c.bf16 %v512_v4, %v510_v1 }
  0x26   :  { %3148 = vmatprep.subr.bf16.mxu1 %v5681_v2  ;;  %3846 = vmatpush1.bf16.msra.mxu0 %v5647_v57 }
  0x27   :  { %3848 = vmatprep.subr.bf16.mxu0 %v5654_v59 }
  0x28   :  { %3066 = vmatmul.mubr.msk.f32.gmra.mrb[14].mxu1 %vm71_vm3, %v46_v9  ;;  %v5868_v9 = vpack.c.bf16 %v517_v6, %v515_v5  ;;  %v61_v5 = vlaneseq }
  0x29   :  { %3150 = vmatpush1.bf16.msra.mxu1 %v5699_v8  ;;  %371 = vmatprep.mubr.f32.mxu1 %v7200_v3 }
  0x2a   :  { %3152 = vmatprep.subr.bf16.mxu1 %v5706_v10  ;;  %3850 = vmatpush1.bf16.msra.mxu0 %v5674_v0  ;;  %v5983_v6 = vshrl.u32 %v61_v5, 7 }
  0x2b   :  { %3852 = vmatprep.subr.bf16.mxu0 %v5681_v2 }
  0x2c   :  { %3067 = vmatmul.mubr.msk.f32.gmra.mrb[16].mxu1 %vm71_vm3, %v47_v17  ;;  %v63_v11 = vsub.s32 0, %v5983_v6 }
  0x2d   :  { %3154 = vmatpush1.bf16.msra.mxu1 %v5724_v15  ;;  %377 = vmatprep.mubr.f32.mxu1 %v7200_v3 }
  0x2e   :  { %3156 = vmatprep.subr.bf16.mxu1 %v5731_v18  ;;  %3854 = vmatpush1.bf16.msra.mxu0 %v5699_v8  ;;  %v5992_v14 = vrot.slane %v5989_v12, %v63_v11 }
  0x2f   :  { %3856 = vmatprep.subr.bf16.mxu0 %v5706_v10 }
  0x30   :  { %3068 = vmatmul.mubr.msk.f32.gmra.mrb[18].mxu1 %vm71_vm3, %v48_v26 }
  0x31   :  { %3158 = vmatpush1.bf16.msra.mxu1 %v5749_v25  ;;  %383 = vmatprep.mubr.f32.mxu1 %v7200_v3 }
  0x32   :  { %3160 = vmatprep.subr.bf16.mxu1 %v5756_v27  ;;  %3858 = vmatpush1.bf16.msra.mxu0 %v5724_v15 }
  0x33   :  { %3860 = vmatprep.subr.bf16.mxu0 %v5731_v18 }
  0x34   :  { %3069 = vmatmul.mubr.msk.f32.gmra.mrb[20].mxu1 %vm71_vm3, %v49_v36 }
  0x35   :  { %3162 = vmatpush1.bf16.msra.mxu1 %v5774_v34  ;;  %389 = vmatprep.mubr.f32.mxu1 %v7200_v3 }
  0x36   :  { %3164 = vmatprep.subr.bf16.mxu1 %v5781_v38  ;;  %3862 = vmatpush1.bf16.msra.mxu0 %v5749_v25 }
  0x37   :  { %3864 = vmatprep.subr.bf16.mxu0 %v5756_v27 }
  0x38   :  { %3070 = vmatmul.mubr.msk.f32.gmra.mrb[22].mxu1 %vm71_vm3, %v50_v46 }
  0x39   :  { %3166 = vmatpush1.bf16.msra.mxu1 %v5799_v45  ;;  %582 = vmatprep.mubr.f32.mxu1 %v7200_v3 }
  0x3a   :  { %3168 = vmatprep.subr.bf16.mxu1 %v5806_v47  ;;  %3866 = vmatpush1.bf16.msra.mxu0 %v5774_v34 }
  0x3b   :  { %3868 = vmatprep.subr.bf16.mxu0 %v5781_v38 }
  0x3d   :  { %3170 = vmatpush1.bf16.msra.mxu1 %v5824_v54 }
  0x3e   :  { %3172 = vmatprep.subr.bf16.mxu1 %v5828_v55  ;;  %3870 = vmatpush1.bf16.msra.mxu0 %v5799_v45 }
  0x3f   :  { %3872 = vmatprep.subr.bf16.mxu0 %v5806_v47 }
  0x41   :  { %3174 = vmatpush1.bf16.msra.mxu1 %v5845_v62 }
  0x42   :  { %3176 = vmatprep.subr.bf16.mxu1 %v5848_v63  ;;  %3874 = vmatpush1.bf16.msra.mxu0 %v5824_v54 }
  0x43   :  { %3876 = vmatprep.subr.bf16.mxu0 %v5828_v55 }
  0x45   :  { %3178 = vmatpush1.bf16.msra.mxu1 %v5865_v7 }
  0x46   :  { %3180 = vmatprep.subr.bf16.mxu1 %v5868_v9  ;;  %3878 = vmatpush1.bf16.msra.mxu0 %v5845_v62 }
  0x47   :  { %3880 = vmatprep.subr.bf16.mxu0 %v5848_v63 }
  0x49   :  { %3182 = vmatpush1.bf16.msra.mxu1 %v5879_v13 }
  0x4a   :  { %3184 = vmatprep.subr.bf16.mxu1 %v5509_v16  ;;  %3882 = vmatpush1.bf16.msra.mxu0 %v5865_v7 }
  0x4b   :  { %3884 = vmatprep.subr.bf16.mxu0 %v5868_v9 }
  0x4c   :  { %583 = vmatmul.mubr.f32.vlgmr.msra.gmra.mrb[24].mxu1 %v7200_v3 }
  0x4d   :  { %3186 = vmatpush1.bf16.msra.mxu1 %v5530_v22  ;;  %664 = vmatprep.mubr.f32.mxu1 %v7200_v3 }
  0x4e   :  { %3188 = vmatprep.subr.bf16.mxu1 %v5535_v23  ;;  %3886 = vmatpush1.bf16.msra.mxu0 %v5879_v13 }
  0x4f   :  { %3888 = vmatprep.subr.bf16.mxu0 %v5509_v16 }
  0x51   :  { %3190 = vmatpush1.bf16.msra.mxu1 %v5552_v28 }
  0x52   :  { %3192 = vmatprep.subr.bf16.mxu1 %v5559_v30 }
  0x55   :  { %3194 = vmatpush1.bf16.msra.mxu1 %v5575_v35 }
  0x56   :  { %3196 = vmatprep.subr.bf16.mxu1 %v5582_v37 }
  0x59   :  { %3198 = vmatpush1.bf16.msra.mxu1 %v5598_v42 }
  0x5a   :  { %3200 = vmatprep.subr.bf16.mxu1 %v5605_v44 }
  0x5d   :  { %3202 = vmatpush1.bf16.msra.mxu1 %v5621_v49 }
  0x5e   :  { %3204 = vmatprep.subr.bf16.mxu1 %v5628_v51 }
  0x61   :  { %3206 = vmatpush1.bf16.msra.mxu1 %v5647_v57 }
  0x62   :  { %3208 = vmatprep.subr.bf16.mxu1 %v5654_v59 }
  0x65   :  { %3210 = vmatpush1.bf16.msra.mxu1 %v5674_v0 }
  0x66   :  { %3212 = vmatprep.subr.bf16.mxu1 %v5681_v2 }
  0x69   :  { %3214 = vmatpush1.bf16.msra.mxu1 %v5699_v8 }
  0x6a   :  { %3216 = vmatprep.subr.bf16.mxu1 %v5706_v10 }
  0x6d   :  { %3218 = vmatpush1.bf16.msra.mxu1 %v5724_v15 }
  0x6e   :  { %3220 = vmatprep.subr.bf16.mxu1 %v5731_v18 }
  0x71   :  { %3222 = vmatpush1.bf16.msra.mxu1 %v5749_v25 }
  0x72   :  { %3224 = vmatprep.subr.bf16.mxu1 %v5756_v27 }
  0x75   :  { %3226 = vmatpush1.bf16.msra.mxu1 %v5774_v34 }
  0x76   :  { %3228 = vmatprep.subr.bf16.mxu1 %v5781_v38 }
  0x79   :  { %3230 = vmatpush1.bf16.msra.mxu1 %v5799_v45 }
  0x7a   :  { %3232 = vmatprep.subr.bf16.mxu1 %v5806_v47 }
  0x7d   :  { %3234 = vmatpush1.bf16.msra.mxu1 %v5824_v54 }
  0x7e   :  { %3236 = vmatprep.subr.bf16.mxu1 %v5828_v55 }
  0x81   :  { %3238 = vmatpush1.bf16.msra.mxu1 %v5845_v62 }
  0x82   :  { %3240 = vmatprep.subr.bf16.mxu1 %v5848_v63 }
  0x85   :  { %3242 = vmatpush1.bf16.msra.mxu1 %v5865_v7 }
  0x86   :  { %3244 = vmatprep.subr.bf16.mxu1 %v5868_v9 }
  0x89   :  { %3246 = vmatpush1.bf16.msra.mxu1 %v5879_v13 }
  0x8a   :  { %3248 = vmatprep.subr.bf16.mxu1 %v5509_v16 }
  0xdf   :  { %v5935_v17 = vpop.f32.mrb[0].mxu1 }
  0xe0   :  { %v5937_v19 = vpop.f32.mrb[1].mxu1 }
  0xe2   :  { %v229_v36 = vpop.f32.mrb[0].mxu0 }
  0xe3   :  { %v5939_v20 = vpop.f32.mrb[2].mxu1  ;;  %v231_v39 = vpop.f32.mrb[1].mxu0 }
  0xe4   :  { %v5941_v21 = vpop.f32.mrb[3].mxu1  ;;  %v230_v39 = vadd.f32 %v229_v36, %v5992_v14 }
  0xe7   :  { %v5943_v24 = vpop.f32.mrb[4].mxu1 }
  0xe8   :  { %v5945_v26 = vpop.f32.mrb[5].mxu1 }
  0xeb   :  { %v5947_v29 = vpop.f32.mrb[6].mxu1 }
  0xec   :  { %v5949_v31 = vpop.f32.mrb[7].mxu1 }
  0xef   :  { %v5951_v32 = vpop.f32.mrb[8].mxu1 }
  0xf0   :  { %v5953_v33 = vpop.f32.mrb[9].mxu1 }
  0xf3   :  { %v5955_v40 = vpop.f32.mrb[10].mxu1 }
  0xf4   :  { %v5957_v41 = vpop.f32.mrb[11].mxu1 }
  0xf7   :  { %v5959_v43 = vpop.f32.mrb[12].mxu1 }
  0xf8   :  { %v5961_v46 = vpop.f32.mrb[13].mxu1 }
  0xfb   :  { %v5963_v48 = vpop.f32.mrb[14].mxu1 }
  0xfc   :  { %7204 = vst [vmem:[#allocation3_spill] sm:$0xff] %v5963_v48  ;;  %v5965_v50 = vpop.f32.mrb[15].mxu1 }
  0xfd   :  { %7205 = vst [vmem:[#allocation4_spill] sm:$0xff] %v5965_v50 }
  0xff   :  { %v5967_v52 = vpop.f32.mrb[16].mxu1 }
 0x100   :  { %7206 = vst [vmem:[#allocation5_spill] sm:$0xff] %v5967_v52  ;;  %v5969_v53 = vpop.f32.mrb[17].mxu1 }
 0x101   :  { %7207 = vst [vmem:[#allocation6_spill] sm:$0xff] %v5969_v53 }
 0x103   :  { %v5971_v56 = vpop.f32.mrb[18].mxu1 }
 0x104   :  { %7208 = vst [vmem:[#allocation7_spill] sm:$0xff] %v5971_v56  ;;  %v5973_v58 = vpop.f32.mrb[19].mxu1  ;;  %v7214_v56 = vmov 0.0  }
 0x105   :  { %7209 = vst [vmem:[#allocation8_spill] sm:$0xff] %v5973_v58 }
 0x107   :  { %v5975_v60 = vpop.f32.mrb[20].mxu1 }
 0x108   :  { %7210 = vst [vmem:[#allocation9_spill] sm:$0xff] %v5975_v60  ;;  %v5977_v61 = vpop.f32.mrb[21].mxu1 }
 0x109   :  { %7211 = vst [vmem:[#allocation10_spill] sm:$0xff] %v5977_v61 }
 0x10b   :  { %v5979_v1 = vpop.f32.mrb[22].mxu1 }
 0x10c   :  { %7212 = vst [vmem:[#allocation11_spill] sm:$0xff] %v5979_v1  ;;  %v5981_v4 = vpop.f32.mrb[23].mxu1 }
 0x10d   :  { %7213 = vst [vmem:[#allocation12_spill] sm:$0xff] %v5981_v4  ;;  %v5995_v4 = vand.u32 127, %v61_v5 }
 0x10f   :  { %vm594_vm4 = vcmp.lt.s32.totalorder %v5995_v4, 50  ;;  %vm673_vm5 = vcmp.lt.s32.totalorder %v5995_v4, 100  ;;  %v593_v50 = vadd.s32 128, %v5995_v4  ;;  %v27_v4 = vld [vmem:[%s7195_s0 + $0x20] sm:$0xff] }
 0x111   :  { %vm753_vm6 = vcmp.lt.s32.totalorder %v593_v50, 150  ;;  %vm832_vm7 = vcmp.lt.s32.totalorder %v593_v50, 200 }
 0x11f   :  { %v584_v3 = vpop.f32.mrb[24].mxu1 }
 0x120   :  { %v585_v61 = vadd.f32 %v584_v3, %v230_v39  ;;  %v586_v1 = vpop.f32.mrb[25].mxu1  ;;  %v235_v3 = vpop.f32.mrb[2].mxu0 }
 0x121   :  { %v237_v36 = vpop.f32.mrb[3].mxu0 }
 0x122   :  { %5309 = vtanh.f32 %v585_v61  ;;  %v236_v61 = vadd.f32 %v235_v3, %v5992_v14  ;;  %v26_v3 = vld [vmem:[%s7195_s0 + $0x18] sm:$0xff]  ;;  %v67_v36 = vsub.s32 1, %v5983_v6 }
 0x12c   :  { %v5310_v60 = vpop.eup %5309 }
 0x12d   :  { %3071 = vmatmul.mubr.msk.f32.vlgmr.msra.gmra.mrb[26].mxu1 %vm594_vm4, %v5310_v60  ;;  %v596_v58 = vsel %vm594_vm4, %v5310_v60, 0.0  ;;  %v25_v60 = vld [vmem:[%s7195_s0 + $0x10] sm:$0xff] }
 0x12e   :  { %3250 = vmatpush1.bf16.msra.mxu1 %v5530_v22  ;;  %743 = vmatprep.mubr.f32.mxu1 %v7214_v56 }
 0x12f   :  { %3252 = vmatprep.subr.bf16.mxu1 %v5535_v23  ;;  %3045 = vmatmul.mubr.msk.f32.gmra.mrb[4].mxu0 %vm71_vm3, %v25_v60  ;;  %v6077_v60 = vrot.slane %v5989_v12, %v67_v36 }
 0x130   :  { %245 = vmatprep.mubr.f32.mxu0 %v7214_v56 }
 0x132   :  { %3254 = vmatpush1.bf16.msra.mxu1 %v5552_v28 }
 0x133   :  { %3256 = vmatprep.subr.bf16.mxu1 %v5559_v30  ;;  %3046 = vmatmul.mubr.msk.f32.gmra.mrb[6].mxu0 %vm71_vm3, %v26_v3 }
 0x134   :  { %251 = vmatprep.mubr.f32.mxu0 %v7214_v56 }
 0x136   :  { %3258 = vmatpush1.bf16.msra.mxu1 %v5575_v35 }
 0x137   :  { %3260 = vmatprep.subr.bf16.mxu1 %v5582_v37  ;;  %3047 = vmatmul.mubr.msk.f32.gmra.mrb[8].mxu0 %vm71_vm3, %v27_v4 }
 0x138   :  { %257 = vmatprep.mubr.f32.mxu0 %v7214_v56 }
 0x13a   :  { %3262 = vmatpush1.bf16.msra.mxu1 %v5598_v42 }
 0x13b   :  { %3264 = vmatprep.subr.bf16.mxu1 %v5605_v44 }
 0x13e   :  { %3266 = vmatpush1.bf16.msra.mxu1 %v5621_v49 }
 0x13f   :  { %3268 = vmatprep.subr.bf16.mxu1 %v5628_v51 }
 0x142   :  { %3270 = vmatpush1.bf16.msra.mxu1 %v5647_v57 }
 0x143   :  { %3272 = vmatprep.subr.bf16.mxu1 %v5654_v59 }
 0x146   :  { %3274 = vmatpush1.bf16.msra.mxu1 %v5674_v0 }
 0x147   :  { %3276 = vmatprep.subr.bf16.mxu1 %v5681_v2 }
 0x14a   :  { %3278 = vmatpush1.bf16.msra.mxu1 %v5699_v8 }
 0x14b   :  { %3280 = vmatprep.subr.bf16.mxu1 %v5706_v10 }
 0x14e   :  { %3282 = vmatpush1.bf16.msra.mxu1 %v5724_v15 }
 0x14f   :  { %3284 = vmatprep.subr.bf16.mxu1 %v5731_v18 }
 0x152   :  { %3286 = vmatpush1.bf16.msra.mxu1 %v5749_v25 }
 0x153   :  { %3288 = vmatprep.subr.bf16.mxu1 %v5756_v27 }
 0x156   :  { %3290 = vmatpush1.bf16.msra.mxu1 %v5774_v34 }
 0x157   :  { %3292 = vmatprep.subr.bf16.mxu1 %v5781_v38 }
 0x15a   :  { %3294 = vmatpush1.bf16.msra.mxu1 %v5799_v45 }
 0x15b   :  { %3296 = vmatprep.subr.bf16.mxu1 %v5806_v47 }
 0x15e   :  { %3298 = vmatpush1.bf16.msra.mxu1 %v5824_v54 }
 0x15f   :  { %3300 = vmatprep.subr.bf16.mxu1 %v5828_v55 }
 0x162   :  { %3302 = vmatpush1.bf16.msra.mxu1 %v5845_v62 }
 0x163   :  { %3304 = vmatprep.subr.bf16.mxu1 %v5848_v63 }
 0x166   :  { %3306 = vmatpush1.bf16.msra.mxu1 %v5865_v7 }
 0x167   :  { %3308 = vmatprep.subr.bf16.mxu1 %v5868_v9 }
 0x16a   :  { %3310 = vmatpush1.bf16.msra.mxu1 %v5879_v13 }
 0x16b   :  { %3312 = vmatprep.subr.bf16.mxu1 %v5509_v16 }
 0x200   :  { %v666_v1 = vpop.f32.mrb[26].mxu1 }
 0x201   :  { %v667_v5 = vadd.f32 %v666_v1, %v236_v61  ;;  %v668_v11 = vpop.f32.mrb[27].mxu1 }
 0x203   :  { %5311 = vtanh.f32 %v667_v5 }
 0x20d   :  { %v5312_v39 = vpop.eup %5311 }
 0x20e   :  { %v675_v53 = vsel %vm673_vm5, %v5312_v39, %v596_v58 }
 0x20f   :  { %744 = vmatmul.mubr.f32.vlgmr.msra.gmra.mrb[28].mxu1 %v675_v53  ;;  %v241_v53 = vpop.f32.mrb[4].mxu0 }
 0x210   :  { %3314 = vmatpush1.bf16.msra.mxu1 %v5530_v22  ;;  %v243_v58 = vpop.f32.mrb[5].mxu0  ;;  %v242_v61 = vadd.f32 %v241_v53, %v5992_v14 }
 0x211   :  { %3316 = vmatprep.subr.bf16.mxu1 %v5535_v23  ;;  %v244_v1 = vadd.f32 %v243_v58, %v6077_v60 }
 0x214   :  { %3318 = vmatpush1.bf16.msra.mxu1 %v5552_v28 }
 0x215   :  { %3320 = vmatprep.subr.bf16.mxu1 %v5559_v30 }
 0x218   :  { %3322 = vmatpush1.bf16.msra.mxu1 %v5575_v35 }
 0x219   :  { %3324 = vmatprep.subr.bf16.mxu1 %v5582_v37 }
 0x21c   :  { %3326 = vmatpush1.bf16.msra.mxu1 %v5598_v42 }
 0x21d   :  { %3328 = vmatprep.subr.bf16.mxu1 %v5605_v44 }
 0x220   :  { %3330 = vmatpush1.bf16.msra.mxu1 %v5621_v49 }
 0x221   :  { %3332 = vmatprep.subr.bf16.mxu1 %v5628_v51 }
 0x224   :  { %3334 = vmatpush1.bf16.msra.mxu1 %v5647_v57 }
 0x225   :  { %3336 = vmatprep.subr.bf16.mxu1 %v5654_v59 }
 0x228   :  { %3338 = vmatpush1.bf16.msra.mxu1 %v5674_v0 }
 0x229   :  { %3340 = vmatprep.subr.bf16.mxu1 %v5681_v2 }
 0x22c   :  { %3342 = vmatpush1.bf16.msra.mxu1 %v5699_v8 }
 0x22d   :  { %3344 = vmatprep.subr.bf16.mxu1 %v5706_v10 }
 0x230   :  { %3346 = vmatpush1.bf16.msra.mxu1 %v5724_v15 }
 0x231   :  { %3348 = vmatprep.subr.bf16.mxu1 %v5731_v18 }
 0x234   :  { %3350 = vmatpush1.bf16.msra.mxu1 %v5749_v25 }
 0x235   :  { %3352 = vmatprep.subr.bf16.mxu1 %v5756_v27 }
 0x238   :  { %3354 = vmatpush1.bf16.msra.mxu1 %v5774_v34 }
 0x239   :  { %3356 = vmatprep.subr.bf16.mxu1 %v5781_v38 }
 0x23c   :  { %3358 = vmatpush1.bf16.msra.mxu1 %v5799_v45 }
 0x23d   :  { %3360 = vmatprep.subr.bf16.mxu1 %v5806_v47 }
 0x240   :  { %3362 = vmatpush1.bf16.msra.mxu1 %v5824_v54 }
 0x241   :  { %3364 = vmatprep.subr.bf16.mxu1 %v5828_v55 }
 0x244   :  { %3366 = vmatpush1.bf16.msra.mxu1 %v5845_v62 }
 0x245   :  { %3368 = vmatprep.subr.bf16.mxu1 %v5848_v63 }
 0x248   :  { %3370 = vmatpush1.bf16.msra.mxu1 %v5865_v7 }
 0x249   :  { %3372 = vmatprep.subr.bf16.mxu1 %v5868_v9 }
 0x24c   :  { %3374 = vmatpush1.bf16.msra.mxu1 %v5879_v13 }
 0x24d   :  { %3376 = vmatprep.subr.bf16.mxu1 %v5509_v16 }
 0x2e2   :  { %v745_v5 = vpop.f32.mrb[28].mxu1 }
 0x2e3   :  { %v746_v11 = vadd.f32 %v745_v5, %v242_v61  ;;  %v747_v39 = vpop.f32.mrb[29].mxu1 }
 0x2e4   :  { %v748_v52 = vadd.f32 %v747_v39, %v244_v1 }
 0x2e6   :  { %5313 = vtanh.f32 %v748_v52 }
 0x2e7   :  { %5315 = vtanh.f32 %v746_v11 }
 0x2f0   :  { %v5314_v3 = vpop.eup %5313 }
 0x2f1   :  { %v5316_v48 = vpop.eup %5315  ;;  %3072 = vmatprep.mubr.msk.f32.mxu1 %vm753_vm6, %v5314_v3  ;;  %v755_v6 = vsel %vm753_vm6, %v5314_v3, 0.0 }
 0x2f2   :  { %823 = vmatmul.mubr.f32.vlgmr.msra.gmra.mrb[30].mxu1 %v5316_v48  ;;  %v247_v48 = vpop.f32.mrb[6].mxu0 }
 0x2f3   :  { %3378 = vmatpush1.bf16.msra.mxu1 %v5530_v22  ;;  %v249_v52 = vpop.f32.mrb[7].mxu0  ;;  %v248_v12 = vadd.f32 %v247_v48, %v5992_v14 }
 0x2f4   :  { %3380 = vmatprep.subr.bf16.mxu1 %v5535_v23  ;;  %v250_v53 = vadd.f32 %v249_v52, %v6077_v60  ;;  %v253_v50 = vpop.f32.mrb[8].mxu0 }
 0x2f5   :  { %v255_v3 = vpop.f32.mrb[9].mxu0  ;;  %v254_v48 = vadd.f32 %v253_v50, %v5992_v14 }
 0x2f6   :  { %v256_v52 = vadd.f32 %v255_v3, %v6077_v60 }
 0x2f7   :  { %3382 = vmatpush1.bf16.msra.mxu1 %v5552_v28 }
 0x2f8   :  { %3384 = vmatprep.subr.bf16.mxu1 %v5559_v30 }
 0x2fb   :  { %3386 = vmatpush1.bf16.msra.mxu1 %v5575_v35 }
 0x2fc   :  { %3388 = vmatprep.subr.bf16.mxu1 %v5582_v37 }
 0x2ff   :  { %3390 = vmatpush1.bf16.msra.mxu1 %v5598_v42 }
 0x300   :  { %3392 = vmatprep.subr.bf16.mxu1 %v5605_v44 }
 0x303   :  { %3394 = vmatpush1.bf16.msra.mxu1 %v5621_v49 }
 0x304   :  { %3396 = vmatprep.subr.bf16.mxu1 %v5628_v51 }
 0x307   :  { %3398 = vmatpush1.bf16.msra.mxu1 %v5647_v57 }
 0x308   :  { %3400 = vmatprep.subr.bf16.mxu1 %v5654_v59 }
 0x30b   :  { %3402 = vmatpush1.bf16.msra.mxu1 %v5674_v0 }
 0x30c   :  { %3404 = vmatprep.subr.bf16.mxu1 %v5681_v2 }
 0x30f   :  { %3406 = vmatpush1.bf16.msra.mxu1 %v5699_v8 }
 0x310   :  { %3408 = vmatprep.subr.bf16.mxu1 %v5706_v10 }
 0x313   :  { %3410 = vmatpush1.bf16.msra.mxu1 %v5724_v15 }
 0x314   :  { %3412 = vmatprep.subr.bf16.mxu1 %v5731_v18 }
 0x317   :  { %3414 = vmatpush1.bf16.msra.mxu1 %v5749_v25 }
 0x318   :  { %3416 = vmatprep.subr.bf16.mxu1 %v5756_v27 }
 0x31b   :  { %3418 = vmatpush1.bf16.msra.mxu1 %v5774_v34 }
 0x31c   :  { %3420 = vmatprep.subr.bf16.mxu1 %v5781_v38 }
 0x31f   :  { %3422 = vmatpush1.bf16.msra.mxu1 %v5799_v45 }
 0x320   :  { %3424 = vmatprep.subr.bf16.mxu1 %v5806_v47 }
 0x323   :  { %3426 = vmatpush1.bf16.msra.mxu1 %v5824_v54 }
 0x324   :  { %3428 = vmatprep.subr.bf16.mxu1 %v5828_v55 }
 0x327   :  { %3430 = vmatpush1.bf16.msra.mxu1 %v5845_v62 }
 0x328   :  { %3432 = vmatprep.subr.bf16.mxu1 %v5848_v63 }
 0x32b   :  { %3434 = vmatpush1.bf16.msra.mxu1 %v5865_v7 }
 0x32c   :  { %3436 = vmatprep.subr.bf16.mxu1 %v5868_v9 }
 0x32f   :  { %3438 = vmatpush1.bf16.msra.mxu1 %v5879_v13 }
 0x330   :  { %3440 = vmatprep.subr.bf16.mxu1 %v5509_v16 }
 0x3c5   :  { %v824_v58 = vpop.f32.mrb[30].mxu1 }
 0x3c6   :  { %v825_v36 = vadd.f32 %v824_v58, %v248_v12  ;;  %v826_v61 = vpop.f32.mrb[31].mxu1 }
 0x3c7   :  { %v827_v1 = vadd.f32 %v826_v61, %v250_v53 }
 0x3c9   :  { %5317 = vtanh.f32 %v827_v1 }
 0x3ca   :  { %5319 = vtanh.f32 %v825_v36 }
 0x3d3   :  { %v5318_v5 = vpop.eup %5317 }
 0x3d4   :  { %v834_v11 = vsel %vm832_vm7, %v5318_v5, %v755_v6  ;;  %v5320_v39 = vpop.eup %5319  ;;  %v28_v6 = vld [vmem:[%s7195_s0 + $0x28] sm:$0xff] }
 0x3d5   :  { %901 = vmatprep.mubr.f32.mxu1 %v834_v11  ;;  %3048 = vmatmul.mubr.msk.f32.gmra.mrb[10].mxu0 %vm71_vm3, %v28_v6  ;;  %v29_v11 = vld [vmem:[%s7195_s0 + $0x30] sm:$0xff] }
 0x3d6   :  { %902 = vmatmul.mubr.f32.vlgmr.msra.gmra.mrb[32].mxu1 %v5320_v39  ;;  %263 = vmatprep.mubr.f32.mxu0 %v7214_v56 }
 0x3d7   :  { %3442 = vmatpush1.bf16.msra.mxu1 %v5530_v22 }
 0x3d8   :  { %3444 = vmatprep.subr.bf16.mxu1 %v5535_v23 }
 0x3d9   :  { %3049 = vmatmul.mubr.msk.f32.gmra.mrb[12].mxu0 %vm71_vm3, %v29_v11 }
 0x3da   :  { %269 = vmatprep.mubr.f32.mxu0 %v7214_v56 }
 0x3db   :  { %3446 = vmatpush1.bf16.msra.mxu1 %v5552_v28 }
 0x3dc   :  { %3448 = vmatprep.subr.bf16.mxu1 %v5559_v30 }
 0x3df   :  { %3450 = vmatpush1.bf16.msra.mxu1 %v5575_v35 }
 0x3e0   :  { %3452 = vmatprep.subr.bf16.mxu1 %v5582_v37 }
 0x3e3   :  { %3454 = vmatpush1.bf16.msra.mxu1 %v5598_v42 }
 0x3e4   :  { %3456 = vmatprep.subr.bf16.mxu1 %v5605_v44 }
 0x3e7   :  { %3458 = vmatpush1.bf16.msra.mxu1 %v5621_v49 }
 0x3e8   :  { %3460 = vmatprep.subr.bf16.mxu1 %v5628_v51 }
 0x3eb   :  { %3462 = vmatpush1.bf16.msra.mxu1 %v5647_v57 }
 0x3ec   :  { %3464 = vmatprep.subr.bf16.mxu1 %v5654_v59 }
 0x3ef   :  { %3466 = vmatpush1.bf16.msra.mxu1 %v5674_v0 }
 0x3f0   :  { %3468 = vmatprep.subr.bf16.mxu1 %v5681_v2 }
 0x3f3   :  { %3470 = vmatpush1.bf16.msra.mxu1 %v5699_v8 }
 0x3f4   :  { %3472 = vmatprep.subr.bf16.mxu1 %v5706_v10 }
 0x3f7   :  { %3474 = vmatpush1.bf16.msra.mxu1 %v5724_v15 }
 0x3f8   :  { %3476 = vmatprep.subr.bf16.mxu1 %v5731_v18 }
 0x3fb   :  { %3478 = vmatpush1.bf16.msra.mxu1 %v5749_v25 }
 0x3fc   :  { %3480 = vmatprep.subr.bf16.mxu1 %v5756_v27 }
 0x3ff   :  { %3482 = vmatpush1.bf16.msra.mxu1 %v5774_v34 }
 0x400   :  { %3484 = vmatprep.subr.bf16.mxu1 %v5781_v38 }
 0x403   :  { %3486 = vmatpush1.bf16.msra.mxu1 %v5799_v45 }
 0x404   :  { %3488 = vmatprep.subr.bf16.mxu1 %v5806_v47 }
 0x407   :  { %3490 = vmatpush1.bf16.msra.mxu1 %v5824_v54 }
 0x408   :  { %3492 = vmatprep.subr.bf16.mxu1 %v5828_v55 }
 0x40b   :  { %3494 = vmatpush1.bf16.msra.mxu1 %v5845_v62 }
 0x40c   :  { %3496 = vmatprep.subr.bf16.mxu1 %v5848_v63 }
 0x40f   :  { %3498 = vmatpush1.bf16.msra.mxu1 %v5865_v7 }
 0x410   :  { %3500 = vmatprep.subr.bf16.mxu1 %v5868_v9 }
 0x413   :  { %3502 = vmatpush1.bf16.msra.mxu1 %v5879_v13 }
 0x414   :  { %3504 = vmatprep.subr.bf16.mxu1 %v5509_v16 }
 0x4a8   :  { %v259_v1 = vpop.f32.mrb[10].mxu0 }
 0x4a9   :  { %v903_v4 = vpop.f32.mrb[32].mxu1  ;;  %v261_v5 = vpop.f32.mrb[11].mxu0  ;;  %v260_v39 = vadd.f32 %v259_v1, %v5992_v14 }
 0x4aa   :  { %v904_v12 = vadd.f32 %v903_v4, %v254_v48  ;;  %v905_v53 = vpop.f32.mrb[33].mxu1  ;;  %v262_v50 = vadd.f32 %v261_v5, %v6077_v60 }
 0x4ab   :  { %v906_v58 = vadd.f32 %v905_v53, %v256_v52 }
 0x4ac   :  { %v265_v53 = vpop.f32.mrb[12].mxu0 }
 0x4ad   :  { %5321 = vtanh.f32 %v906_v58  ;;  %v267_v58 = vpop.f32.mrb[13].mxu0 }
 0x4ae   :  { %5323 = vtanh.f32 %v904_v12  ;;  %v268_v1 = vadd.f32 %v267_v58, %v6077_v60 }
 0x4b7   :  { %v5322_v36 = vpop.eup %5321 }
 0x4b8   :  { %v5324_v61 = vpop.eup %5323  ;;  %976 = vmatprep.mubr.f32.mxu1 %v5322_v36  ;;  %v30_v36 = vld [vmem:[%s7195_s0 + $0x38] sm:$0xff] }
 0x4b9   :  { %977 = vmatmul.mubr.f32.vlgmr.msra.gmra.mrb[34].mxu1 %v5324_v61  ;;  %3050 = vmatmul.mubr.msk.f32.gmra.mrb[14].mxu0 %vm71_vm3, %v30_v36  ;;  %v266_v61 = vadd.f32 %v265_v53, %v5992_v14 }
 0x4ba   :  { %3506 = vmatpush1.bf16.msra.mxu1 %v5530_v22  ;;  %275 = vmatprep.mubr.f32.mxu0 %v7214_v56 }
 0x4bb   :  { %3508 = vmatprep.subr.bf16.mxu1 %v5535_v23 }
 0x4be   :  { %3510 = vmatpush1.bf16.msra.mxu1 %v5552_v28 }
 0x4bf   :  { %3512 = vmatprep.subr.bf16.mxu1 %v5559_v30 }
 0x4c2   :  { %3514 = vmatpush1.bf16.msra.mxu1 %v5575_v35 }
 0x4c3   :  { %3516 = vmatprep.subr.bf16.mxu1 %v5582_v37 }
 0x4c6   :  { %3518 = vmatpush1.bf16.msra.mxu1 %v5598_v42 }
 0x4c7   :  { %3520 = vmatprep.subr.bf16.mxu1 %v5605_v44 }
 0x4ca   :  { %3522 = vmatpush1.bf16.msra.mxu1 %v5621_v49 }
 0x4cb   :  { %3524 = vmatprep.subr.bf16.mxu1 %v5628_v51 }
 0x4ce   :  { %3526 = vmatpush1.bf16.msra.mxu1 %v5647_v57 }
 0x4cf   :  { %3528 = vmatprep.subr.bf16.mxu1 %v5654_v59 }
 0x4d2   :  { %3530 = vmatpush1.bf16.msra.mxu1 %v5674_v0 }
 0x4d3   :  { %3532 = vmatprep.subr.bf16.mxu1 %v5681_v2 }
 0x4d6   :  { %3534 = vmatpush1.bf16.msra.mxu1 %v5699_v8 }
 0x4d7   :  { %3536 = vmatprep.subr.bf16.mxu1 %v5706_v10 }
 0x4da   :  { %3538 = vmatpush1.bf16.msra.mxu1 %v5724_v15 }
 0x4db   :  { %3540 = vmatprep.subr.bf16.mxu1 %v5731_v18 }
 0x4de   :  { %3542 = vmatpush1.bf16.msra.mxu1 %v5749_v25 }
 0x4df   :  { %3544 = vmatprep.subr.bf16.mxu1 %v5756_v27 }
 0x4e2   :  { %3546 = vmatpush1.bf16.msra.mxu1 %v5774_v34 }
 0x4e3   :  { %3548 = vmatprep.subr.bf16.mxu1 %v5781_v38 }
 0x4e6   :  { %3550 = vmatpush1.bf16.msra.mxu1 %v5799_v45 }
 0x4e7   :  { %3552 = vmatprep.subr.bf16.mxu1 %v5806_v47 }
 0x4ea   :  { %3554 = vmatpush1.bf16.msra.mxu1 %v5824_v54 }
 0x4eb   :  { %3556 = vmatprep.subr.bf16.mxu1 %v5828_v55 }
 0x4ee   :  { %3558 = vmatpush1.bf16.msra.mxu1 %v5845_v62 }
 0x4ef   :  { %3560 = vmatprep.subr.bf16.mxu1 %v5848_v63 }
 0x4f2   :  { %3562 = vmatpush1.bf16.msra.mxu1 %v5865_v7 }
 0x4f3   :  { %3564 = vmatprep.subr.bf16.mxu1 %v5868_v9 }
 0x4f6   :  { %3566 = vmatpush1.bf16.msra.mxu1 %v5879_v13 }
 0x4f7   :  { %3568 = vmatprep.subr.bf16.mxu1 %v5509_v16 }
 0x58c   :  { %v978_v3 = vpop.f32.mrb[34].mxu1 }
 0x58d   :  { %v979_v6 = vadd.f32 %v978_v3, %v260_v39  ;;  %v980_v48 = vpop.f32.mrb[35].mxu1 }
 0x58e   :  { %v981_v52 = vadd.f32 %v980_v48, %v262_v50  ;;  %v271_v48 = vpop.f32.mrb[14].mxu0 }
 0x590   :  { %5325 = vtanh.f32 %v981_v52  ;;  %v273_v52 = vpop.f32.mrb[15].mxu0 }
 0x591   :  { %5327 = vtanh.f32 %v979_v6  ;;  %v274_v53 = vadd.f32 %v273_v52, %v6077_v60 }
 0x59a   :  { %v5326_v4 = vpop.eup %5325 }
 0x59b   :  { %v5328_v12 = vpop.eup %5327  ;;  %1051 = vmatprep.mubr.f32.mxu1 %v5326_v4  ;;  %v31_v4 = vld [vmem:[%s7195_s0 + $0x40] sm:$0xff] }
 0x59c   :  { %1052 = vmatmul.mubr.f32.vlgmr.msra.gmra.mrb[36].mxu1 %v5328_v12  ;;  %3051 = vmatmul.mubr.msk.f32.gmra.mrb[16].mxu0 %vm71_vm3, %v31_v4  ;;  %v272_v12 = vadd.f32 %v271_v48, %v5992_v14 }
 0x59d   :  { %3570 = vmatpush1.bf16.msra.mxu1 %v5530_v22  ;;  %281 = vmatprep.mubr.f32.mxu0 %v7214_v56 }
 0x59e   :  { %3572 = vmatprep.subr.bf16.mxu1 %v5535_v23 }
 0x5a1   :  { %3574 = vmatpush1.bf16.msra.mxu1 %v5552_v28 }
 0x5a2   :  { %3576 = vmatprep.subr.bf16.mxu1 %v5559_v30 }
 0x5a5   :  { %3578 = vmatpush1.bf16.msra.mxu1 %v5575_v35 }
 0x5a6   :  { %3580 = vmatprep.subr.bf16.mxu1 %v5582_v37 }
 0x5a9   :  { %3582 = vmatpush1.bf16.msra.mxu1 %v5598_v42 }
 0x5aa   :  { %3584 = vmatprep.subr.bf16.mxu1 %v5605_v44 }
 0x5ad   :  { %3586 = vmatpush1.bf16.msra.mxu1 %v5621_v49 }
 0x5ae   :  { %3588 = vmatprep.subr.bf16.mxu1 %v5628_v51 }
 0x5b1   :  { %3590 = vmatpush1.bf16.msra.mxu1 %v5647_v57 }
 0x5b2   :  { %3592 = vmatprep.subr.bf16.mxu1 %v5654_v59 }
 0x5b5   :  { %3594 = vmatpush1.bf16.msra.mxu1 %v5674_v0 }
 0x5b6   :  { %3596 = vmatprep.subr.bf16.mxu1 %v5681_v2 }
 0x5b9   :  { %3598 = vmatpush1.bf16.msra.mxu1 %v5699_v8 }
 0x5ba   :  { %3600 = vmatprep.subr.bf16.mxu1 %v5706_v10 }
 0x5bd   :  { %3602 = vmatpush1.bf16.msra.mxu1 %v5724_v15 }
 0x5be   :  { %3604 = vmatprep.subr.bf16.mxu1 %v5731_v18 }
 0x5c1   :  { %3606 = vmatpush1.bf16.msra.mxu1 %v5749_v25 }
 0x5c2   :  { %3608 = vmatprep.subr.bf16.mxu1 %v5756_v27 }
 0x5c5   :  { %3610 = vmatpush1.bf16.msra.mxu1 %v5774_v34 }
 0x5c6   :  { %3612 = vmatprep.subr.bf16.mxu1 %v5781_v38 }
 0x5c9   :  { %3614 = vmatpush1.bf16.msra.mxu1 %v5799_v45 }
 0x5ca   :  { %3616 = vmatprep.subr.bf16.mxu1 %v5806_v47 }
 0x5cd   :  { %3618 = vmatpush1.bf16.msra.mxu1 %v5824_v54 }
 0x5ce   :  { %3620 = vmatprep.subr.bf16.mxu1 %v5828_v55 }
 0x5d1   :  { %3622 = vmatpush1.bf16.msra.mxu1 %v5845_v62 }
 0x5d2   :  { %3624 = vmatprep.subr.bf16.mxu1 %v5848_v63 }
 0x5d5   :  { %3626 = vmatpush1.bf16.msra.mxu1 %v5865_v7 }
 0x5d6   :  { %3628 = vmatprep.subr.bf16.mxu1 %v5868_v9 }
 0x5d9   :  { %3630 = vmatpush1.bf16.msra.mxu1 %v5879_v13 }
 0x5da   :  { %3632 = vmatprep.subr.bf16.mxu1 %v5509_v16 }
 0x66f   :  { %v1053_v5 = vpop.f32.mrb[36].mxu1 }
 0x670   :  { %v1054_v11 = vadd.f32 %v1053_v5, %v266_v61  ;;  %v1055_v39 = vpop.f32.mrb[37].mxu1 }
 0x671   :  { %v1056_v50 = vadd.f32 %v1055_v39, %v268_v1  ;;  %v277_v39 = vpop.f32.mrb[16].mxu0 }
 0x673   :  { %5329 = vtanh.f32 %v1056_v50  ;;  %v279_v50 = vpop.f32.mrb[17].mxu0 }
 0x674   :  { %5331 = vtanh.f32 %v1054_v11  ;;  %v280_v48 = vadd.f32 %v279_v50, %v6077_v60 }
 0x67d   :  { %v5330_v3 = vpop.eup %5329 }
 0x67e   :  { %v5332_v6 = vpop.eup %5331  ;;  %1126 = vmatprep.mubr.f32.mxu1 %v5330_v3  ;;  %v32_v3 = vld [vmem:[%s7195_s0 + $0x48] sm:$0xff] }
 0x67f   :  { %1127 = vmatmul.mubr.f32.vlgmr.msra.gmra.mrb[38].mxu1 %v5332_v6  ;;  %3052 = vmatmul.mubr.msk.f32.gmra.mrb[18].mxu0 %vm71_vm3, %v32_v3  ;;  %v278_v6 = vadd.f32 %v277_v39, %v5992_v14  ;;  %v35_v39 = vld [vmem:[%s7195_s0 + $0x60] sm:$0xff] }
 0x680   :  { %3634 = vmatpush1.bf16.msra.mxu1 %v5530_v22  ;;  %287 = vmatprep.mubr.f32.mxu0 %v7214_v56 }
 0x681   :  { %3636 = vmatprep.subr.bf16.mxu1 %v5535_v23 }
 0x684   :  { %3638 = vmatpush1.bf16.msra.mxu1 %v5552_v28 }
 0x685   :  { %3640 = vmatprep.subr.bf16.mxu1 %v5559_v30 }
 0x688   :  { %3642 = vmatpush1.bf16.msra.mxu1 %v5575_v35 }
 0x689   :  { %3644 = vmatprep.subr.bf16.mxu1 %v5582_v37 }
 0x68c   :  { %3646 = vmatpush1.bf16.msra.mxu1 %v5598_v42 }
 0x68d   :  { %3648 = vmatprep.subr.bf16.mxu1 %v5605_v44 }
 0x690   :  { %3650 = vmatpush1.bf16.msra.mxu1 %v5621_v49 }
 0x691   :  { %3652 = vmatprep.subr.bf16.mxu1 %v5628_v51 }
 0x694   :  { %3654 = vmatpush1.bf16.msra.mxu1 %v5647_v57 }
 0x695   :  { %3656 = vmatprep.subr.bf16.mxu1 %v5654_v59 }
 0x698   :  { %3658 = vmatpush1.bf16.msra.mxu1 %v5674_v0 }
 0x699   :  { %3660 = vmatprep.subr.bf16.mxu1 %v5681_v2 }
 0x69c   :  { %3662 = vmatpush1.bf16.msra.mxu1 %v5699_v8 }
 0x69d   :  { %3664 = vmatprep.subr.bf16.mxu1 %v5706_v10 }
 0x6a0   :  { %3666 = vmatpush1.bf16.msra.mxu1 %v5724_v15 }
 0x6a1   :  { %3668 = vmatprep.subr.bf16.mxu1 %v5731_v18 }
 0x6a4   :  { %3670 = vmatpush1.bf16.msra.mxu1 %v5749_v25 }
 0x6a5   :  { %3672 = vmatprep.subr.bf16.mxu1 %v5756_v27 }
 0x6a8   :  { %3674 = vmatpush1.bf16.msra.mxu1 %v5774_v34 }
 0x6a9   :  { %3676 = vmatprep.subr.bf16.mxu1 %v5781_v38 }
 0x6ac   :  { %3678 = vmatpush1.bf16.msra.mxu1 %v5799_v45 }
 0x6ad   :  { %3680 = vmatprep.subr.bf16.mxu1 %v5806_v47 }
 0x6b0   :  { %3682 = vmatpush1.bf16.msra.mxu1 %v5824_v54 }
 0x6b1   :  { %3684 = vmatprep.subr.bf16.mxu1 %v5828_v55 }
 0x6b4   :  { %3686 = vmatpush1.bf16.msra.mxu1 %v5845_v62 }
 0x6b5   :  { %3688 = vmatprep.subr.bf16.mxu1 %v5848_v63 }
 0x6b8   :  { %3690 = vmatpush1.bf16.msra.mxu1 %v5865_v7 }
 0x6b9   :  { %3692 = vmatprep.subr.bf16.mxu1 %v5868_v9 }
 0x6bc   :  { %3694 = vmatpush1.bf16.msra.mxu1 %v5879_v13 }
 0x6bd   :  { %3696 = vmatprep.subr.bf16.mxu1 %v5509_v16 }
 0x752   :  { %v1128_v58 = vpop.f32.mrb[38].mxu1 }
 0x753   :  { %v1129_v36 = vadd.f32 %v1128_v58, %v272_v12  ;;  %v1130_v61 = vpop.f32.mrb[39].mxu1 }
 0x754   :  { %v1131_v1 = vadd.f32 %v1130_v61, %v274_v53  ;;  %v283_v61 = vpop.f32.mrb[18].mxu0 }
 0x755   :  { %v284_v50 = vadd.f32 %v283_v61, %v5992_v14  ;;  %v36_v61 = vld [vmem:[%s7195_s0 + $0x68] sm:$0xff] }
 0x756   :  { %5333 = vtanh.f32 %v1131_v1  ;;  %v285_v1 = vpop.f32.mrb[19].mxu0 }
 0x757   :  { %5335 = vtanh.f32 %v1129_v36  ;;  %v286_v3 = vadd.f32 %v285_v1, %v6077_v60  ;;  %v37_v1 = vld [vmem:[%s7195_s0 + $0x70] sm:$0xff] }
 0x760   :  { %v5334_v5 = vpop.eup %5333 }
 0x761   :  { %v5336_v11 = vpop.eup %5335  ;;  %1201 = vmatprep.mubr.f32.mxu1 %v5334_v5  ;;  %v33_v5 = vld [vmem:[%s7195_s0 + $0x50] sm:$0xff] }
 0x762   :  { %1202 = vmatmul.mubr.f32.vlgmr.msra.gmra.mrb[40].mxu1 %v5336_v11  ;;  %3053 = vmatmul.mubr.msk.f32.gmra.mrb[20].mxu0 %vm71_vm3, %v33_v5  ;;  %v34_v11 = vld [vmem:[%s7195_s0 + $0x58] sm:$0xff] }
 0x763   :  { %3698 = vmatpush1.bf16.msra.mxu1 %v5530_v22  ;;  %293 = vmatprep.mubr.f32.mxu0 %v7214_v56  ;;  %v38_v5 = vld [vmem:[%s7195_s0 + $0x78] sm:$0xff] }
 0x764   :  { %3700 = vmatprep.subr.bf16.mxu1 %v5535_v23 }
 0x766   :  { %3054 = vmatmul.mubr.msk.f32.gmra.mrb[22].mxu0 %vm71_vm3, %v34_v11 }
 0x767   :  { %3702 = vmatpush1.bf16.msra.mxu1 %v5552_v28  ;;  %299 = vmatprep.mubr.f32.mxu0 %v7214_v56 }
 0x768   :  { %3704 = vmatprep.subr.bf16.mxu1 %v5559_v30 }
 0x76a   :  { %3055 = vmatmul.mubr.msk.f32.gmra.mrb[24].mxu0 %vm71_vm3, %v35_v39 }
 0x76b   :  { %3706 = vmatpush1.bf16.msra.mxu1 %v5575_v35  ;;  %305 = vmatprep.mubr.f32.mxu0 %v7214_v56 }
 0x76c   :  { %3708 = vmatprep.subr.bf16.mxu1 %v5582_v37 }
 0x76e   :  { %3056 = vmatmul.mubr.msk.f32.gmra.mrb[26].mxu0 %vm71_vm3, %v36_v61 }
 0x76f   :  { %3710 = vmatpush1.bf16.msra.mxu1 %v5598_v42  ;;  %311 = vmatprep.mubr.f32.mxu0 %v7214_v56 }
 0x770   :  { %3712 = vmatprep.subr.bf16.mxu1 %v5605_v44 }
 0x772   :  { %3057 = vmatmul.mubr.msk.f32.gmra.mrb[28].mxu0 %vm71_vm3, %v37_v1 }
 0x773   :  { %3714 = vmatpush1.bf16.msra.mxu1 %v5621_v49  ;;  %317 = vmatprep.mubr.f32.mxu0 %v7214_v56 }
 0x774   :  { %3716 = vmatprep.subr.bf16.mxu1 %v5628_v51 }
 0x776   :  { %3058 = vmatmul.mubr.msk.f32.gmra.mrb[30].mxu0 %vm71_vm3, %v38_v5 }
 0x777   :  { %3718 = vmatpush1.bf16.msra.mxu1 %v5647_v57 }
 0x778   :  { %3720 = vmatprep.subr.bf16.mxu1 %v5654_v59 }
 0x77b   :  { %3722 = vmatpush1.bf16.msra.mxu1 %v5674_v0 }
 0x77c   :  { %3724 = vmatprep.subr.bf16.mxu1 %v5681_v2 }
 0x77f   :  { %3726 = vmatpush1.bf16.msra.mxu1 %v5699_v8 }
 0x780   :  { %3728 = vmatprep.subr.bf16.mxu1 %v5706_v10 }
 0x783   :  { %3730 = vmatpush1.bf16.msra.mxu1 %v5724_v15 }
 0x784   :  { %3732 = vmatprep.subr.bf16.mxu1 %v5731_v18 }
 0x787   :  { %3734 = vmatpush1.bf16.msra.mxu1 %v5749_v25 }
 0x788   :  { %3736 = vmatprep.subr.bf16.mxu1 %v5756_v27 }
 0x78b   :  { %3738 = vmatpush1.bf16.msra.mxu1 %v5774_v34 }
 0x78c   :  { %3740 = vmatprep.subr.bf16.mxu1 %v5781_v38 }
 0x78f   :  { %3742 = vmatpush1.bf16.msra.mxu1 %v5799_v45 }
 0x790   :  { %3744 = vmatprep.subr.bf16.mxu1 %v5806_v47 }
 0x793   :  { %3746 = vmatpush1.bf16.msra.mxu1 %v5824_v54 }
 0x794   :  { %3748 = vmatprep.subr.bf16.mxu1 %v5828_v55 }
 0x797   :  { %3750 = vmatpush1.bf16.msra.mxu1 %v5845_v62 }
 0x798   :  { %3752 = vmatprep.subr.bf16.mxu1 %v5848_v63 }
 0x79b   :  { %3754 = vmatpush1.bf16.msra.mxu1 %v5865_v7 }
 0x79c   :  { %3756 = vmatprep.subr.bf16.mxu1 %v5868_v9 }
 0x79f   :  { %3758 = vmatpush1.bf16.msra.mxu1 %v5879_v13 }
 0x7a0   :  { %3760 = vmatprep.subr.bf16.mxu1 %v5509_v16 }
 0x835   :  { %v1203_v52 = vpop.f32.mrb[40].mxu1 }
 0x836   :  { %v1204_v4 = vadd.f32 %v1203_v52, %v278_v6  ;;  %v1205_v12 = vpop.f32.mrb[41].mxu1 }
 0x837   :  { %v1206_v53 = vadd.f32 %v1205_v12, %v280_v48 }
 0x839   :  { %5337 = vtanh.f32 %v1206_v53 }
 0x83a   :  { %5339 = vtanh.f32 %v1204_v4 }
 0x843   :  { %v5338_v58 = vpop.eup %5337 }
 0x844   :  { %v5340_v36 = vpop.eup %5339  ;;  %1276 = vmatprep.mubr.f32.mxu1 %v5338_v58  ;;  %v289_v58 = vpop.f32.mrb[20].mxu0 }
 0x845   :  { %1277 = vmatmul.mubr.f32.vlgmr.msra.gmra.mrb[42].mxu1 %v5340_v36  ;;  %v291_v36 = vpop.f32.mrb[21].mxu0  ;;  %v290_v11 = vadd.f32 %v289_v58, %v5992_v14 }
 0x846   :  { %3762 = vmatpush1.bf16.msra.mxu1 %v5530_v22  ;;  %v292_v39 = vadd.f32 %v291_v36, %v6077_v60 }
 0x847   :  { %3764 = vmatprep.subr.bf16.mxu1 %v5535_v23 }
 0x84a   :  { %3766 = vmatpush1.bf16.msra.mxu1 %v5552_v28 }
 0x84b   :  { %3768 = vmatprep.subr.bf16.mxu1 %v5559_v30 }
 0x84e   :  { %3770 = vmatpush1.bf16.msra.mxu1 %v5575_v35 }
 0x84f   :  { %3772 = vmatprep.subr.bf16.mxu1 %v5582_v37 }
 0x852   :  { %3774 = vmatpush1.bf16.msra.mxu1 %v5598_v42 }
 0x853   :  { %3776 = vmatprep.subr.bf16.mxu1 %v5605_v44 }
 0x856   :  { %3778 = vmatpush1.bf16.msra.mxu1 %v5621_v49 }
 0x857   :  { %3780 = vmatprep.subr.bf16.mxu1 %v5628_v51 }
 0x85a   :  { %3782 = vmatpush1.bf16.msra.mxu1 %v5647_v57 }
 0x85b   :  { %3784 = vmatprep.subr.bf16.mxu1 %v5654_v59 }
 0x85e   :  { %3786 = vmatpush1.bf16.msra.mxu1 %v5674_v0 }
 0x85f   :  { %3788 = vmatprep.subr.bf16.mxu1 %v5681_v2 }
 0x862   :  { %3790 = vmatpush1.bf16.msra.mxu1 %v5699_v8 }
 0x863   :  { %3792 = vmatprep.subr.bf16.mxu1 %v5706_v10 }
 0x866   :  { %3794 = vmatpush1.bf16.msra.mxu1 %v5724_v15 }
 0x867   :  { %3796 = vmatprep.subr.bf16.mxu1 %v5731_v18 }
 0x86a   :  { %3798 = vmatpush1.bf16.msra.mxu1 %v5749_v25 }
 0x86b   :  { %3800 = vmatprep.subr.bf16.mxu1 %v5756_v27 }
 0x86e   :  { %3802 = vmatpush1.bf16.msra.mxu1 %v5774_v34 }
 0x86f   :  { %3804 = vmatprep.subr.bf16.mxu1 %v5781_v38 }
 0x872   :  { %3806 = vmatpush1.bf16.msra.mxu1 %v5799_v45 }
 0x873   :  { %3808 = vmatprep.subr.bf16.mxu1 %v5806_v47 }
 0x876   :  { %3810 = vmatpush1.bf16.msra.mxu1 %v5824_v54 }
 0x877   :  { %3812 = vmatprep.subr.bf16.mxu1 %v5828_v55 }
 0x87a   :  { %3814 = vmatpush1.bf16.msra.mxu1 %v5845_v62 }
 0x87b   :  { %3816 = vmatprep.subr.bf16.mxu1 %v5848_v63 }
 0x87e   :  { %3818 = vmatpush1.bf16.msra.mxu1 %v5865_v7 }
 0x87f   :  { %3820 = vmatprep.subr.bf16.mxu1 %v5868_v9 }
 0x882   :  { %3822 = vmatpush1.bf16.msra.mxu1 %v5879_v13 }
 0x883   :  { %4848 = vmatprep.subr.bf16.mxu1 %v5509_v16 }
 0x918   :  { %v1278_v6 = vpop.f32.mrb[42].mxu1 }
 0x919   :  { %v1279_v48 = vadd.f32 %v1278_v6, %v284_v50  ;;  %v1280_v52 = vpop.f32.mrb[43].mxu1 }
 0x91a   :  { %v1281_v4 = vadd.f32 %v1280_v52, %v286_v3 }
 0x91c   :  { %5341 = vtanh.f32 %v1281_v4 }
 0x91d   :  { %5343 = vtanh.f32 %v1279_v48 }
 0x926   :  { %v5342_v12 = vpop.eup %5341 }
 0x927   :  { %v5344_v53 = vpop.eup %5343  ;;  %1351 = vmatprep.mubr.f32.mxu1 %v5342_v12 }
 0x928   :  { %1352 = vmatmul.mubr.f32.vlgmr.msra.gmra.mrb[44].mxu1 %v5344_v53 }
 0x929   :  { %4850 = vmatpush1.bf16.msra.mxu1 %v5530_v22 }
 0x92a   :  { %4852 = vmatprep.subr.bf16.mxu1 %v5535_v23 }
 0x92d   :  { %4854 = vmatpush1.bf16.msra.mxu1 %v5552_v28 }
 0x92e   :  { %4856 = vmatprep.subr.bf16.mxu1 %v5559_v30 }
 0x931   :  { %4858 = vmatpush1.bf16.msra.mxu1 %v5575_v35 }
 0x932   :  { %4860 = vmatprep.subr.bf16.mxu1 %v5582_v37 }
 0x935   :  { %4862 = vmatpush1.bf16.msra.mxu1 %v5598_v42 }
 0x936   :  { %4864 = vmatprep.subr.bf16.mxu1 %v5605_v44 }
 0x939   :  { %4866 = vmatpush1.bf16.msra.mxu1 %v5621_v49 }
 0x93a   :  { %4868 = vmatprep.subr.bf16.mxu1 %v5628_v51 }
 0x93d   :  { %4870 = vmatpush1.bf16.msra.mxu1 %v5647_v57 }
 0x93e   :  { %4872 = vmatprep.subr.bf16.mxu1 %v5654_v59 }
 0x941   :  { %4874 = vmatpush1.bf16.msra.mxu1 %v5674_v0 }
 0x942   :  { %4876 = vmatprep.subr.bf16.mxu1 %v5681_v2 }
 0x945   :  { %4878 = vmatpush1.bf16.msra.mxu1 %v5699_v8 }
 0x946   :  { %4880 = vmatprep.subr.bf16.mxu1 %v5706_v10 }
 0x949   :  { %4882 = vmatpush1.bf16.msra.mxu1 %v5724_v15 }
 0x94a   :  { %4884 = vmatprep.subr.bf16.mxu1 %v5731_v18 }
 0x94d   :  { %4886 = vmatpush1.bf16.msra.mxu1 %v5749_v25 }
 0x94e   :  { %4888 = vmatprep.subr.bf16.mxu1 %v5756_v27 }
 0x951   :  { %4890 = vmatpush1.bf16.msra.mxu1 %v5774_v34 }
 0x952   :  { %4892 = vmatprep.subr.bf16.mxu1 %v5781_v38 }
 0x955   :  { %4894 = vmatpush1.bf16.msra.mxu1 %v5799_v45 }
 0x956   :  { %4896 = vmatprep.subr.bf16.mxu1 %v5806_v47 }
 0x959   :  { %4898 = vmatpush1.bf16.msra.mxu1 %v5824_v54 }
 0x95a   :  { %4900 = vmatprep.subr.bf16.mxu1 %v5828_v55 }
 0x95d   :  { %4902 = vmatpush1.bf16.msra.mxu1 %v5845_v62 }
 0x95e   :  { %4904 = vmatprep.subr.bf16.mxu1 %v5848_v63 }
 0x961   :  { %4906 = vmatpush1.bf16.msra.mxu1 %v5865_v7 }
 0x962   :  { %4908 = vmatprep.subr.bf16.mxu1 %v5868_v9 }
 0x965   :  { %4910 = vmatpush1.bf16.msra.mxu1 %v5879_v13 }
 0x966   :  { %4912 = vmatprep.subr.bf16.mxu1 %v5509_v16 }
 0x9fb   :  { %v1353_v50 = vpop.f32.mrb[44].mxu1 }
 0x9fc   :  { %v1354_v3 = vadd.f32 %v1353_v50, %v290_v11  ;;  %v1355_v6 = vpop.f32.mrb[45].mxu1 }
 0x9fd   :  { %v1356_v48 = vadd.f32 %v1355_v6, %v292_v39 }
 0x9ff   :  { %5345 = vtanh.f32 %v1356_v48 }
 0xa00   :  { %5347 = vtanh.f32 %v1354_v3 }
 0xa09   :  { %v5346_v52 = vpop.eup %5345 }
 0xa0a   :  { %v5348_v4 = vpop.eup %5347  ;;  %1426 = vmatprep.mubr.f32.mxu0 %v5346_v52 }
 0xa0b   :  { %1427 = vmatmul.mubr.f32.vlgmr.msra.gmra.mrb[22].mxu0 %v5348_v4 }
 0xa0c   :  { %3890 = vmatpush1.bf16.msra.mxu0 %v5530_v22 }
 0xa0d   :  { %3892 = vmatprep.subr.bf16.mxu0 %v5535_v23 }
 0xa10   :  { %3894 = vmatpush1.bf16.msra.mxu0 %v5552_v28 }
 0xa11   :  { %3896 = vmatprep.subr.bf16.mxu0 %v5559_v30 }
 0xa14   :  { %3898 = vmatpush1.bf16.msra.mxu0 %v5575_v35 }
 0xa15   :  { %3900 = vmatprep.subr.bf16.mxu0 %v5582_v37 }
 0xa18   :  { %3902 = vmatpush1.bf16.msra.mxu0 %v5598_v42 }
 0xa19   :  { %3904 = vmatprep.subr.bf16.mxu0 %v5605_v44 }
 0xa1c   :  { %3906 = vmatpush1.bf16.msra.mxu0 %v5621_v49 }
 0xa1d   :  { %3908 = vmatprep.subr.bf16.mxu0 %v5628_v51 }
 0xa20   :  { %3910 = vmatpush1.bf16.msra.mxu0 %v5647_v57 }
 0xa21   :  { %3912 = vmatprep.subr.bf16.mxu0 %v5654_v59 }
 0xa24   :  { %3914 = vmatpush1.bf16.msra.mxu0 %v5674_v0 }
 0xa25   :  { %3916 = vmatprep.subr.bf16.mxu0 %v5681_v2 }
 0xa28   :  { %3918 = vmatpush1.bf16.msra.mxu0 %v5699_v8 }
 0xa29   :  { %3920 = vmatprep.subr.bf16.mxu0 %v5706_v10 }
 0xa2c   :  { %3922 = vmatpush1.bf16.msra.mxu0 %v5724_v15 }
 0xa2d   :  { %3924 = vmatprep.subr.bf16.mxu0 %v5731_v18 }
 0xa30   :  { %3926 = vmatpush1.bf16.msra.mxu0 %v5749_v25 }
 0xa31   :  { %3928 = vmatprep.subr.bf16.mxu0 %v5756_v27 }
 0xa34   :  { %3930 = vmatpush1.bf16.msra.mxu0 %v5774_v34 }
 0xa35   :  { %3932 = vmatprep.subr.bf16.mxu0 %v5781_v38 }
 0xa38   :  { %3934 = vmatpush1.bf16.msra.mxu0 %v5799_v45 }
 0xa39   :  { %3936 = vmatprep.subr.bf16.mxu0 %v5806_v47 }
 0xa3c   :  { %3938 = vmatpush1.bf16.msra.mxu0 %v5824_v54 }
 0xa3d   :  { %3940 = vmatprep.subr.bf16.mxu0 %v5828_v55 }
 0xa40   :  { %3942 = vmatpush1.bf16.msra.mxu0 %v5845_v62 }
 0xa41   :  { %3944 = vmatprep.subr.bf16.mxu0 %v5848_v63 }
 0xa44   :  { %3946 = vmatpush1.bf16.msra.mxu0 %v5865_v7 }
 0xa45   :  { %3948 = vmatprep.subr.bf16.mxu0 %v5868_v9 }
 0xa48   :  { %3950 = vmatpush1.bf16.msra.mxu0 %v5879_v13 }
 0xa49   :  { %3952 = vmatprep.subr.bf16.mxu0 %v5509_v16 }
 0xade   :  { %v1428_v56 = vpop.f32.mrb[22].mxu0 }
 0xadf   :  { %v5243_v12 = vadd.f32 %v1428_v56, %v5992_v14  ;;  %v1430_v53 = vpop.f32.mrb[23].mxu0 }
 0xae0   :  { %v5244_v58 = vadd.f32 %v1430_v53, %v6077_v60 }
 0xae2   :  { %5349 = vtanh.f32 %v5244_v58 }
 0xae3   :  { %5351 = vtanh.f32 %v5243_v12 }
 0xaec   :  { %v5350_v36 = vpop.eup %5349 }
 0xaed   :  { %v5352_v61 = vpop.eup %5351  ;;  %1501 = vmatprep.mubr.f32.mxu0 %v5350_v36 }
 0xaee   :  { %1502 = vmatmul.mubr.f32.vlgmr.msra.gmra.mrb[24].mxu0 %v5352_v61 }
 0xaef   :  { %3954 = vmatpush1.bf16.msra.mxu0 %v5530_v22 }
 0xaf0   :  { %3956 = vmatprep.subr.bf16.mxu0 %v5535_v23 }
 0xaf3   :  { %3958 = vmatpush1.bf16.msra.mxu0 %v5552_v28 }
 0xaf4   :  { %3960 = vmatprep.subr.bf16.mxu0 %v5559_v30 }
 0xaf7   :  { %3962 = vmatpush1.bf16.msra.mxu0 %v5575_v35 }
 0xaf8   :  { %3964 = vmatprep.subr.bf16.mxu0 %v5582_v37 }
 0xafb   :  { %3966 = vmatpush1.bf16.msra.mxu0 %v5598_v42 }
 0xafc   :  { %3968 = vmatprep.subr.bf16.mxu0 %v5605_v44 }
 0xaff   :  { %3970 = vmatpush1.bf16.msra.mxu0 %v5621_v49 }
 0xb00   :  { %3972 = vmatprep.subr.bf16.mxu0 %v5628_v51 }
 0xb03   :  { %3974 = vmatpush1.bf16.msra.mxu0 %v5647_v57 }
 0xb04   :  { %3976 = vmatprep.subr.bf16.mxu0 %v5654_v59 }
 0xb07   :  { %3978 = vmatpush1.bf16.msra.mxu0 %v5674_v0 }
 0xb08   :  { %3980 = vmatprep.subr.bf16.mxu0 %v5681_v2 }
 0xb0b   :  { %3982 = vmatpush1.bf16.msra.mxu0 %v5699_v8 }
 0xb0c   :  { %3984 = vmatprep.subr.bf16.mxu0 %v5706_v10 }
 0xb0f   :  { %3986 = vmatpush1.bf16.msra.mxu0 %v5724_v15 }
 0xb10   :  { %3988 = vmatprep.subr.bf16.mxu0 %v5731_v18 }
 0xb13   :  { %3990 = vmatpush1.bf16.msra.mxu0 %v5749_v25 }
 0xb14   :  { %3992 = vmatprep.subr.bf16.mxu0 %v5756_v27 }
 0xb17   :  { %3994 = vmatpush1.bf16.msra.mxu0 %v5774_v34 }
 0xb18   :  { %3996 = vmatprep.subr.bf16.mxu0 %v5781_v38 }
 0xb1b   :  { %3998 = vmatpush1.bf16.msra.mxu0 %v5799_v45 }
 0xb1c   :  { %4000 = vmatprep.subr.bf16.mxu0 %v5806_v47 }
 0xb1f   :  { %4002 = vmatpush1.bf16.msra.mxu0 %v5824_v54 }
 0xb20   :  { %4004 = vmatprep.subr.bf16.mxu0 %v5828_v55 }
 0xb23   :  { %4006 = vmatpush1.bf16.msra.mxu0 %v5845_v62 }
 0xb24   :  { %4008 = vmatprep.subr.bf16.mxu0 %v5848_v63 }
 0xb27   :  { %4010 = vmatpush1.bf16.msra.mxu0 %v5865_v7 }
 0xb28   :  { %4012 = vmatprep.subr.bf16.mxu0 %v5868_v9 }
 0xb2b   :  { %4014 = vmatpush1.bf16.msra.mxu0 %v5879_v13 }
 0xb2c   :  { %4016 = vmatprep.subr.bf16.mxu0 %v5509_v16 }
 0xbc1   :  { %v1503_v1 = vpop.f32.mrb[24].mxu0 }
 0xbc2   :  { %v5245_v5 = vadd.f32 %v1503_v1, %v5992_v14  ;;  %v1505_v11 = vpop.f32.mrb[25].mxu0 }
 0xbc3   :  { %v5246_v39 = vadd.f32 %v1505_v11, %v6077_v60 }
 0xbc5   :  { %5353 = vtanh.f32 %v5246_v39 }
 0xbc6   :  { %5355 = vtanh.f32 %v5245_v5 }
 0xbcf   :  { %v5354_v50 = vpop.eup %5353 }
 0xbd0   :  { %v5356_v3 = vpop.eup %5355  ;;  %1576 = vmatprep.mubr.f32.mxu0 %v5354_v50 }
 0xbd1   :  { %1577 = vmatmul.mubr.f32.vlgmr.msra.gmra.mrb[26].mxu0 %v5356_v3 }
 0xbd2   :  { %4018 = vmatpush1.bf16.msra.mxu0 %v5530_v22 }
 0xbd3   :  { %4020 = vmatprep.subr.bf16.mxu0 %v5535_v23 }
 0xbd6   :  { %4022 = vmatpush1.bf16.msra.mxu0 %v5552_v28 }
 0xbd7   :  { %4024 = vmatprep.subr.bf16.mxu0 %v5559_v30 }
 0xbda   :  { %4026 = vmatpush1.bf16.msra.mxu0 %v5575_v35 }
 0xbdb   :  { %4028 = vmatprep.subr.bf16.mxu0 %v5582_v37 }
 0xbde   :  { %4030 = vmatpush1.bf16.msra.mxu0 %v5598_v42 }
 0xbdf   :  { %4032 = vmatprep.subr.bf16.mxu0 %v5605_v44 }
 0xbe2   :  { %4034 = vmatpush1.bf16.msra.mxu0 %v5621_v49 }
 0xbe3   :  { %4036 = vmatprep.subr.bf16.mxu0 %v5628_v51 }
 0xbe6   :  { %4038 = vmatpush1.bf16.msra.mxu0 %v5647_v57 }
 0xbe7   :  { %4040 = vmatprep.subr.bf16.mxu0 %v5654_v59 }
 0xbea   :  { %4042 = vmatpush1.bf16.msra.mxu0 %v5674_v0 }
 0xbeb   :  { %4044 = vmatprep.subr.bf16.mxu0 %v5681_v2 }
 0xbee   :  { %4046 = vmatpush1.bf16.msra.mxu0 %v5699_v8 }
 0xbef   :  { %4048 = vmatprep.subr.bf16.mxu0 %v5706_v10 }
 0xbf2   :  { %4050 = vmatpush1.bf16.msra.mxu0 %v5724_v15 }
 0xbf3   :  { %4052 = vmatprep.subr.bf16.mxu0 %v5731_v18 }
 0xbf6   :  { %4054 = vmatpush1.bf16.msra.mxu0 %v5749_v25 }
 0xbf7   :  { %4056 = vmatprep.subr.bf16.mxu0 %v5756_v27 }
 0xbfa   :  { %4058 = vmatpush1.bf16.msra.mxu0 %v5774_v34 }
 0xbfb   :  { %4060 = vmatprep.subr.bf16.mxu0 %v5781_v38 }
 0xbfe   :  { %4062 = vmatpush1.bf16.msra.mxu0 %v5799_v45 }
 0xbff   :  { %4064 = vmatprep.subr.bf16.mxu0 %v5806_v47 }
 0xc02   :  { %4066 = vmatpush1.bf16.msra.mxu0 %v5824_v54 }
 0xc03   :  { %4068 = vmatprep.subr.bf16.mxu0 %v5828_v55 }
 0xc06   :  { %4070 = vmatpush1.bf16.msra.mxu0 %v5845_v62 }
 0xc07   :  { %4072 = vmatprep.subr.bf16.mxu0 %v5848_v63 }
 0xc0a   :  { %4074 = vmatpush1.bf16.msra.mxu0 %v5865_v7 }
 0xc0b   :  { %4076 = vmatprep.subr.bf16.mxu0 %v5868_v9 }
 0xc0e   :  { %4078 = vmatpush1.bf16.msra.mxu0 %v5879_v13 }
 0xc0f   :  { %4080 = vmatprep.subr.bf16.mxu0 %v5509_v16 }
 0xca4   :  { %v1578_v6 = vpop.f32.mrb[26].mxu0 }
 0xca5   :  { %v5247_v48 = vadd.f32 %v1578_v6, %v5992_v14  ;;  %v1580_v52 = vpop.f32.mrb[27].mxu0 }
 0xca6   :  { %v5248_v4 = vadd.f32 %v1580_v52, %v6077_v60  ;;  %v326_v52 = vadd.f32 %v5935_v17, %v5992_v14  ;;  %v332_v17 = vadd.f32 %v5939_v20, %v5992_v14  ;;  %v338_v20 = vadd.f32 %v5943_v24, %v5992_v14 }
 0xca7   :  { %v344_v24 = vadd.f32 %v5947_v29, %v5992_v14  ;;  %v350_v29 = vadd.f32 %v5951_v32, %v5992_v14  ;;  %v356_v32 = vadd.f32 %v5955_v40, %v5992_v14  ;;  %v362_v40 = vadd.f32 %v5959_v43, %v5992_v14  ;;  %v7215_v43 = vld [vmem:[#allocation3_spill] sm:$0xff] }
 0xca8   :  { %5357 = vtanh.f32 %v5248_v4  ;;  %v328_v4 = vadd.f32 %v5937_v19, %v6077_v60  ;;  %v334_v19 = vadd.f32 %v5941_v21, %v6077_v60  ;;  %v340_v21 = vadd.f32 %v5945_v26, %v6077_v60 }
 0xca9   :  { %5359 = vtanh.f32 %v5247_v48  ;;  %v346_v26 = vadd.f32 %v5949_v31, %v6077_v60  ;;  %v352_v31 = vadd.f32 %v5953_v33, %v6077_v60  ;;  %v358_v33 = vadd.f32 %v5957_v41, %v6077_v60 }
 0xcaa   :  { %v364_v41 = vadd.f32 %v5961_v46, %v6077_v60  ;;  %v368_v46 = vadd.f32 %v7215_v43, %v5992_v14  ;;  %v7221_v43 = vld [vmem:[#allocation9_spill] sm:$0xff] }
 0xcb2   :  { %v5358_v56 = vpop.eup %5357 }
 0xcb3   :  { %v5360_v12 = vpop.eup %5359  ;;  %1651 = vmatprep.mubr.f32.mxu0 %v5358_v56 }
 0xcb4   :  { %1652 = vmatmul.mubr.f32.vlgmr.msra.gmra.mrb[28].mxu0 %v5360_v12 }
 0xcb5   :  { %4082 = vmatpush1.bf16.msra.mxu0 %v5530_v22 }
 0xcb6   :  { %4084 = vmatprep.subr.bf16.mxu0 %v5535_v23 }
 0xcb9   :  { %4086 = vmatpush1.bf16.msra.mxu0 %v5552_v28 }
 0xcba   :  { %4088 = vmatprep.subr.bf16.mxu0 %v5559_v30 }
 0xcbd   :  { %4090 = vmatpush1.bf16.msra.mxu0 %v5575_v35 }
 0xcbe   :  { %4092 = vmatprep.subr.bf16.mxu0 %v5582_v37 }
 0xcc1   :  { %4094 = vmatpush1.bf16.msra.mxu0 %v5598_v42 }
 0xcc2   :  { %4096 = vmatprep.subr.bf16.mxu0 %v5605_v44 }
 0xcc5   :  { %4098 = vmatpush1.bf16.msra.mxu0 %v5621_v49 }
 0xcc6   :  { %4100 = vmatprep.subr.bf16.mxu0 %v5628_v51 }
 0xcc9   :  { %4102 = vmatpush1.bf16.msra.mxu0 %v5647_v57 }
 0xcca   :  { %4104 = vmatprep.subr.bf16.mxu0 %v5654_v59 }
 0xccd   :  { %4106 = vmatpush1.bf16.msra.mxu0 %v5674_v0 }
 0xcce   :  { %4108 = vmatprep.subr.bf16.mxu0 %v5681_v2 }
 0xcd1   :  { %4110 = vmatpush1.bf16.msra.mxu0 %v5699_v8 }
 0xcd2   :  { %4112 = vmatprep.subr.bf16.mxu0 %v5706_v10 }
 0xcd5   :  { %4114 = vmatpush1.bf16.msra.mxu0 %v5724_v15 }
 0xcd6   :  { %4116 = vmatprep.subr.bf16.mxu0 %v5731_v18 }
 0xcd9   :  { %4118 = vmatpush1.bf16.msra.mxu0 %v5749_v25 }
 0xcda   :  { %4120 = vmatprep.subr.bf16.mxu0 %v5756_v27 }
 0xcdd   :  { %4122 = vmatpush1.bf16.msra.mxu0 %v5774_v34 }
 0xcde   :  { %4124 = vmatprep.subr.bf16.mxu0 %v5781_v38 }
 0xce1   :  { %4126 = vmatpush1.bf16.msra.mxu0 %v5799_v45 }
 0xce2   :  { %4128 = vmatprep.subr.bf16.mxu0 %v5806_v47 }
 0xce5   :  { %4130 = vmatpush1.bf16.msra.mxu0 %v5824_v54 }
 0xce6   :  { %4132 = vmatprep.subr.bf16.mxu0 %v5828_v55 }
 0xce9   :  { %4134 = vmatpush1.bf16.msra.mxu0 %v5845_v62 }
 0xcea   :  { %4136 = vmatprep.subr.bf16.mxu0 %v5848_v63 }
 0xced   :  { %4138 = vmatpush1.bf16.msra.mxu0 %v5865_v7 }
 0xcee   :  { %4140 = vmatprep.subr.bf16.mxu0 %v5868_v9 }
 0xcf1   :  { %4142 = vmatpush1.bf16.msra.mxu0 %v5879_v13 }
 0xcf2   :  { %4144 = vmatprep.subr.bf16.mxu0 %v5509_v16 }
 0xd87   :  { %v1653_v53 = vpop.f32.mrb[28].mxu0 }
 0xd88   :  { %v5249_v58 = vadd.f32 %v1653_v53, %v5992_v14  ;;  %v1655_v36 = vpop.f32.mrb[29].mxu0 }
 0xd89   :  { %v5250_v61 = vadd.f32 %v1655_v36, %v6077_v60 }
 0xd8b   :  { %5361 = vtanh.f32 %v5250_v61 }
 0xd8c   :  { %5363 = vtanh.f32 %v5249_v58 }
 0xd95   :  { %v5362_v1 = vpop.eup %5361 }
 0xd96   :  { %v5364_v5 = vpop.eup %5363  ;;  %1726 = vmatprep.mubr.f32.mxu0 %v5362_v1 }
 0xd97   :  { %1727 = vmatmul.mubr.f32.vlgmr.msra.gmra.mrb[30].mxu0 %v5364_v5 }
 0xd98   :  { %4146 = vmatpush1.bf16.msra.mxu0 %v5530_v22 }
 0xd99   :  { %4148 = vmatprep.subr.bf16.mxu0 %v5535_v23 }
 0xd9c   :  { %4150 = vmatpush1.bf16.msra.mxu0 %v5552_v28 }
 0xd9d   :  { %4152 = vmatprep.subr.bf16.mxu0 %v5559_v30 }
 0xda0   :  { %4154 = vmatpush1.bf16.msra.mxu0 %v5575_v35 }
 0xda1   :  { %4156 = vmatprep.subr.bf16.mxu0 %v5582_v37 }
 0xda4   :  { %4158 = vmatpush1.bf16.msra.mxu0 %v5598_v42 }
 0xda5   :  { %4160 = vmatprep.subr.bf16.mxu0 %v5605_v44 }
 0xda8   :  { %4162 = vmatpush1.bf16.msra.mxu0 %v5621_v49 }
 0xda9   :  { %4164 = vmatprep.subr.bf16.mxu0 %v5628_v51 }
 0xdac   :  { %4166 = vmatpush1.bf16.msra.mxu0 %v5647_v57 }
 0xdad   :  { %4168 = vmatprep.subr.bf16.mxu0 %v5654_v59 }
 0xdb0   :  { %4170 = vmatpush1.bf16.msra.mxu0 %v5674_v0 }
 0xdb1   :  { %4172 = vmatprep.subr.bf16.mxu0 %v5681_v2 }
 0xdb4   :  { %4174 = vmatpush1.bf16.msra.mxu0 %v5699_v8 }
 0xdb5   :  { %4176 = vmatprep.subr.bf16.mxu0 %v5706_v10 }
 0xdb8   :  { %4178 = vmatpush1.bf16.msra.mxu0 %v5724_v15 }
 0xdb9   :  { %4180 = vmatprep.subr.bf16.mxu0 %v5731_v18 }
 0xdbc   :  { %4182 = vmatpush1.bf16.msra.mxu0 %v5749_v25 }
 0xdbd   :  { %4184 = vmatprep.subr.bf16.mxu0 %v5756_v27 }
 0xdc0   :  { %4186 = vmatpush1.bf16.msra.mxu0 %v5774_v34 }
 0xdc1   :  { %4188 = vmatprep.subr.bf16.mxu0 %v5781_v38 }
 0xdc4   :  { %4190 = vmatpush1.bf16.msra.mxu0 %v5799_v45 }
 0xdc5   :  { %4192 = vmatprep.subr.bf16.mxu0 %v5806_v47 }
 0xdc8   :  { %4194 = vmatpush1.bf16.msra.mxu0 %v5824_v54 }
 0xdc9   :  { %4196 = vmatprep.subr.bf16.mxu0 %v5828_v55 }
 0xdcc   :  { %4198 = vmatpush1.bf16.msra.mxu0 %v5845_v62 }
 0xdcd   :  { %4200 = vmatprep.subr.bf16.mxu0 %v5848_v63 }
 0xdd0   :  { %4202 = vmatpush1.bf16.msra.mxu0 %v5865_v7 }
 0xdd1   :  { %4204 = vmatprep.subr.bf16.mxu0 %v5868_v9 }
 0xdd4   :  { %4206 = vmatpush1.bf16.msra.mxu0 %v5879_v13 }
 0xdd5   :  { %4208 = vmatprep.subr.bf16.mxu0 %v5509_v16 }
 0xe6a   :  { %v1728_v11 = vpop.f32.mrb[30].mxu0 }
 0xe6b   :  { %v5251_v39 = vadd.f32 %v1728_v11, %v5992_v14  ;;  %v1730_v50 = vpop.f32.mrb[31].mxu0 }
 0xe6c   :  { %v5252_v3 = vadd.f32 %v1730_v50, %v6077_v60 }
 0xe6e   :  { %5365 = vtanh.f32 %v5252_v3 }
 0xe6f   :  { %5367 = vtanh.f32 %v5251_v39 }
 0xe78   :  { %v5366_v6 = vpop.eup %5365 }
 0xe79   :  { %v5368_v48 = vpop.eup %5367  ;;  %1801 = vmatprep.mubr.f32.mxu0 %v5366_v6 }
 0xe7a   :  { %1802 = vmatmul.mubr.f32.vlgmr.msra.gmra.mrb[32].mxu0 %v5368_v48 }
 0xe7b   :  { %4210 = vmatpush1.bf16.msra.mxu0 %v5530_v22 }
 0xe7c   :  { %4212 = vmatprep.subr.bf16.mxu0 %v5535_v23 }
 0xe7f   :  { %4214 = vmatpush1.bf16.msra.mxu0 %v5552_v28 }
 0xe80   :  { %4216 = vmatprep.subr.bf16.mxu0 %v5559_v30 }
 0xe83   :  { %4218 = vmatpush1.bf16.msra.mxu0 %v5575_v35 }
 0xe84   :  { %4220 = vmatprep.subr.bf16.mxu0 %v5582_v37 }
 0xe87   :  { %4222 = vmatpush1.bf16.msra.mxu0 %v5598_v42 }
 0xe88   :  { %4224 = vmatprep.subr.bf16.mxu0 %v5605_v44 }
 0xe8b   :  { %4226 = vmatpush1.bf16.msra.mxu0 %v5621_v49 }
 0xe8c   :  { %4228 = vmatprep.subr.bf16.mxu0 %v5628_v51 }
 0xe8f   :  { %4230 = vmatpush1.bf16.msra.mxu0 %v5647_v57 }
 0xe90   :  { %4232 = vmatprep.subr.bf16.mxu0 %v5654_v59 }
 0xe93   :  { %4234 = vmatpush1.bf16.msra.mxu0 %v5674_v0 }
 0xe94   :  { %4236 = vmatprep.subr.bf16.mxu0 %v5681_v2 }
 0xe97   :  { %4238 = vmatpush1.bf16.msra.mxu0 %v5699_v8 }
 0xe98   :  { %4240 = vmatprep.subr.bf16.mxu0 %v5706_v10 }
 0xe9b   :  { %4242 = vmatpush1.bf16.msra.mxu0 %v5724_v15 }
 0xe9c   :  { %4244 = vmatprep.subr.bf16.mxu0 %v5731_v18 }
 0xe9f   :  { %4246 = vmatpush1.bf16.msra.mxu0 %v5749_v25 }
 0xea0   :  { %4248 = vmatprep.subr.bf16.mxu0 %v5756_v27 }
 0xea3   :  { %4250 = vmatpush1.bf16.msra.mxu0 %v5774_v34 }
 0xea4   :  { %4252 = vmatprep.subr.bf16.mxu0 %v5781_v38 }
 0xea7   :  { %4254 = vmatpush1.bf16.msra.mxu0 %v5799_v45 }
 0xea8   :  { %4256 = vmatprep.subr.bf16.mxu0 %v5806_v47 }
 0xeab   :  { %4258 = vmatpush1.bf16.msra.mxu0 %v5824_v54 }
 0xeac   :  { %4260 = vmatprep.subr.bf16.mxu0 %v5828_v55 }
 0xeaf   :  { %4262 = vmatpush1.bf16.msra.mxu0 %v5845_v62 }
 0xeb0   :  { %4264 = vmatprep.subr.bf16.mxu0 %v5848_v63 }
 0xeb3   :  { %4266 = vmatpush1.bf16.msra.mxu0 %v5865_v7 }
 0xeb4   :  { %4268 = vmatprep.subr.bf16.mxu0 %v5868_v9 }
 0xeb7   :  { %4270 = vmatpush1.bf16.msra.mxu0 %v5879_v13 }
 0xeb8   :  { %4272 = vmatprep.subr.bf16.mxu0 %v5509_v16 }
 0xf4d   :  { %v1803_v56 = vpop.f32.mrb[32].mxu0 }
 0xf4e   :  { %v1804_v12 = vadd.f32 %v1803_v56, %v326_v52  ;;  %v1805_v53 = vpop.f32.mrb[33].mxu0 }
 0xf4f   :  { %v1806_v58 = vadd.f32 %v1805_v53, %v328_v4 }
 0xf51   :  { %5369 = vtanh.f32 %v1806_v58 }
 0xf52   :  { %5371 = vtanh.f32 %v1804_v12 }
 0xf5b   :  { %v5370_v36 = vpop.eup %5369 }
 0xf5c   :  { %v5372_v61 = vpop.eup %5371  ;;  %1876 = vmatprep.mubr.f32.mxu0 %v5370_v36 }
 0xf5d   :  { %1877 = vmatmul.mubr.f32.vlgmr.msra.gmra.mrb[34].mxu0 %v5372_v61 }
 0xf5e   :  { %4274 = vmatpush1.bf16.msra.mxu0 %v5530_v22 }
 0xf5f   :  { %4276 = vmatprep.subr.bf16.mxu0 %v5535_v23 }
 0xf62   :  { %4278 = vmatpush1.bf16.msra.mxu0 %v5552_v28 }
 0xf63   :  { %4280 = vmatprep.subr.bf16.mxu0 %v5559_v30 }
 0xf66   :  { %4282 = vmatpush1.bf16.msra.mxu0 %v5575_v35 }
 0xf67   :  { %4284 = vmatprep.subr.bf16.mxu0 %v5582_v37 }
 0xf6a   :  { %4286 = vmatpush1.bf16.msra.mxu0 %v5598_v42 }
 0xf6b   :  { %4288 = vmatprep.subr.bf16.mxu0 %v5605_v44 }
 0xf6e   :  { %4290 = vmatpush1.bf16.msra.mxu0 %v5621_v49 }
 0xf6f   :  { %4292 = vmatprep.subr.bf16.mxu0 %v5628_v51 }
 0xf72   :  { %4294 = vmatpush1.bf16.msra.mxu0 %v5647_v57 }
 0xf73   :  { %4296 = vmatprep.subr.bf16.mxu0 %v5654_v59 }
 0xf76   :  { %4298 = vmatpush1.bf16.msra.mxu0 %v5674_v0 }
 0xf77   :  { %4300 = vmatprep.subr.bf16.mxu0 %v5681_v2 }
 0xf7a   :  { %4302 = vmatpush1.bf16.msra.mxu0 %v5699_v8 }
 0xf7b   :  { %4304 = vmatprep.subr.bf16.mxu0 %v5706_v10 }
 0xf7e   :  { %4306 = vmatpush1.bf16.msra.mxu0 %v5724_v15 }
 0xf7f   :  { %4308 = vmatprep.subr.bf16.mxu0 %v5731_v18 }
 0xf82   :  { %4310 = vmatpush1.bf16.msra.mxu0 %v5749_v25 }
 0xf83   :  { %4312 = vmatprep.subr.bf16.mxu0 %v5756_v27 }
 0xf86   :  { %4314 = vmatpush1.bf16.msra.mxu0 %v5774_v34 }
 0xf87   :  { %4316 = vmatprep.subr.bf16.mxu0 %v5781_v38 }
 0xf8a   :  { %4318 = vmatpush1.bf16.msra.mxu0 %v5799_v45 }
 0xf8b   :  { %4320 = vmatprep.subr.bf16.mxu0 %v5806_v47 }
 0xf8e   :  { %4322 = vmatpush1.bf16.msra.mxu0 %v5824_v54 }
 0xf8f   :  { %4324 = vmatprep.subr.bf16.mxu0 %v5828_v55 }
 0xf92   :  { %4326 = vmatpush1.bf16.msra.mxu0 %v5845_v62 }
 0xf93   :  { %4328 = vmatprep.subr.bf16.mxu0 %v5848_v63 }
 0xf96   :  { %4330 = vmatpush1.bf16.msra.mxu0 %v5865_v7 }
 0xf97   :  { %4332 = vmatprep.subr.bf16.mxu0 %v5868_v9 }
 0xf9a   :  { %4334 = vmatpush1.bf16.msra.mxu0 %v5879_v13 }
 0xf9b   :  { %4336 = vmatprep.subr.bf16.mxu0 %v5509_v16 }
0x1030   :  { %v1878_v1 = vpop.f32.mrb[34].mxu0 }
0x1031   :  { %v1879_v5 = vadd.f32 %v1878_v1, %v332_v17  ;;  %v1880_v11 = vpop.f32.mrb[35].mxu0 }
0x1032   :  { %v1881_v39 = vadd.f32 %v1880_v11, %v334_v19 }
0x1034   :  { %5373 = vtanh.f32 %v1881_v39 }
0x1035   :  { %5375 = vtanh.f32 %v1879_v5 }
0x103e   :  { %v5374_v50 = vpop.eup %5373 }
0x103f   :  { %v5376_v3 = vpop.eup %5375  ;;  %1951 = vmatprep.mubr.f32.mxu0 %v5374_v50 }
0x1040   :  { %1952 = vmatmul.mubr.f32.vlgmr.msra.gmra.mrb[36].mxu0 %v5376_v3 }
0x1041   :  { %4338 = vmatpush1.bf16.msra.mxu0 %v5530_v22 }
0x1042   :  { %4340 = vmatprep.subr.bf16.mxu0 %v5535_v23 }
0x1045   :  { %4342 = vmatpush1.bf16.msra.mxu0 %v5552_v28 }
0x1046   :  { %4344 = vmatprep.subr.bf16.mxu0 %v5559_v30 }
0x1049   :  { %4346 = vmatpush1.bf16.msra.mxu0 %v5575_v35 }
0x104a   :  { %4348 = vmatprep.subr.bf16.mxu0 %v5582_v37 }
0x104d   :  { %4350 = vmatpush1.bf16.msra.mxu0 %v5598_v42 }
0x104e   :  { %4352 = vmatprep.subr.bf16.mxu0 %v5605_v44 }
0x1051   :  { %4354 = vmatpush1.bf16.msra.mxu0 %v5621_v49 }
0x1052   :  { %4356 = vmatprep.subr.bf16.mxu0 %v5628_v51 }
0x1055   :  { %4358 = vmatpush1.bf16.msra.mxu0 %v5647_v57 }
0x1056   :  { %4360 = vmatprep.subr.bf16.mxu0 %v5654_v59 }
0x1059   :  { %4362 = vmatpush1.bf16.msra.mxu0 %v5674_v0 }
0x105a   :  { %4364 = vmatprep.subr.bf16.mxu0 %v5681_v2 }
0x105d   :  { %4366 = vmatpush1.bf16.msra.mxu0 %v5699_v8 }
0x105e   :  { %4368 = vmatprep.subr.bf16.mxu0 %v5706_v10 }
0x1061   :  { %4370 = vmatpush1.bf16.msra.mxu0 %v5724_v15 }
0x1062   :  { %4372 = vmatprep.subr.bf16.mxu0 %v5731_v18 }
0x1065   :  { %4374 = vmatpush1.bf16.msra.mxu0 %v5749_v25 }
0x1066   :  { %4376 = vmatprep.subr.bf16.mxu0 %v5756_v27 }
0x1069   :  { %4378 = vmatpush1.bf16.msra.mxu0 %v5774_v34 }
0x106a   :  { %4380 = vmatprep.subr.bf16.mxu0 %v5781_v38 }
0x106d   :  { %4382 = vmatpush1.bf16.msra.mxu0 %v5799_v45 }
0x106e   :  { %4384 = vmatprep.subr.bf16.mxu0 %v5806_v47 }
0x1071   :  { %4386 = vmatpush1.bf16.msra.mxu0 %v5824_v54 }
0x1072   :  { %4388 = vmatprep.subr.bf16.mxu0 %v5828_v55 }
0x1075   :  { %4390 = vmatpush1.bf16.msra.mxu0 %v5845_v62 }
0x1076   :  { %4392 = vmatprep.subr.bf16.mxu0 %v5848_v63 }
0x1079   :  { %4394 = vmatpush1.bf16.msra.mxu0 %v5865_v7 }
0x107a   :  { %4396 = vmatprep.subr.bf16.mxu0 %v5868_v9 }
0x107d   :  { %4398 = vmatpush1.bf16.msra.mxu0 %v5879_v13 }
0x107e   :  { %4400 = vmatprep.subr.bf16.mxu0 %v5509_v16 }
0x1113   :  { %v1953_v6 = vpop.f32.mrb[36].mxu0 }
0x1114   :  { %v1954_v48 = vadd.f32 %v1953_v6, %v338_v20  ;;  %v1955_v52 = vpop.f32.mrb[37].mxu0 }
0x1115   :  { %v1956_v4 = vadd.f32 %v1955_v52, %v340_v21 }
0x1117   :  { %5377 = vtanh.f32 %v1956_v4 }
0x1118   :  { %5379 = vtanh.f32 %v1954_v48 }
0x1121   :  { %v5378_v56 = vpop.eup %5377 }
0x1122   :  { %v5380_v12 = vpop.eup %5379  ;;  %2026 = vmatprep.mubr.f32.mxu0 %v5378_v56 }
0x1123   :  { %2027 = vmatmul.mubr.f32.vlgmr.msra.gmra.mrb[38].mxu0 %v5380_v12 }
0x1124   :  { %4402 = vmatpush1.bf16.msra.mxu0 %v5530_v22 }
0x1125   :  { %4404 = vmatprep.subr.bf16.mxu0 %v5535_v23 }
0x1128   :  { %4406 = vmatpush1.bf16.msra.mxu0 %v5552_v28 }
0x1129   :  { %4408 = vmatprep.subr.bf16.mxu0 %v5559_v30 }
0x112c   :  { %4410 = vmatpush1.bf16.msra.mxu0 %v5575_v35 }
0x112d   :  { %4412 = vmatprep.subr.bf16.mxu0 %v5582_v37 }
0x1130   :  { %4414 = vmatpush1.bf16.msra.mxu0 %v5598_v42 }
0x1131   :  { %4416 = vmatprep.subr.bf16.mxu0 %v5605_v44 }
0x1134   :  { %4418 = vmatpush1.bf16.msra.mxu0 %v5621_v49 }
0x1135   :  { %4420 = vmatprep.subr.bf16.mxu0 %v5628_v51 }
0x1138   :  { %4422 = vmatpush1.bf16.msra.mxu0 %v5647_v57 }
0x1139   :  { %4424 = vmatprep.subr.bf16.mxu0 %v5654_v59 }
0x113c   :  { %4426 = vmatpush1.bf16.msra.mxu0 %v5674_v0 }
0x113d   :  { %4428 = vmatprep.subr.bf16.mxu0 %v5681_v2 }
0x1140   :  { %4430 = vmatpush1.bf16.msra.mxu0 %v5699_v8 }
0x1141   :  { %4432 = vmatprep.subr.bf16.mxu0 %v5706_v10 }
0x1144   :  { %4434 = vmatpush1.bf16.msra.mxu0 %v5724_v15 }
0x1145   :  { %4436 = vmatprep.subr.bf16.mxu0 %v5731_v18 }
0x1148   :  { %4438 = vmatpush1.bf16.msra.mxu0 %v5749_v25 }
0x1149   :  { %4440 = vmatprep.subr.bf16.mxu0 %v5756_v27 }
0x114c   :  { %4442 = vmatpush1.bf16.msra.mxu0 %v5774_v34 }
0x114d   :  { %4444 = vmatprep.subr.bf16.mxu0 %v5781_v38 }
0x1150   :  { %4446 = vmatpush1.bf16.msra.mxu0 %v5799_v45 }
0x1151   :  { %4448 = vmatprep.subr.bf16.mxu0 %v5806_v47 }
0x1154   :  { %4450 = vmatpush1.bf16.msra.mxu0 %v5824_v54 }
0x1155   :  { %4452 = vmatprep.subr.bf16.mxu0 %v5828_v55 }
0x1158   :  { %4454 = vmatpush1.bf16.msra.mxu0 %v5845_v62 }
0x1159   :  { %4456 = vmatprep.subr.bf16.mxu0 %v5848_v63 }
0x115c   :  { %4458 = vmatpush1.bf16.msra.mxu0 %v5865_v7 }
0x115d   :  { %4460 = vmatprep.subr.bf16.mxu0 %v5868_v9 }
0x1160   :  { %4462 = vmatpush1.bf16.msra.mxu0 %v5879_v13 }
0x1161   :  { %4464 = vmatprep.subr.bf16.mxu0 %v5509_v16 }
0x11f6   :  { %v2028_v53 = vpop.f32.mrb[38].mxu0 }
0x11f7   :  { %v2029_v58 = vadd.f32 %v2028_v53, %v344_v24  ;;  %v2030_v36 = vpop.f32.mrb[39].mxu0 }
0x11f8   :  { %v2031_v61 = vadd.f32 %v2030_v36, %v346_v26  ;;  %v7216_v36 = vld [vmem:[#allocation4_spill] sm:$0xff] }
0x11fa   :  { %5381 = vtanh.f32 %v2031_v61  ;;  %v370_v61 = vadd.f32 %v7216_v36, %v6077_v60  ;;  %v7222_v36 = vld [vmem:[#allocation10_spill] sm:$0xff] }
0x11fb   :  { %5383 = vtanh.f32 %v2029_v58 }
0x1204   :  { %v5382_v17 = vpop.eup %5381 }
0x1205   :  { %v5384_v19 = vpop.eup %5383  ;;  %2101 = vmatprep.mubr.f32.mxu0 %v5382_v17 }
0x1206   :  { %2102 = vmatmul.mubr.f32.vlgmr.msra.gmra.mrb[40].mxu0 %v5384_v19 }
0x1207   :  { %4466 = vmatpush1.bf16.msra.mxu0 %v5530_v22 }
0x1208   :  { %4468 = vmatprep.subr.bf16.mxu0 %v5535_v23 }
0x120b   :  { %4470 = vmatpush1.bf16.msra.mxu0 %v5552_v28 }
0x120c   :  { %4472 = vmatprep.subr.bf16.mxu0 %v5559_v30 }
0x120f   :  { %4474 = vmatpush1.bf16.msra.mxu0 %v5575_v35 }
0x1210   :  { %4476 = vmatprep.subr.bf16.mxu0 %v5582_v37 }
0x1213   :  { %4478 = vmatpush1.bf16.msra.mxu0 %v5598_v42 }
0x1214   :  { %4480 = vmatprep.subr.bf16.mxu0 %v5605_v44 }
0x1217   :  { %4482 = vmatpush1.bf16.msra.mxu0 %v5621_v49 }
0x1218   :  { %4484 = vmatprep.subr.bf16.mxu0 %v5628_v51 }
0x121b   :  { %4486 = vmatpush1.bf16.msra.mxu0 %v5647_v57 }
0x121c   :  { %4488 = vmatprep.subr.bf16.mxu0 %v5654_v59 }
0x121f   :  { %4490 = vmatpush1.bf16.msra.mxu0 %v5674_v0 }
0x1220   :  { %4492 = vmatprep.subr.bf16.mxu0 %v5681_v2 }
0x1223   :  { %4494 = vmatpush1.bf16.msra.mxu0 %v5699_v8 }
0x1224   :  { %4496 = vmatprep.subr.bf16.mxu0 %v5706_v10 }
0x1227   :  { %4498 = vmatpush1.bf16.msra.mxu0 %v5724_v15 }
0x1228   :  { %4500 = vmatprep.subr.bf16.mxu0 %v5731_v18 }
0x122b   :  { %4502 = vmatpush1.bf16.msra.mxu0 %v5749_v25 }
0x122c   :  { %4504 = vmatprep.subr.bf16.mxu0 %v5756_v27 }
0x122f   :  { %4506 = vmatpush1.bf16.msra.mxu0 %v5774_v34 }
0x1230   :  { %4508 = vmatprep.subr.bf16.mxu0 %v5781_v38 }
0x1233   :  { %4510 = vmatpush1.bf16.msra.mxu0 %v5799_v45 }
0x1234   :  { %4512 = vmatprep.subr.bf16.mxu0 %v5806_v47 }
0x1237   :  { %4514 = vmatpush1.bf16.msra.mxu0 %v5824_v54 }
0x1238   :  { %4516 = vmatprep.subr.bf16.mxu0 %v5828_v55 }
0x123b   :  { %4518 = vmatpush1.bf16.msra.mxu0 %v5845_v62 }
0x123c   :  { %4520 = vmatprep.subr.bf16.mxu0 %v5848_v63 }
0x123f   :  { %4522 = vmatpush1.bf16.msra.mxu0 %v5865_v7 }
0x1240   :  { %4524 = vmatprep.subr.bf16.mxu0 %v5868_v9 }
0x1243   :  { %4526 = vmatpush1.bf16.msra.mxu0 %v5879_v13 }
0x1244   :  { %4528 = vmatprep.subr.bf16.mxu0 %v5509_v16 }
0x12d9   :  { %v2103_v1 = vpop.f32.mrb[40].mxu0 }
0x12da   :  { %v2104_v5 = vadd.f32 %v2103_v1, %v350_v29  ;;  %v2105_v11 = vpop.f32.mrb[41].mxu0 }
0x12db   :  { %v2106_v39 = vadd.f32 %v2105_v11, %v352_v31  ;;  %v7217_v11 = vld [vmem:[#allocation5_spill] sm:$0xff] }
0x12dd   :  { %5385 = vtanh.f32 %v2106_v39  ;;  %v374_v39 = vadd.f32 %v7217_v11, %v5992_v14  ;;  %v7223_v11 = vld [vmem:[#allocation11_spill] sm:$0xff] }
0x12de   :  { %5387 = vtanh.f32 %v2104_v5 }
0x12e7   :  { %v5386_v50 = vpop.eup %5385 }
0x12e8   :  { %v5388_v3 = vpop.eup %5387  ;;  %2176 = vmatprep.mubr.f32.mxu0 %v5386_v50  ;;  %v7218_v50 = vld [vmem:[#allocation6_spill] sm:$0xff] }
0x12e9   :  { %2177 = vmatmul.mubr.f32.vlgmr.msra.gmra.mrb[42].mxu0 %v5388_v3  ;;  %v376_v3 = vadd.f32 %v7218_v50, %v6077_v60  ;;  %v7224_v50 = vld [vmem:[#allocation12_spill] sm:$0xff] }
0x12ea   :  { %4530 = vmatpush1.bf16.msra.mxu0 %v5530_v22 }
0x12eb   :  { %4532 = vmatprep.subr.bf16.mxu0 %v5535_v23 }
0x12ee   :  { %4534 = vmatpush1.bf16.msra.mxu0 %v5552_v28 }
0x12ef   :  { %4536 = vmatprep.subr.bf16.mxu0 %v5559_v30 }
0x12f2   :  { %4538 = vmatpush1.bf16.msra.mxu0 %v5575_v35 }
0x12f3   :  { %4540 = vmatprep.subr.bf16.mxu0 %v5582_v37 }
0x12f6   :  { %4542 = vmatpush1.bf16.msra.mxu0 %v5598_v42 }
0x12f7   :  { %4544 = vmatprep.subr.bf16.mxu0 %v5605_v44 }
0x12fa   :  { %4546 = vmatpush1.bf16.msra.mxu0 %v5621_v49 }
0x12fb   :  { %4548 = vmatprep.subr.bf16.mxu0 %v5628_v51 }
0x12fe   :  { %4550 = vmatpush1.bf16.msra.mxu0 %v5647_v57 }
0x12ff   :  { %4552 = vmatprep.subr.bf16.mxu0 %v5654_v59 }
0x1302   :  { %4554 = vmatpush1.bf16.msra.mxu0 %v5674_v0 }
0x1303   :  { %4556 = vmatprep.subr.bf16.mxu0 %v5681_v2 }
0x1306   :  { %4558 = vmatpush1.bf16.msra.mxu0 %v5699_v8 }
0x1307   :  { %4560 = vmatprep.subr.bf16.mxu0 %v5706_v10 }
0x130a   :  { %4562 = vmatpush1.bf16.msra.mxu0 %v5724_v15 }
0x130b   :  { %4564 = vmatprep.subr.bf16.mxu0 %v5731_v18 }
0x130e   :  { %4566 = vmatpush1.bf16.msra.mxu0 %v5749_v25 }
0x130f   :  { %4568 = vmatprep.subr.bf16.mxu0 %v5756_v27 }
0x1312   :  { %4570 = vmatpush1.bf16.msra.mxu0 %v5774_v34 }
0x1313   :  { %4572 = vmatprep.subr.bf16.mxu0 %v5781_v38 }
0x1316   :  { %4574 = vmatpush1.bf16.msra.mxu0 %v5799_v45 }
0x1317   :  { %4576 = vmatprep.subr.bf16.mxu0 %v5806_v47 }
0x131a   :  { %4578 = vmatpush1.bf16.msra.mxu0 %v5824_v54 }
0x131b   :  { %4580 = vmatprep.subr.bf16.mxu0 %v5828_v55 }
0x131e   :  { %4582 = vmatpush1.bf16.msra.mxu0 %v5845_v62 }
0x131f   :  { %4584 = vmatprep.subr.bf16.mxu0 %v5848_v63 }
0x1322   :  { %4586 = vmatpush1.bf16.msra.mxu0 %v5865_v7 }
0x1323   :  { %4588 = vmatprep.subr.bf16.mxu0 %v5868_v9 }
0x1326   :  { %4590 = vmatpush1.bf16.msra.mxu0 %v5879_v13 }
0x1327   :  { %4592 = vmatprep.subr.bf16.mxu0 %v5509_v16 }
0x13bc   :  { %v2178_v20 = vpop.f32.mrb[42].mxu0 }
0x13bd   :  { %v2179_v21 = vadd.f32 %v2178_v20, %v356_v32  ;;  %v2180_v6 = vpop.f32.mrb[43].mxu0 }
0x13be   :  { %v2181_v48 = vadd.f32 %v2180_v6, %v358_v33 }
0x13c0   :  { %5389 = vtanh.f32 %v2181_v48 }
0x13c1   :  { %5391 = vtanh.f32 %v2179_v21 }
0x13ca   :  { %v5390_v52 = vpop.eup %5389 }
0x13cb   :  { %v5392_v4 = vpop.eup %5391  ;;  %2251 = vmatprep.mubr.f32.mxu0 %v5390_v52  ;;  %v7219_v52 = vld [vmem:[#allocation7_spill] sm:$0xff] }
0x13cc   :  { %2252 = vmatmul.mubr.f32.vlgmr.msra.gmra.mrb[44].mxu0 %v5392_v4  ;;  %v380_v4 = vadd.f32 %v7219_v52, %v5992_v14 }
0x13cd   :  { %4594 = vmatpush1.bf16.msra.mxu0 %v5530_v22 }
0x13ce   :  { %4596 = vmatprep.subr.bf16.mxu0 %v5535_v23 }
0x13d1   :  { %4598 = vmatpush1.bf16.msra.mxu0 %v5552_v28 }
0x13d2   :  { %4600 = vmatprep.subr.bf16.mxu0 %v5559_v30 }
0x13d5   :  { %4602 = vmatpush1.bf16.msra.mxu0 %v5575_v35 }
0x13d6   :  { %4604 = vmatprep.subr.bf16.mxu0 %v5582_v37 }
0x13d9   :  { %4606 = vmatpush1.bf16.msra.mxu0 %v5598_v42 }
0x13da   :  { %4608 = vmatprep.subr.bf16.mxu0 %v5605_v44 }
0x13dd   :  { %4610 = vmatpush1.bf16.msra.mxu0 %v5621_v49 }
0x13de   :  { %4612 = vmatprep.subr.bf16.mxu0 %v5628_v51 }
0x13e1   :  { %4614 = vmatpush1.bf16.msra.mxu0 %v5647_v57 }
0x13e2   :  { %4616 = vmatprep.subr.bf16.mxu0 %v5654_v59 }
0x13e5   :  { %4618 = vmatpush1.bf16.msra.mxu0 %v5674_v0 }
0x13e6   :  { %4620 = vmatprep.subr.bf16.mxu0 %v5681_v2 }
0x13e9   :  { %4622 = vmatpush1.bf16.msra.mxu0 %v5699_v8 }
0x13ea   :  { %4624 = vmatprep.subr.bf16.mxu0 %v5706_v10 }
0x13ed   :  { %4626 = vmatpush1.bf16.msra.mxu0 %v5724_v15 }
0x13ee   :  { %4628 = vmatprep.subr.bf16.mxu0 %v5731_v18 }
0x13f1   :  { %4630 = vmatpush1.bf16.msra.mxu0 %v5749_v25 }
0x13f2   :  { %4632 = vmatprep.subr.bf16.mxu0 %v5756_v27 }
0x13f5   :  { %4634 = vmatpush1.bf16.msra.mxu0 %v5774_v34 }
0x13f6   :  { %4636 = vmatprep.subr.bf16.mxu0 %v5781_v38 }
0x13f9   :  { %4638 = vmatpush1.bf16.msra.mxu0 %v5799_v45 }
0x13fa   :  { %4640 = vmatprep.subr.bf16.mxu0 %v5806_v47 }
0x13fd   :  { %4642 = vmatpush1.bf16.msra.mxu0 %v5824_v54 }
0x13fe   :  { %4644 = vmatprep.subr.bf16.mxu0 %v5828_v55 }
0x1401   :  { %4646 = vmatpush1.bf16.msra.mxu0 %v5845_v62 }
0x1402   :  { %4648 = vmatprep.subr.bf16.mxu0 %v5848_v63 }
0x1405   :  { %4650 = vmatpush1.bf16.msra.mxu0 %v5865_v7 }
0x1406   :  { %4652 = vmatprep.subr.bf16.mxu0 %v5868_v9 }
0x1409   :  { %4654 = vmatpush1.bf16.msra.mxu0 %v5879_v13 }
0x140a   :  { %4656 = vmatprep.subr.bf16.mxu0 %v5509_v16 }
0x149f   :  { %v2253_v56 = vpop.f32.mrb[44].mxu0 }
0x14a0   :  { %v2254_v12 = vadd.f32 %v2253_v56, %v362_v40  ;;  %v2255_v24 = vpop.f32.mrb[45].mxu0  ;;  %v7220_v40 = vld [vmem:[#allocation8_spill] sm:$0xff] }
0x14a1   :  { %v2256_v26 = vadd.f32 %v2255_v24, %v364_v41  ;;  %v382_v41 = vadd.f32 %v7220_v40, %v6077_v60 }
0x14a3   :  { %5393 = vtanh.f32 %v2256_v26 }
0x14a4   :  { %5395 = vtanh.f32 %v2254_v12 }
0x14ad   :  { %v5394_v53 = vpop.eup %5393 }
0x14ae   :  { %v5396_v58 = vpop.eup %5395  ;;  %2326 = vmatprep.mubr.f32.mxu0 %v5394_v53 }
0x14af   :  { %2327 = vmatmul.mubr.f32.vlgmr.msra.gmra.mrb[46].mxu0 %v5396_v58 }
0x14b0   :  { %4658 = vmatpush1.bf16.msra.mxu0 %v5530_v22 }
0x14b1   :  { %4660 = vmatprep.subr.bf16.mxu0 %v5535_v23 }
0x14b4   :  { %4662 = vmatpush1.bf16.msra.mxu0 %v5552_v28 }
0x14b5   :  { %4664 = vmatprep.subr.bf16.mxu0 %v5559_v30 }
0x14b8   :  { %4666 = vmatpush1.bf16.msra.mxu0 %v5575_v35 }
0x14b9   :  { %4668 = vmatprep.subr.bf16.mxu0 %v5582_v37 }
0x14bc   :  { %4670 = vmatpush1.bf16.msra.mxu0 %v5598_v42 }
0x14bd   :  { %4672 = vmatprep.subr.bf16.mxu0 %v5605_v44 }
0x14c0   :  { %4674 = vmatpush1.bf16.msra.mxu0 %v5621_v49 }
0x14c1   :  { %4676 = vmatprep.subr.bf16.mxu0 %v5628_v51 }
0x14c4   :  { %4678 = vmatpush1.bf16.msra.mxu0 %v5647_v57 }
0x14c5   :  { %4680 = vmatprep.subr.bf16.mxu0 %v5654_v59 }
0x14c8   :  { %4682 = vmatpush1.bf16.msra.mxu0 %v5674_v0 }
0x14c9   :  { %4684 = vmatprep.subr.bf16.mxu0 %v5681_v2 }
0x14cc   :  { %4686 = vmatpush1.bf16.msra.mxu0 %v5699_v8 }
0x14cd   :  { %4688 = vmatprep.subr.bf16.mxu0 %v5706_v10 }
0x14d0   :  { %4690 = vmatpush1.bf16.msra.mxu0 %v5724_v15 }
0x14d1   :  { %4692 = vmatprep.subr.bf16.mxu0 %v5731_v18 }
0x14d4   :  { %4694 = vmatpush1.bf16.msra.mxu0 %v5749_v25 }
0x14d5   :  { %4696 = vmatprep.subr.bf16.mxu0 %v5756_v27 }
0x14d8   :  { %4698 = vmatpush1.bf16.msra.mxu0 %v5774_v34 }
0x14d9   :  { %4700 = vmatprep.subr.bf16.mxu0 %v5781_v38 }
0x14dc   :  { %4702 = vmatpush1.bf16.msra.mxu0 %v5799_v45 }
0x14dd   :  { %4704 = vmatprep.subr.bf16.mxu0 %v5806_v47 }
0x14e0   :  { %4706 = vmatpush1.bf16.msra.mxu0 %v5824_v54 }
0x14e1   :  { %4708 = vmatprep.subr.bf16.mxu0 %v5828_v55 }
0x14e4   :  { %4710 = vmatpush1.bf16.msra.mxu0 %v5845_v62 }
0x14e5   :  { %4712 = vmatprep.subr.bf16.mxu0 %v5848_v63 }
0x14e8   :  { %4714 = vmatpush1.bf16.msra.mxu0 %v5865_v7 }
0x14e9   :  { %4716 = vmatprep.subr.bf16.mxu0 %v5868_v9 }
0x14ec   :  { %4718 = vmatpush1.bf16.msra.mxu0 %v5879_v13 }
0x14ed   :  { %4720 = vmatprep.subr.bf16.mxu0 %v5509_v16 }
0x1582   :  { %v2328_v17 = vpop.f32.mrb[46].mxu0 }
0x1583   :  { %v2329_v19 = vadd.f32 %v2328_v17, %v368_v46  ;;  %v2330_v29 = vpop.f32.mrb[47].mxu0  ;;  %v386_v46 = vadd.f32 %v7221_v43, %v5992_v14 }
0x1584   :  { %v2331_v31 = vadd.f32 %v2330_v29, %v370_v61  ;;  %v388_v61 = vadd.f32 %v7222_v36, %v6077_v60  ;;  %v2936_v36 = vld [vmem:[%s7197_s4 + $0x48] sm:$0xff] }
0x1586   :  { %5397 = vtanh.f32 %v2331_v31 }
0x1587   :  { %5399 = vtanh.f32 %v2329_v19 }
0x1590   :  { %v5398_v1 = vpop.eup %5397 }
0x1591   :  { %v5400_v5 = vpop.eup %5399  ;;  %2401 = vmatprep.mubr.f32.mxu0 %v5398_v1 }
0x1592   :  { %2402 = vmatmul.mubr.f32.vlgmr.msra.gmra.mrb[48].mxu0 %v5400_v5 }
0x1593   :  { %4722 = vmatpush1.bf16.msra.mxu0 %v5530_v22 }
0x1594   :  { %4724 = vmatprep.subr.bf16.mxu0 %v5535_v23 }
0x1597   :  { %4726 = vmatpush1.bf16.msra.mxu0 %v5552_v28 }
0x1598   :  { %4728 = vmatprep.subr.bf16.mxu0 %v5559_v30 }
0x159b   :  { %4730 = vmatpush1.bf16.msra.mxu0 %v5575_v35 }
0x159c   :  { %4732 = vmatprep.subr.bf16.mxu0 %v5582_v37 }
0x159f   :  { %4734 = vmatpush1.bf16.msra.mxu0 %v5598_v42 }
0x15a0   :  { %4736 = vmatprep.subr.bf16.mxu0 %v5605_v44 }
0x15a3   :  { %4738 = vmatpush1.bf16.msra.mxu0 %v5621_v49 }
0x15a4   :  { %4740 = vmatprep.subr.bf16.mxu0 %v5628_v51 }
0x15a7   :  { %4742 = vmatpush1.bf16.msra.mxu0 %v5647_v57 }
0x15a8   :  { %4744 = vmatprep.subr.bf16.mxu0 %v5654_v59 }
0x15ab   :  { %4746 = vmatpush1.bf16.msra.mxu0 %v5674_v0 }
0x15ac   :  { %4748 = vmatprep.subr.bf16.mxu0 %v5681_v2 }
0x15af   :  { %4750 = vmatpush1.bf16.msra.mxu0 %v5699_v8 }
0x15b0   :  { %4752 = vmatprep.subr.bf16.mxu0 %v5706_v10 }
0x15b3   :  { %4754 = vmatpush1.bf16.msra.mxu0 %v5724_v15 }
0x15b4   :  { %4756 = vmatprep.subr.bf16.mxu0 %v5731_v18 }
0x15b7   :  { %4758 = vmatpush1.bf16.msra.mxu0 %v5749_v25 }
0x15b8   :  { %4760 = vmatprep.subr.bf16.mxu0 %v5756_v27 }
0x15bb   :  { %4762 = vmatpush1.bf16.msra.mxu0 %v5774_v34 }
0x15bc   :  { %4764 = vmatprep.subr.bf16.mxu0 %v5781_v38 }
0x15bf   :  { %4766 = vmatpush1.bf16.msra.mxu0 %v5799_v45 }
0x15c0   :  { %4768 = vmatprep.subr.bf16.mxu0 %v5806_v47 }
0x15c3   :  { %4770 = vmatpush1.bf16.msra.mxu0 %v5824_v54 }
0x15c4   :  { %4772 = vmatprep.subr.bf16.mxu0 %v5828_v55 }
0x15c7   :  { %4774 = vmatpush1.bf16.msra.mxu0 %v5845_v62 }
0x15c8   :  { %4776 = vmatprep.subr.bf16.mxu0 %v5848_v63 }
0x15cb   :  { %4778 = vmatpush1.bf16.msra.mxu0 %v5865_v7 }
0x15cc   :  { %4780 = vmatprep.subr.bf16.mxu0 %v5868_v9 }
0x15cf   :  { %4782 = vmatpush1.bf16.msra.mxu0 %v5879_v13 }
0x15d0   :  { %4784 = vmatprep.subr.bf16.mxu0 %v5509_v16 }
0x1665   :  { %v2403_v32 = vpop.f32.mrb[48].mxu0 }
0x1666   :  { %v2404_v33 = vadd.f32 %v2403_v32, %v374_v39  ;;  %v2405_v20 = vpop.f32.mrb[49].mxu0  ;;  %v6980_v39 = vadd.f32 %v7223_v11, %v5992_v14  ;;  %v2955_v11 = vld [vmem:[%s7197_s4 + $0xe0] sm:$0xff] }
0x1667   :  { %v2406_v21 = vadd.f32 %v2405_v20, %v376_v3  ;;  %v6984_v3 = vadd.f32 %v7224_v50, %v6077_v60  ;;  %v2956_v50 = vld [vmem:[%s7197_s4 + $0xe8] sm:$0xff] }
0x1669   :  { %5401 = vtanh.f32 %v2406_v21 }
0x166a   :  { %5403 = vtanh.f32 %v2404_v33 }
0x1673   :  { %v5402_v6 = vpop.eup %5401 }
0x1674   :  { %v5404_v48 = vpop.eup %5403  ;;  %2476 = vmatprep.mubr.f32.mxu0 %v5402_v6 }
0x1675   :  { %2477 = vmatmul.mubr.f32.vlgmr.msra.gmra.mrb[50].mxu0 %v5404_v48 }
0x1676   :  { %4786 = vmatpush1.bf16.msra.mxu0 %v5530_v22 }
0x1677   :  { %4788 = vmatprep.subr.bf16.mxu0 %v5535_v23 }
0x167a   :  { %4790 = vmatpush1.bf16.msra.mxu0 %v5552_v28 }
0x167b   :  { %4792 = vmatprep.subr.bf16.mxu0 %v5559_v30 }
0x167e   :  { %4794 = vmatpush1.bf16.msra.mxu0 %v5575_v35 }
0x167f   :  { %4796 = vmatprep.subr.bf16.mxu0 %v5582_v37 }
0x1682   :  { %4798 = vmatpush1.bf16.msra.mxu0 %v5598_v42 }
0x1683   :  { %4800 = vmatprep.subr.bf16.mxu0 %v5605_v44 }
0x1686   :  { %4802 = vmatpush1.bf16.msra.mxu0 %v5621_v49 }
0x1687   :  { %4804 = vmatprep.subr.bf16.mxu0 %v5628_v51 }
0x168a   :  { %4806 = vmatpush1.bf16.msra.mxu0 %v5647_v57 }
0x168b   :  { %4808 = vmatprep.subr.bf16.mxu0 %v5654_v59 }
0x168e   :  { %4810 = vmatpush1.bf16.msra.mxu0 %v5674_v0 }
0x168f   :  { %4812 = vmatprep.subr.bf16.mxu0 %v5681_v2 }
0x1692   :  { %4814 = vmatpush1.bf16.msra.mxu0 %v5699_v8 }
0x1693   :  { %4816 = vmatprep.subr.bf16.mxu0 %v5706_v10 }
0x1696   :  { %4818 = vmatpush1.bf16.msra.mxu0 %v5724_v15 }
0x1697   :  { %4820 = vmatprep.subr.bf16.mxu0 %v5731_v18 }
0x169a   :  { %4822 = vmatpush1.bf16.msra.mxu0 %v5749_v25 }
0x169b   :  { %4824 = vmatprep.subr.bf16.mxu0 %v5756_v27 }
0x169e   :  { %4826 = vmatpush1.bf16.msra.mxu0 %v5774_v34 }
0x169f   :  { %4828 = vmatprep.subr.bf16.mxu0 %v5781_v38 }
0x16a2   :  { %4830 = vmatpush1.bf16.msra.mxu0 %v5799_v45 }
0x16a3   :  { %4832 = vmatprep.subr.bf16.mxu0 %v5806_v47 }
0x16a6   :  { %4834 = vmatpush1.bf16.msra.mxu0 %v5824_v54 }
0x16a7   :  { %4836 = vmatprep.subr.bf16.mxu0 %v5828_v55 }
0x16aa   :  { %4838 = vmatpush1.bf16.msra.mxu0 %v5845_v62 }
0x16ab   :  { %4840 = vmatprep.subr.bf16.mxu0 %v5848_v63 }
0x16ae   :  { %4842 = vmatpush1.bf16.msra.mxu0 %v5865_v7 }
0x16af   :  { %4844 = vmatprep.subr.bf16.mxu0 %v5868_v9 }
0x16b2   :  { %4846 = vmatpush1.bf16.msra.mxu0 %v5879_v13 }
0x1748   :  { %v2478_v56 = vpop.f32.mrb[50].mxu0 }
0x1749   :  { %v2479_v12 = vadd.f32 %v2478_v56, %v380_v4  ;;  %v2480_v24 = vpop.f32.mrb[51].mxu0 }
0x174a   :  { %v2481_v26 = vadd.f32 %v2480_v24, %v382_v41 }
0x174c   :  { %5405 = vtanh.f32 %v2481_v26 }
0x174d   :  { %5407 = vtanh.f32 %v2479_v12 }
0x1756   :  { %v5406_v53 = vpop.eup %5405 }
0x1757   :  { %v5408_v58 = vpop.eup %5407  ;;  %2551 = vmatprep.mubr.f32.mxu0 %v5406_v53 }
0x1758   :  { %2552 = vmatmul.mubr.f32.vlgmr.msra.gmra.mrb[52].mxu0 %v5408_v58 }
0x182b   :  { %v2553_v17 = vpop.f32.mrb[52].mxu0 }
0x182c   :  { %v2554_v19 = vadd.f32 %v2553_v17, %v386_v46  ;;  %v2555_v29 = vpop.f32.mrb[53].mxu0  ;;  %v2935_v46 = vld [vmem:[%s7197_s4 + $0x40] sm:$0xff]  ;;  %v2953_v17 = vld [vmem:[%s7197_s4 + $0xd0] sm:$0xff] }
0x182d   :  { %v2556_v31 = vadd.f32 %v2555_v29, %v388_v61  ;;  %v5185_v61 = vpack.c.bf16 %v2936_v36, %v2935_v46 }
0x182f   :  { %5409 = vtanh.f32 %v2556_v31  ;;  %v2937_v31 = vld [vmem:[%s7197_s4 + $0x50] sm:$0xff] }
0x1830   :  { %5411 = vtanh.f32 %v2554_v19  ;;  %v2954_v19 = vld [vmem:[%s7197_s4 + $0xd8] sm:$0xff] }
0x1831   :  { %v5187_v29 = vpack.c.bf16 %v2954_v19, %v2953_v17 }
0x1839   :  { %v5410_v1 = vpop.eup %5409 }
0x183a   :  { %v5412_v5 = vpop.eup %5411  ;;  %2626 = vmatprep.mubr.f32.mxu1 %v5410_v1  ;;  %v2938_v1 = vld [vmem:[%s7197_s4 + $0x58] sm:$0xff] }
0x183b   :  { %2627 = vmatmul.mubr.f32.vlgmr.msra.gmra.mrb[46].mxu1 %v5412_v5  ;;  %v5189_v5 = vpack.c.bf16 %v2938_v1, %v2937_v31 }
0x183c   :  { %4914 = vmatpush1.bf16.msra.mxu1 %v5530_v22 }
0x183d   :  { %4916 = vmatprep.subr.bf16.mxu1 %v5535_v23 }
0x1840   :  { %4918 = vmatpush1.bf16.msra.mxu1 %v5552_v28 }
0x1841   :  { %4920 = vmatprep.subr.bf16.mxu1 %v5559_v30 }
0x1844   :  { %4922 = vmatpush1.bf16.msra.mxu1 %v5575_v35 }
0x1845   :  { %4924 = vmatprep.subr.bf16.mxu1 %v5582_v37 }
0x1848   :  { %4926 = vmatpush1.bf16.msra.mxu1 %v5598_v42 }
0x1849   :  { %4928 = vmatprep.subr.bf16.mxu1 %v5605_v44 }
0x184c   :  { %4930 = vmatpush1.bf16.msra.mxu1 %v5621_v49 }
0x184d   :  { %4932 = vmatprep.subr.bf16.mxu1 %v5628_v51 }
0x1850   :  { %4934 = vmatpush1.bf16.msra.mxu1 %v5647_v57 }
0x1851   :  { %4936 = vmatprep.subr.bf16.mxu1 %v5654_v59 }
0x1854   :  { %4938 = vmatpush1.bf16.msra.mxu1 %v5674_v0 }
0x1855   :  { %4940 = vmatprep.subr.bf16.mxu1 %v5681_v2 }
0x1858   :  { %4942 = vmatpush1.bf16.msra.mxu1 %v5699_v8 }
0x1859   :  { %4944 = vmatprep.subr.bf16.mxu1 %v5706_v10 }
0x185c   :  { %4946 = vmatpush1.bf16.msra.mxu1 %v5724_v15 }
0x185d   :  { %4948 = vmatprep.subr.bf16.mxu1 %v5731_v18 }
0x1860   :  { %4950 = vmatpush1.bf16.msra.mxu1 %v5749_v25 }
0x1861   :  { %4952 = vmatprep.subr.bf16.mxu1 %v5756_v27 }
0x1864   :  { %4954 = vmatpush1.bf16.msra.mxu1 %v5774_v34 }
0x1865   :  { %4956 = vmatprep.subr.bf16.mxu1 %v5781_v38 }
0x1868   :  { %4958 = vmatpush1.bf16.msra.mxu1 %v5799_v45 }
0x1869   :  { %4960 = vmatprep.subr.bf16.mxu1 %v5806_v47 }
0x186c   :  { %4962 = vmatpush1.bf16.msra.mxu1 %v5824_v54 }
0x186d   :  { %4964 = vmatprep.subr.bf16.mxu1 %v5828_v55 }
0x1870   :  { %4966 = vmatpush1.bf16.msra.mxu1 %v5845_v62 }
0x1871   :  { %4968 = vmatprep.subr.bf16.mxu1 %v5848_v63 }
0x1874   :  { %4970 = vmatpush1.bf16.msra.mxu1 %v5865_v7 }
0x1875   :  { %4972 = vmatprep.subr.bf16.mxu1 %v5868_v9 }
0x1878   :  { %4974 = vmatpush1.bf16.msra.mxu1 %v5879_v13 }
0x1879   :  { %4976 = vmatprep.subr.bf16.mxu1 %v5509_v16 }
0x190e   :  { %v2628_v32 = vpop.f32.mrb[46].mxu1 }
0x190f   :  { %v2629_v33 = vadd.f32 %v2628_v32, %v6980_v39  ;;  %v2630_v20 = vpop.f32.mrb[47].mxu1  ;;  %v2939_v32 = vld [vmem:[%s7197_s4 + $0x60] sm:$0xff] }
0x1910   :  { %v2631_v21 = vadd.f32 %v2630_v20, %v6984_v3  ;;  %v2940_v20 = vld [vmem:[%s7197_s4 + $0x68] sm:$0xff] }
0x1912   :  { %5413 = vtanh.f32 %v2631_v21  ;;  %v2957_v21 = vld [vmem:[%s7197_s4 + $0xf0] sm:$0xff] }
0x1913   :  { %5415 = vtanh.f32 %v2629_v33  ;;  %v5191_v33 = vpack.c.bf16 %v2956_v50, %v2955_v11 }
0x191c   :  { %v5414_v6 = vpop.eup %5413 }
0x191d   :  { %v5416_v48 = vpop.eup %5415  ;;  %2699 = vmatprep.mubr.f32.mxu1 %v5414_v6  ;;  %v2958_v6 = vld [vmem:[%s7197_s4 + $0xf8] sm:$0xff] }
0x191e   :  { %2700 = vmatmul.mubr.f32.vlgmr.msra.gmra.mrb[48].mxu1 %v5416_v48  ;;  %v5193_v48 = vpack.c.bf16 %v2940_v20, %v2939_v32 }
0x191f   :  { %4978 = vmatpush1.bf16.msra.mxu1 %v5530_v22 }
0x1920   :  { %4980 = vmatprep.subr.bf16.mxu1 %v5535_v23 }
0x1923   :  { %4982 = vmatpush1.bf16.msra.mxu1 %v5552_v28 }
0x1924   :  { %4984 = vmatprep.subr.bf16.mxu1 %v5559_v30 }
0x1927   :  { %4986 = vmatpush1.bf16.msra.mxu1 %v5575_v35 }
0x1928   :  { %4988 = vmatprep.subr.bf16.mxu1 %v5582_v37 }
0x192b   :  { %4990 = vmatpush1.bf16.msra.mxu1 %v5598_v42 }
0x192c   :  { %4992 = vmatprep.subr.bf16.mxu1 %v5605_v44 }
0x192f   :  { %4994 = vmatpush1.bf16.msra.mxu1 %v5621_v49 }
0x1930   :  { %4996 = vmatprep.subr.bf16.mxu1 %v5628_v51 }
0x1933   :  { %4998 = vmatpush1.bf16.msra.mxu1 %v5647_v57 }
0x1934   :  { %5000 = vmatprep.subr.bf16.mxu1 %v5654_v59 }
0x1937   :  { %5002 = vmatpush1.bf16.msra.mxu1 %v5674_v0 }
0x1938   :  { %5004 = vmatprep.subr.bf16.mxu1 %v5681_v2 }
0x193b   :  { %5006 = vmatpush1.bf16.msra.mxu1 %v5699_v8 }
0x193c   :  { %5008 = vmatprep.subr.bf16.mxu1 %v5706_v10 }
0x193f   :  { %5010 = vmatpush1.bf16.msra.mxu1 %v5724_v15 }
0x1940   :  { %5012 = vmatprep.subr.bf16.mxu1 %v5731_v18 }
0x1943   :  { %5014 = vmatpush1.bf16.msra.mxu1 %v5749_v25 }
0x1944   :  { %5016 = vmatprep.subr.bf16.mxu1 %v5756_v27 }
0x1947   :  { %5018 = vmatpush1.bf16.msra.mxu1 %v5774_v34 }
0x1948   :  { %5020 = vmatprep.subr.bf16.mxu1 %v5781_v38 }
0x194b   :  { %5022 = vmatpush1.bf16.msra.mxu1 %v5799_v45 }
0x194c   :  { %5024 = vmatprep.subr.bf16.mxu1 %v5806_v47 }
0x194f   :  { %5026 = vmatpush1.bf16.msra.mxu1 %v5824_v54 }
0x1950   :  { %5028 = vmatprep.subr.bf16.mxu1 %v5828_v55 }
0x1953   :  { %5030 = vmatpush1.bf16.msra.mxu1 %v5845_v62 }
0x1954   :  { %5032 = vmatprep.subr.bf16.mxu1 %v5848_v63 }
0x1957   :  { %5034 = vmatpush1.bf16.msra.mxu1 %v5865_v7 }
0x1958   :  { %5036 = vmatprep.subr.bf16.mxu1 %v5868_v9 }
0x195b   :  { %5038 = vmatpush1.bf16.msra.mxu1 %v5879_v13 }
0x195c   :  { %5040 = vmatprep.subr.bf16.mxu1 %v5509_v16 }
0x19f1   :  { %v2701_v14 = vpop.f32.mrb[48].mxu1 }
0x19f2   :  { %v2702_v60 = vadd.f32 %v2701_v14, %v6980_v39  ;;  %v2703_v52 = vpop.f32.mrb[49].mxu1  ;;  %v5195_v14 = vpack.c.bf16 %v2958_v6, %v2957_v21 }
0x19f3   :  { %v2704_v4 = vadd.f32 %v2703_v52, %v6984_v3  ;;  %v2942_v52 = vld [vmem:[%s7197_s4 + $0x78] sm:$0xff] }
0x19f5   :  { %5417 = vtanh.f32 %v2704_v4 }
0x19f6   :  { %5419 = vtanh.f32 %v2702_v60  ;;  %v2941_v60 = vld [vmem:[%s7197_s4 + $0x70] sm:$0xff] }
0x19f7   :  { %v5197_v4 = vpack.c.bf16 %v2942_v52, %v2941_v60 }
0x19ff   :  { %v5418_v40 = vpop.eup %5417 }
0x1a00   :  { %v5420_v41 = vpop.eup %5419  ;;  %2772 = vmatprep.mubr.f32.mxu1 %v5418_v40 }
0x1a01   :  { %2773 = vmatmul.mubr.f32.vlgmr.msra.gmra.mrb[50].mxu1 %v5420_v41 }
0x1a02   :  { %5042 = vmatpush1.bf16.msra.mxu1 %v5530_v22 }
0x1a03   :  { %5044 = vmatprep.subr.bf16.mxu1 %v5535_v23 }
0x1a06   :  { %5046 = vmatpush1.bf16.msra.mxu1 %v5552_v28 }
0x1a07   :  { %5048 = vmatprep.subr.bf16.mxu1 %v5559_v30 }
0x1a0a   :  { %5050 = vmatpush1.bf16.msra.mxu1 %v5575_v35 }
0x1a0b   :  { %5052 = vmatprep.subr.bf16.mxu1 %v5582_v37 }
0x1a0e   :  { %5054 = vmatpush1.bf16.msra.mxu1 %v5598_v42 }
0x1a0f   :  { %5056 = vmatprep.subr.bf16.mxu1 %v5605_v44 }
0x1a12   :  { %5058 = vmatpush1.bf16.msra.mxu1 %v5621_v49 }
0x1a13   :  { %5060 = vmatprep.subr.bf16.mxu1 %v5628_v51 }
0x1a16   :  { %5062 = vmatpush1.bf16.msra.mxu1 %v5647_v57 }
0x1a17   :  { %5064 = vmatprep.subr.bf16.mxu1 %v5654_v59 }
0x1a1a   :  { %5066 = vmatpush1.bf16.msra.mxu1 %v5674_v0 }
0x1a1b   :  { %5068 = vmatprep.subr.bf16.mxu1 %v5681_v2 }
0x1a1e   :  { %5070 = vmatpush1.bf16.msra.mxu1 %v5699_v8 }
0x1a1f   :  { %5072 = vmatprep.subr.bf16.mxu1 %v5706_v10 }
0x1a22   :  { %5074 = vmatpush1.bf16.msra.mxu1 %v5724_v15 }
0x1a23   :  { %5076 = vmatprep.subr.bf16.mxu1 %v5731_v18 }
0x1a26   :  { %5078 = vmatpush1.bf16.msra.mxu1 %v5749_v25 }
0x1a27   :  { %5080 = vmatprep.subr.bf16.mxu1 %v5756_v27 }
0x1a2a   :  { %5082 = vmatpush1.bf16.msra.mxu1 %v5774_v34 }
0x1a2b   :  { %5084 = vmatprep.subr.bf16.mxu1 %v5781_v38 }
0x1a2e   :  { %5086 = vmatpush1.bf16.msra.mxu1 %v5799_v45 }
0x1a2f   :  { %5088 = vmatprep.subr.bf16.mxu1 %v5806_v47 }
0x1a32   :  { %5090 = vmatpush1.bf16.msra.mxu1 %v5824_v54 }
0x1a33   :  { %5092 = vmatprep.subr.bf16.mxu1 %v5828_v55 }
0x1a36   :  { %5094 = vmatpush1.bf16.msra.mxu1 %v5845_v62 }
0x1a37   :  { %5096 = vmatprep.subr.bf16.mxu1 %v5848_v63 }
0x1a3a   :  { %5098 = vmatpush1.bf16.msra.mxu1 %v5865_v7 }
0x1a3b   :  { %5100 = vmatprep.subr.bf16.mxu1 %v5868_v9 }
0x1a3e   :  { %5102 = vmatpush1.bf16.msra.mxu1 %v5879_v13 }
0x1a3f   :  { %5104 = vmatprep.subr.bf16.mxu1 %v5509_v16  ;;  %v2943_v16 = vld [vmem:[%s7197_s4 + $0x80] sm:$0xff] }
0x1ad4   :  { %v2774_v56 = vpop.f32.mrb[50].mxu1 }
0x1ad5   :  { %v2775_v12 = vadd.f32 %v2774_v56, %v6980_v39  ;;  %v2776_v24 = vpop.f32.mrb[51].mxu1 }
0x1ad6   :  { %v2777_v26 = vadd.f32 %v2776_v24, %v6984_v3 }
0x1ad8   :  { %5421 = vtanh.f32 %v2777_v26 }
0x1ad9   :  { %5423 = vtanh.f32 %v2775_v12 }
0x1ae2   :  { %v5422_v53 = vpop.eup %5421 }
0x1ae3   :  { %v5424_v58 = vpop.eup %5423  ;;  %2845 = vmatprep.mubr.f32.mxu1 %v5422_v53 }
0x1ae4   :  { %2846 = vmatmul.mubr.f32.vlgmr.msra.gmra.mrb[52].mxu1 %v5424_v58  ;;  %v3073_v58 = vld [vmem:[%s7198_s5] ss:$0 sm:$0xff] }
0x1ae5   :  { %5106 = vmatpush1.bf16.msra.mxu1 %v5530_v22  ;;  %v2944_v22 = vld [vmem:[%s7197_s4 + $0x88] sm:$0xff] }
0x1ae6   :  { %5108 = vmatprep.subr.bf16.mxu1 %v5535_v23  ;;  %v5167_v23 = vpack.c.bf16 %v2944_v22, %v2943_v16 }
0x1ae9   :  { %5110 = vmatpush1.bf16.msra.mxu1 %v5552_v28 }
0x1aea   :  { %5112 = vmatprep.subr.bf16.mxu1 %v5559_v30 }
0x1aed   :  { %5114 = vmatpush1.bf16.msra.mxu1 %v5575_v35 }
0x1aee   :  { %5116 = vmatprep.subr.bf16.mxu1 %v5582_v37 }
0x1af1   :  { %5118 = vmatpush1.bf16.msra.mxu1 %v5598_v42  ;;  %v2927_v42 = vld [vmem:[%s7197_s4] sm:$0xff] }
0x1af2   :  { %5120 = vmatprep.subr.bf16.mxu1 %v5605_v44  ;;  %v2928_v44 = vld [vmem:[%s7197_s4 + $0x8] sm:$0xff] }
0x1af5   :  { %5122 = vmatpush1.bf16.msra.mxu1 %v5621_v49  ;;  %v2945_v49 = vld [vmem:[%s7197_s4 + $0x90] sm:$0xff] }
0x1af6   :  { %5124 = vmatprep.subr.bf16.mxu1 %v5628_v51  ;;  %v2946_v51 = vld [vmem:[%s7197_s4 + $0x98] sm:$0xff] }
0x1af9   :  { %5126 = vmatpush1.bf16.msra.mxu1 %v5647_v57  ;;  %v5169_v57 = vpack.c.bf16 %v2928_v44, %v2927_v42 }
0x1afa   :  { %5128 = vmatprep.subr.bf16.mxu1 %v5654_v59 }
0x1afd   :  { %5130 = vmatpush1.bf16.msra.mxu1 %v5674_v0  ;;  %v5171_v0 = vpack.c.bf16 %v2946_v51, %v2945_v49 }
0x1afe   :  { %5132 = vmatprep.subr.bf16.mxu1 %v5681_v2  ;;  %v2929_v2 = vld [vmem:[%s7197_s4 + $0x10] sm:$0xff] }
0x1b01   :  { %5134 = vmatpush1.bf16.msra.mxu1 %v5699_v8  ;;  %v2930_v8 = vld [vmem:[%s7197_s4 + $0x18] sm:$0xff] }
0x1b02   :  { %5136 = vmatprep.subr.bf16.mxu1 %v5706_v10 }
0x1b05   :  { %5138 = vmatpush1.bf16.msra.mxu1 %v5724_v15  ;;  %v2947_v15 = vld [vmem:[%s7197_s4 + $0xa0] sm:$0xff] }
0x1b06   :  { %5140 = vmatprep.subr.bf16.mxu1 %v5731_v18  ;;  %v2948_v18 = vld [vmem:[%s7197_s4 + $0xa8] sm:$0xff] }
0x1b09   :  { %5142 = vmatpush1.bf16.msra.mxu1 %v5749_v25  ;;  %v5173_v25 = vpack.c.bf16 %v2930_v8, %v2929_v2 }
0x1b0a   :  { %5144 = vmatprep.subr.bf16.mxu1 %v5756_v27  ;;  %v5175_v27 = vpack.c.bf16 %v2948_v18, %v2947_v15 }
0x1b0d   :  { %5146 = vmatpush1.bf16.msra.mxu1 %v5774_v34  ;;  %v2931_v34 = vld [vmem:[%s7197_s4 + $0x20] sm:$0xff] }
0x1b0e   :  { %5148 = vmatprep.subr.bf16.mxu1 %v5781_v38  ;;  %v2932_v38 = vld [vmem:[%s7197_s4 + $0x28] sm:$0xff] }
0x1b11   :  { %5150 = vmatpush1.bf16.msra.mxu1 %v5799_v45  ;;  %v2949_v45 = vld [vmem:[%s7197_s4 + $0xb0] sm:$0xff] }
0x1b12   :  { %5152 = vmatprep.subr.bf16.mxu1 %v5806_v47  ;;  %v2950_v47 = vld [vmem:[%s7197_s4 + $0xb8] sm:$0xff] }
0x1b15   :  { %5154 = vmatpush1.bf16.msra.mxu1 %v5824_v54  ;;  %v5177_v54 = vpack.c.bf16 %v2932_v38, %v2931_v34 }
0x1b16   :  { %5156 = vmatprep.subr.bf16.mxu1 %v5828_v55  ;;  %v5179_v55 = vpack.c.bf16 %v2950_v47, %v2949_v45 }
0x1b19   :  { %5158 = vmatpush1.bf16.msra.mxu1 %v5845_v62  ;;  %v2933_v62 = vld [vmem:[%s7197_s4 + $0x30] sm:$0xff] }
0x1b1a   :  { %5160 = vmatprep.subr.bf16.mxu1 %v5848_v63  ;;  %v2934_v63 = vld [vmem:[%s7197_s4 + $0x38] sm:$0xff] }
0x1b1d   :  { %5162 = vmatpush1.bf16.msra.mxu1 %v5865_v7  ;;  %v5181_v7 = vpack.c.bf16 %v2934_v63, %v2933_v62 }
0x1b1e   :  { %5164 = vmatprep.subr.bf16.mxu1 %v5868_v9  ;;  %v2951_v9 = vld [vmem:[%s7197_s4 + $0xc0] sm:$0xff] }
0x1b21   :  { %5166 = vmatpush1.bf16.msra.mxu1 %v5879_v13  ;;  %v2952_v13 = vld [vmem:[%s7197_s4 + $0xc8] sm:$0xff] }
0x1b22   :  { %5168 = vmatprep.subr.bf16.mxu1 %v5167_v23  ;;  %v5183_v43 = vpack.c.bf16 %v2952_v13, %v2951_v9 }
0x1bb7   :  { %v2847_v28 = vpop.f32.mrb[52].mxu1 }
0x1bb8   :  { %v2848_v30 = vadd.f32 %v2847_v28, %v6980_v39  ;;  %v2849_v35 = vpop.f32.mrb[53].mxu1 }
0x1bb9   :  { %v2850_v37 = vadd.f32 %v2849_v35, %v6984_v3 }
0x1bbb   :  { %5425 = vtanh.f32 %v2850_v37 }
0x1bbc   :  { %5427 = vtanh.f32 %v2848_v30 }
0x1bc5   :  { %v5426_v59 = vpop.eup %5425 }
0x1bc6   :  { %v5428_v10 = vpop.eup %5427  ;;  %2918 = vmatprep.mubr.f32.mxu1 %v5426_v59 }
0x1bc7   :  { %2919 = vmatmul.mubr.f32.vlgmr.msra.gmra.mrb[54].mxu1 %v5428_v10 }
0x1bc8   :  { %5170 = vmatpush3.bf16.msra.mxu1 %v5169_v57 }
0x1bc9   :  { %5172 = vmatprep.subr.bf16.mxu1 %v5171_v0 }
0x1bcc   :  { %5174 = vmatpush3.bf16.msra.mxu1 %v5173_v25 }
0x1bcd   :  { %5176 = vmatprep.subr.bf16.mxu1 %v5175_v27 }
0x1bd0   :  { %5178 = vmatpush3.bf16.msra.mxu1 %v5177_v54 }
0x1bd1   :  { %5180 = vmatprep.subr.bf16.mxu1 %v5179_v55 }
0x1bd4   :  { %5182 = vmatpush3.bf16.msra.mxu1 %v5181_v7 }
0x1bd5   :  { %5184 = vmatprep.subr.bf16.mxu1 %v5183_v43 }
0x1bd8   :  { %5186 = vmatpush3.bf16.msra.mxu1 %v5185_v61 }
0x1bd9   :  { %5188 = vmatprep.subr.bf16.mxu1 %v5187_v29 }
0x1bdc   :  { %5190 = vmatpush3.bf16.msra.mxu1 %v5189_v5 }
0x1bdd   :  { %5192 = vmatprep.subr.bf16.mxu1 %v5191_v33 }
0x1be0   :  { %5194 = vmatpush3.bf16.msra.mxu1 %v5193_v48 }
0x1be1   :  { %5196 = vmatprep.subr.bf16.mxu1 %v5195_v14 }
0x1be4   :  { %5198 = vmatpush3.bf16.msra.mxu1 %v5197_v4 }
0x1c9a   :  { %v2920_v40 = vpop.f32.mrb[54].mxu1 }
0x1c9b   :  { %v2921_v41 = vadd.f32 %v2920_v40, %v6980_v39  ;;  %v2922_v56 = vpop.f32.mrb[55].mxu1 }
0x1c9c   :  { %v2923_v12 = vadd.f32 %v2922_v56, %v6984_v3 }
0x1c9e   :  { %5429 = vtanh.f32 %v2923_v12 }
0x1c9f   :  { %5431 = vtanh.f32 %v2921_v41 }
0x1ca8   :  { %v5430_v24 = vpop.eup %5429 }
0x1ca9   :  { %v5432_v26 = vpop.eup %5431  ;;  %3030 = vmatprep.mubr.f32.mxu1 %v5430_v24 }
0x1caa   :  { %3031 = vmatmul.mubr.f32.vlgmr.msra.gmra.mrb[56].mxu1 %v5432_v26 }
0x1d7d   :  { %v3106_v53 = vpop.f32.mrb[56].mxu1 }
0x1d7e   :  { %v3107_v16 = vpop.f32.mrb[57].mxu1 }
0x1d7f   :  { %v3108_v22 = vadd.f32 %v3107_v16, %v3106_v53 }
0x1d81   :  { %v3033_v23 = vadd.f32 %v3108_v22, %v3073_v58 }
0x1d83   :  { %3036 = vst [vmem:[%s7199_s6] sm:$0xff] %v3033_v23 }

</bundles_post_ra>
